<compile_context>
chip_gen: v6e
topology: v6e:2x2x1
jax: 0.10.0
libtpu: 0.0.40
codegen_flags: <defaults>
</compile_context>

<pallas_src>
import functools

import jax
import jax.numpy as jnp
from jax import lax
from jax.experimental import pallas as pl
from jax.experimental.pallas import tpu as pltpu


# ----------------------------------------------------------------------------
# helpers
# ----------------------------------------------------------------------------
def _pick_tile(hw, max_tile=512):
    for t in (512, 256, 128, 64, 32, 16, 8):
        if t <= max_tile and hw % t == 0:
            return t
    return hw


# ----------------------------------------------------------------------------
# Kernel 1: fused 3x3 / stride 1 / pad 1 conv + BN + ReLU.
# Grid = (B, H); each step computes one output row (W, C) by accumulating the
# nine shifted taps directly from three padded input rows (no im2col in HBM).
# ----------------------------------------------------------------------------
def _conv3x3_kernel(x0_ref, x1_ref, x2_ref, w_ref, s_ref, b_ref, o_ref, *, W):
    rows = (x0_ref[...], x1_ref[...], x2_ref[...])        # each (Wp, Cin) bf16
    acc = jnp.zeros(o_ref.shape, jnp.float32)             # (W, C)
    for di in range(3):
        row = rows[di]
        for dj in range(3):
            win = row[dj:dj + W, :]                        # (W, Cin)
            acc += jnp.dot(win, w_ref[di * 3 + dj],
                           preferred_element_type=jnp.float32)
    y = acc * s_ref[...] + b_ref[...]                      # f32 epilogue
    o_ref[...] = jnp.maximum(y, 0.0).astype(o_ref.dtype)


def _row_spec(di, Wp, Cin):
    return pl.BlockSpec((None, None, Wp, Cin),
                        lambda b, h: (b, h + di, 0, 0))


def conv3x3_bn_relu(x_nhwc, w, scale, bias):
    """x (B,H,W,Cin) bf16; w (9,Cin,C) bf16; scale/bias (C,) f32 -> (B,H,W,C) bf16."""
    B, H, W, Cin = x_nhwc.shape
    C = w.shape[-1]
    xpad = jnp.pad(x_nhwc, ((0, 0), (1, 1), (1, 1), (0, 0)))
    Wp = W + 2
    return pl.pallas_call(
        functools.partial(_conv3x3_kernel, W=W),
        out_shape=jax.ShapeDtypeStruct((B, H, W, C), jnp.bfloat16),
        grid=(B, H),
        in_specs=[
            _row_spec(0, Wp, Cin), _row_spec(1, Wp, Cin), _row_spec(2, Wp, Cin),
            pl.BlockSpec((9, Cin, C), lambda b, h: (0, 0, 0)),
            pl.BlockSpec((1, C), lambda b, h: (0, 0)),
            pl.BlockSpec((1, C), lambda b, h: (0, 0)),
        ],
        out_specs=pl.BlockSpec((None, None, W, C), lambda b, h: (b, h, 0, 0)),
        compiler_params=pltpu.CompilerParams(
            dimension_semantics=("parallel", "parallel")),
    )(xpad, xpad, xpad, w, scale.reshape(1, C), bias.reshape(1, C))


# ----------------------------------------------------------------------------
# Kernel 2: fused [convblock_3 | convblock_2 + softmax_1] + affinity S
# accumulation + softmax_2 finalize.  Grid = (B, HW tiles), HW is the
# "arbitrary" reduction axis with a (N, C1) f32 VMEM accumulator.
# Packed weight layout: columns [0:C1) = conv3, [C1:C1+N) = conv2 (lane-aligned).
# Outputs: p (B, HW, N) f32 and A = softmax_2(x3^T-contraction) as (B, N, C1).
# ----------------------------------------------------------------------------
def _feat_affinity_kernel(feat_ref, w23_ref, s23_ref, b23_ref,
                          p_ref, a_ref, s_acc, *, N, C1):
    t = pl.program_id(1)
    nt = pl.num_programs(1)

    @pl.when(t == 0)
    def _():
        s_acc[...] = jnp.zeros_like(s_acc)

    y = jnp.dot(feat_ref[...], w23_ref[...],
                preferred_element_type=jnp.float32)        # (T, C1+N)
    y = jnp.maximum(y * s23_ref[...] + b23_ref[...], 0.0)  # BN + ReLU (f32)

    x3 = y[:, :C1]                                         # convblock_3 output
    pz = y[:, C1:C1 + N]                                   # convblock_2 output
    m = jnp.max(pz, axis=-1, keepdims=True)                # softmax_1 (channels)
    e = jnp.exp(pz - m)
    p = e / jnp.sum(e, axis=-1, keepdims=True)
    p_ref[...] = p

    # S(n, c1) += sum_hw p(hw, n) * x3(hw, c1)
    s_acc[...] += lax.dot_general(
        p.astype(jnp.bfloat16), x3.astype(jnp.bfloat16),
        (((0,), (0,)), ((), ())),
        preferred_element_type=jnp.float32)

    @pl.when(t == nt - 1)
    def _():
        s = s_acc[...]                                     # (N, C1)
        ms = jnp.max(s, axis=0, keepdims=True)             # softmax_2 over N
        es = jnp.exp(s - ms)
        a_ref[...] = es / jnp.sum(es, axis=0, keepdims=True)


def feat_to_p_and_affinity(feat_b, w23, s23, b23, N, C1, tile):
    B, HW, C = feat_b.shape
    W23 = w23.shape[1]
    nt = HW // tile
    cost = pl.CostEstimate(
        flops=2 * B * HW * C * W23 + 2 * B * HW * N * C1,
        transcendentals=B * HW * N + B * N * C1,
        bytes_accessed=(B * HW * C * 2 + B * HW * N * 4 + B * N * C1 * 4
                        + C * W23 * 2 + 2 * W23 * 4))
    return pl.pallas_call(
        functools.partial(_feat_affinity_kernel, N=N, C1=C1),
        out_shape=(jax.ShapeDtypeStruct((B, HW, N), jnp.float32),
                   jax.ShapeDtypeStruct((B, N, C1), jnp.float32)),
        grid=(B, nt),
        in_specs=[
            pl.BlockSpec((None, tile, C), lambda b, t: (b, t, 0)),
            pl.BlockSpec((C, W23), lambda b, t: (0, 0)),
            pl.BlockSpec((1, W23), lambda b, t: (0, 0)),
            pl.BlockSpec((1, W23), lambda b, t: (0, 0)),
        ],
        out_specs=(pl.BlockSpec((None, tile, N), lambda b, t: (b, t, 0)),
                   pl.BlockSpec((None, N, C1), lambda b, t: (b, 0, 0))),
        scratch_shapes=[pltpu.VMEM((N, C1), jnp.float32)],
        compiler_params=pltpu.CompilerParams(
            dimension_semantics=("parallel", "arbitrary")),
        cost_estimate=cost,
    )(feat_b, w23, s23, b23)


# ----------------------------------------------------------------------------
# Kernel 3: fused tail: y = p @ A2  ->  convblock_4  ->  (concat-free)
# convblock_5 with split weights (w5a for conv4 output, w5b for feat).
# Grid = (B, HW tiles), fully parallel; the (HW, C1) intermediate never
# touches HBM.
# ----------------------------------------------------------------------------
def _tail_kernel(p_ref, a2_ref, feat_ref, w4_ref, s4_ref, b4_ref,
                 w5a_ref, w5b_ref, s5_ref, b5_ref, o_ref):
    y = jnp.dot(p_ref[...].astype(jnp.bfloat16), a2_ref[...],
                preferred_element_type=jnp.float32)          # (T, C1)
    u = jnp.dot(y.astype(jnp.bfloat16), w4_ref[...],
                preferred_element_type=jnp.float32)
    u = jnp.maximum(u * s4_ref[...] + b4_ref[...], 0.0)      # convblock_4
    v = jnp.dot(u.astype(jnp.bfloat16), w5a_ref[...],
                preferred_element_type=jnp.float32)
    v += jnp.dot(feat_ref[...], w5b_ref[...],
                 preferred_element_type=jnp.float32)          # fused concat
    o_ref[...] = jnp.maximum(v * s5_ref[...] + b5_ref[...], 0.0)  # convblock_5


def tail(p_b, a2_b, feat_b, w4, s4, b4, w5a, w5b, s5, b5, tile):
    B, HW, N = p_b.shape
    C1 = a2_b.shape[2]
    C = w4.shape[1]
    nt = HW // tile
    cost = pl.CostEstimate(
        flops=2 * B * HW * (N * C1 + C1 * C + 2 * C * C),
        transcendentals=0,
        bytes_accessed=(B * HW * N * 4 + B * HW * C * 2 + B * HW * C * 4
                        + B * N * C1 * 2 + (C1 * C + 2 * C * C) * 2))
    return pl.pallas_call(
        _tail_kernel,
        out_shape=jax.ShapeDtypeStruct((B, HW, C), jnp.float32),
        grid=(B, nt),
        in_specs=[
            pl.BlockSpec((None, tile, N), lambda b, t: (b, t, 0)),
            pl.BlockSpec((None, N, C1), lambda b, t: (b, 0, 0)),
            pl.BlockSpec((None, tile, C), lambda b, t: (b, t, 0)),
            pl.BlockSpec((C1, C), lambda b, t: (0, 0)),
            pl.BlockSpec((1, C), lambda b, t: (0, 0)),
            pl.BlockSpec((1, C), lambda b, t: (0, 0)),
            pl.BlockSpec((C, C), lambda b, t: (0, 0)),
            pl.BlockSpec((C, C), lambda b, t: (0, 0)),
            pl.BlockSpec((1, C), lambda b, t: (0, 0)),
            pl.BlockSpec((1, C), lambda b, t: (0, 0)),
        ],
        out_specs=pl.BlockSpec((None, tile, C), lambda b, t: (b, t, 0)),
        compiler_params=pltpu.CompilerParams(
            dimension_semantics=("parallel", "parallel")),
        cost_estimate=cost,
    )(p_b, a2_b, feat_b, w4, s4.reshape(1, C), b4.reshape(1, C),
      w5a, w5b, s5.reshape(1, C), b5.reshape(1, C))


# ----------------------------------------------------------------------------
# Deterministic synthetic parameters (BN folded into scale/bias; eval mode).
# ----------------------------------------------------------------------------
def init_params(key, in_c, out_c, N=6, C1=256, alpha=150):
    ks = jax.random.split(key, 16)
    C = out_c
    H1 = alpha * N

    def w(k, shape, s=0.1):
        return s * jax.random.normal(k, shape, jnp.float32)

    def bn(k, c):
        k1, k2 = jax.random.split(k)
        return (1.0 + 0.1 * jax.random.normal(k1, (c,), jnp.float32),
                0.1 * jax.random.normal(k2, (c,), jnp.float32))

    p = {}
    p['w1'] = w(ks[0], (9, in_c, C)).astype(jnp.bfloat16)   # 3x3 conv taps
    p['s1'], p['b1'] = bn(ks[1], C)
    p['w2'] = w(ks[2], (C, N));   p['s2'], p['b2'] = bn(ks[3], N)
    p['w3'] = w(ks[4], (C, C1));  p['s3'], p['b3'] = bn(ks[5], C1)
    p['w4'] = w(ks[6], (C1, C)).astype(jnp.bfloat16)
    p['s4'], p['b4'] = bn(ks[7], C)
    p['w5a'] = w(ks[8], (C, C)).astype(jnp.bfloat16)        # rows for conv4 out
    p['w5b'] = w(ks[9], (C, C)).astype(jnp.bfloat16)        # rows for feat (cat)
    p['s5'], p['b5'] = bn(ks[10], C)
    p['cca_w1t'] = w(ks[11], (N, H1));  p['cca_b1'] = w(ks[12], (H1,))
    p['cca_w2t'] = w(ks[13], (H1, N));  p['cca_b2'] = w(ks[14], (N,))
    return p


# ----------------------------------------------------------------------------
# Full CAA forward (NCHW in, NCHW out).
# ----------------------------------------------------------------------------
def caa_forward(params, x_nchw):
    B, Cin, H, W = x_nchw.shape
    HW = H * W
    N, C1 = 6, 256
    x = jnp.transpose(x_nchw, (0, 2, 3, 1)).astype(jnp.bfloat16)   # NHWC, bf16

    # convblock_1 (3x3, stride 1, pad 1) + BN + ReLU, im2col fused in-kernel.
    feat = conv3x3_bn_relu(x, params['w1'], params['s1'], params['b1'])
    C = feat.shape[-1]
    feat_b = feat.reshape(B, HW, C)                                # bf16

    tile = _pick_tile(HW)

    # conv3 | conv2(+softmax_1) + affinity + softmax_2, single fused kernel.
    w23 = jnp.concatenate([params['w3'], params['w2']], axis=1).astype(jnp.bfloat16)
    s23 = jnp.concatenate([params['s3'], params['s2']]).reshape(1, -1)
    b23 = jnp.concatenate([params['b3'], params['b2']]).reshape(1, -1)
    p_b, A = feat_to_p_and_affinity(feat_b, w23, s23, b23, N, C1, tile)
    # p_b: (B, HW, N) f32 ;  A: (B, N, C1) f32 (lane-dense transpose of torch layout)

    # CCA: avgpool + 2 tiny FCs + modulation + softmax over N (hoisted, batched XLA).
    pooled = jnp.mean(p_b, axis=1)                                 # (B, N)
    z = pooled @ params['cca_w1t'] + params['cca_b1']
    z = z @ params['cca_w2t'] + params['cca_b2']                   # (B, N)
    aff = A * z[:, :, None] + A
    aff = aff - jnp.max(aff, axis=1, keepdims=True)
    e = jnp.exp(aff)
    A2 = e / jnp.sum(e, axis=1, keepdims=True)                     # (B, N, C1)

    # apply affinity + convblock_4 + concat-free convblock_5 (fused tail).
    out = tail(p_b, A2.astype(jnp.bfloat16), feat_b,
               params['w4'], params['s4'], params['b4'],
               params['w5a'], params['w5b'], params['s5'], params['b5'],
               tile)                                               # (B, HW, C)

    return out.reshape(B, H, W, C).transpose(0, 3, 1, 2)           # NCHW


if __name__ == "__main__":
    key = jax.random.PRNGKey(0)
    k_in, k_par = jax.random.split(key)

    B, Cin, H, W = 2, 4, 16, 16
    Cout = 8  # CAA out_channels

    x = jax.random.normal(k_in, (B, Cin, H, W), jnp.float32)
    params = init_params(k_par, Cin, Cout)

    out = jax.jit(caa_forward)(params, x)
    out = jax.block_until_ready(out)
    assert out.shape == (B, Cout, H, W)
    assert jnp.all(jnp.isfinite(out))
    print("KERNEL_OK")
</pallas_src>

<mosaic_0001>
module attributes {stable_mosaic.version = 11 : i64} {
  func.func @_conv3x3_kernel(%arg0: i32, %arg1: i32, %arg2: memref<1x1x18x4xbf16, #tpu.memory_space<vmem>>, %arg3: memref<1x1x18x4xbf16, #tpu.memory_space<vmem>>, %arg4: memref<1x1x18x4xbf16, #tpu.memory_space<vmem>>, %arg5: memref<9x4x8xbf16, #tpu.memory_space<vmem>>, %arg6: memref<1x8xf32, #tpu.memory_space<vmem>>, %arg7: memref<1x8xf32, #tpu.memory_space<vmem>>, %arg8: memref<1x1x16x8xbf16, #tpu.memory_space<vmem>>) attributes {dimension_semantics = [#tpu.dimension_semantics<parallel>, #tpu.dimension_semantics<parallel>], iteration_bounds = array<i64: 2, 16>, scalar_prefetch = 0 : i64, scratch_operands = 0 : i64, tpu.core_type = #tpu.core_type<tc>, window_params = [{transform_indices = @transform_0, window_bounds = array<i64: 1, 1, 18, 4>}, {transform_indices = @transform_1, window_bounds = array<i64: 1, 1, 18, 4>}, {transform_indices = @transform_2, window_bounds = array<i64: 1, 1, 18, 4>}, {pipeline_mode = #tpu.pipeline_mode<synchronous>, transform_indices = @transform_3, window_bounds = array<i64: 9, 4, 8>}, {pipeline_mode = #tpu.pipeline_mode<synchronous>, transform_indices = @transform_4, window_bounds = array<i64: 1, 8>}, {pipeline_mode = #tpu.pipeline_mode<synchronous>, transform_indices = @transform_5, window_bounds = array<i64: 1, 8>}, {transform_indices = @transform_6, window_bounds = array<i64: 1, 1, 16, 8>}]} {
    %c0 = arith.constant 0 : index
    %c0_0 = arith.constant 0 : index
    %c0_1 = arith.constant 0 : index
    %c0_2 = arith.constant 0 : index
    %0 = vector.load %arg2[%c0, %c0_0, %c0_1, %c0_2] : memref<1x1x18x4xbf16, #tpu.memory_space<vmem>>, vector<1x1x18x4xbf16>
    %1 = vector.shape_cast %0 : vector<1x1x18x4xbf16> to vector<18x4xbf16>
    %c0_3 = arith.constant 0 : index
    %c0_4 = arith.constant 0 : index
    %c0_5 = arith.constant 0 : index
    %c0_6 = arith.constant 0 : index
    %2 = vector.load %arg3[%c0_3, %c0_4, %c0_5, %c0_6] : memref<1x1x18x4xbf16, #tpu.memory_space<vmem>>, vector<1x1x18x4xbf16>
    %3 = vector.shape_cast %2 : vector<1x1x18x4xbf16> to vector<18x4xbf16>
    %c0_7 = arith.constant 0 : index
    %c0_8 = arith.constant 0 : index
    %c0_9 = arith.constant 0 : index
    %c0_10 = arith.constant 0 : index
    %4 = vector.load %arg4[%c0_7, %c0_8, %c0_9, %c0_10] : memref<1x1x18x4xbf16, #tpu.memory_space<vmem>>, vector<1x1x18x4xbf16>
    %5 = vector.shape_cast %4 : vector<1x1x18x4xbf16> to vector<18x4xbf16>
    %cst = arith.constant 0.000000e+00 : f32
    %6 = vector.broadcast %cst : f32 to vector<16x8xf32>
    %7 = vector.extract_strided_slice %1 {offsets = [0, 0], sizes = [16, 4], strides = [1, 1]} : vector<18x4xbf16> to vector<16x4xbf16>
    %c0_11 = arith.constant 0 : index
    %c0_12 = arith.constant 0 : index
    %c0_13 = arith.constant 0 : index
    %8 = vector.load %arg5[%c0_11, %c0_12, %c0_13] : memref<9x4x8xbf16, #tpu.memory_space<vmem>>, vector<1x4x8xbf16>
    %9 = vector.shape_cast %8 : vector<1x4x8xbf16> to vector<4x8xbf16>
    %cst_14 = arith.constant dense<0.000000e+00> : vector<16x8xf32>
    %10 = tpu.matmul %7, %9, %cst_14 {dimension_numbers = #tpu.dot_dimension_numbers<[1], [0], [0], [1], [0, 0, 1, 1], [], []>} : vector<16x4xbf16>, vector<4x8xbf16>, vector<16x8xf32> -> vector<16x8xf32>
    %11 = arith.addf %6, %10 : vector<16x8xf32>
    %12 = vector.extract_strided_slice %1 {offsets = [1, 0], sizes = [16, 4], strides = [1, 1]} : vector<18x4xbf16> to vector<16x4xbf16>
    %c1 = arith.constant 1 : index
    %c0_15 = arith.constant 0 : index
    %c0_16 = arith.constant 0 : index
    %13 = vector.load %arg5[%c1, %c0_15, %c0_16] : memref<9x4x8xbf16, #tpu.memory_space<vmem>>, vector<1x4x8xbf16>
    %14 = vector.shape_cast %13 : vector<1x4x8xbf16> to vector<4x8xbf16>
    %cst_17 = arith.constant dense<0.000000e+00> : vector<16x8xf32>
    %15 = tpu.matmul %12, %14, %cst_17 {dimension_numbers = #tpu.dot_dimension_numbers<[1], [0], [0], [1], [0, 0, 1, 1], [], []>} : vector<16x4xbf16>, vector<4x8xbf16>, vector<16x8xf32> -> vector<16x8xf32>
    %16 = arith.addf %11, %15 : vector<16x8xf32>
    %17 = vector.extract_strided_slice %1 {offsets = [2, 0], sizes = [16, 4], strides = [1, 1]} : vector<18x4xbf16> to vector<16x4xbf16>
    %c2 = arith.constant 2 : index
    %c0_18 = arith.constant 0 : index
    %c0_19 = arith.constant 0 : index
    %18 = vector.load %arg5[%c2, %c0_18, %c0_19] : memref<9x4x8xbf16, #tpu.memory_space<vmem>>, vector<1x4x8xbf16>
    %19 = vector.shape_cast %18 : vector<1x4x8xbf16> to vector<4x8xbf16>
    %cst_20 = arith.constant dense<0.000000e+00> : vector<16x8xf32>
    %20 = tpu.matmul %17, %19, %cst_20 {dimension_numbers = #tpu.dot_dimension_numbers<[1], [0], [0], [1], [0, 0, 1, 1], [], []>} : vector<16x4xbf16>, vector<4x8xbf16>, vector<16x8xf32> -> vector<16x8xf32>
    %21 = arith.addf %16, %20 : vector<16x8xf32>
    %22 = vector.extract_strided_slice %3 {offsets = [0, 0], sizes = [16, 4], strides = [1, 1]} : vector<18x4xbf16> to vector<16x4xbf16>
    %c3 = arith.constant 3 : index
    %c0_21 = arith.constant 0 : index
    %c0_22 = arith.constant 0 : index
    %23 = vector.load %arg5[%c3, %c0_21, %c0_22] : memref<9x4x8xbf16, #tpu.memory_space<vmem>>, vector<1x4x8xbf16>
    %24 = vector.shape_cast %23 : vector<1x4x8xbf16> to vector<4x8xbf16>
    %cst_23 = arith.constant dense<0.000000e+00> : vector<16x8xf32>
    %25 = tpu.matmul %22, %24, %cst_23 {dimension_numbers = #tpu.dot_dimension_numbers<[1], [0], [0], [1], [0, 0, 1, 1], [], []>} : vector<16x4xbf16>, vector<4x8xbf16>, vector<16x8xf32> -> vector<16x8xf32>
    %26 = arith.addf %21, %25 : vector<16x8xf32>
    %27 = vector.extract_strided_slice %3 {offsets = [1, 0], sizes = [16, 4], strides = [1, 1]} : vector<18x4xbf16> to vector<16x4xbf16>
    %c4 = arith.constant 4 : index
    %c0_24 = arith.constant 0 : index
    %c0_25 = arith.constant 0 : index
    %28 = vector.load %arg5[%c4, %c0_24, %c0_25] : memref<9x4x8xbf16, #tpu.memory_space<vmem>>, vector<1x4x8xbf16>
    %29 = vector.shape_cast %28 : vector<1x4x8xbf16> to vector<4x8xbf16>
    %cst_26 = arith.constant dense<0.000000e+00> : vector<16x8xf32>
    %30 = tpu.matmul %27, %29, %cst_26 {dimension_numbers = #tpu.dot_dimension_numbers<[1], [0], [0], [1], [0, 0, 1, 1], [], []>} : vector<16x4xbf16>, vector<4x8xbf16>, vector<16x8xf32> -> vector<16x8xf32>
    %31 = arith.addf %26, %30 : vector<16x8xf32>
    %32 = vector.extract_strided_slice %3 {offsets = [2, 0], sizes = [16, 4], strides = [1, 1]} : vector<18x4xbf16> to vector<16x4xbf16>
    %c5 = arith.constant 5 : index
    %c0_27 = arith.constant 0 : index
    %c0_28 = arith.constant 0 : index
    %33 = vector.load %arg5[%c5, %c0_27, %c0_28] : memref<9x4x8xbf16, #tpu.memory_space<vmem>>, vector<1x4x8xbf16>
    %34 = vector.shape_cast %33 : vector<1x4x8xbf16> to vector<4x8xbf16>
    %cst_29 = arith.constant dense<0.000000e+00> : vector<16x8xf32>
    %35 = tpu.matmul %32, %34, %cst_29 {dimension_numbers = #tpu.dot_dimension_numbers<[1], [0], [0], [1], [0, 0, 1, 1], [], []>} : vector<16x4xbf16>, vector<4x8xbf16>, vector<16x8xf32> -> vector<16x8xf32>
    %36 = arith.addf %31, %35 : vector<16x8xf32>
    %37 = vector.extract_strided_slice %5 {offsets = [0, 0], sizes = [16, 4], strides = [1, 1]} : vector<18x4xbf16> to vector<16x4xbf16>
    %c6 = arith.constant 6 : index
    %c0_30 = arith.constant 0 : index
    %c0_31 = arith.constant 0 : index
    %38 = vector.load %arg5[%c6, %c0_30, %c0_31] : memref<9x4x8xbf16, #tpu.memory_space<vmem>>, vector<1x4x8xbf16>
    %39 = vector.shape_cast %38 : vector<1x4x8xbf16> to vector<4x8xbf16>
    %cst_32 = arith.constant dense<0.000000e+00> : vector<16x8xf32>
    %40 = tpu.matmul %37, %39, %cst_32 {dimension_numbers = #tpu.dot_dimension_numbers<[1], [0], [0], [1], [0, 0, 1, 1], [], []>} : vector<16x4xbf16>, vector<4x8xbf16>, vector<16x8xf32> -> vector<16x8xf32>
    %41 = arith.addf %36, %40 : vector<16x8xf32>
    %42 = vector.extract_strided_slice %5 {offsets = [1, 0], sizes = [16, 4], strides = [1, 1]} : vector<18x4xbf16> to vector<16x4xbf16>
    %c7 = arith.constant 7 : index
    %c0_33 = arith.constant 0 : index
    %c0_34 = arith.constant 0 : index
    %43 = vector.load %arg5[%c7, %c0_33, %c0_34] : memref<9x4x8xbf16, #tpu.memory_space<vmem>>, vector<1x4x8xbf16>
    %44 = vector.shape_cast %43 : vector<1x4x8xbf16> to vector<4x8xbf16>
    %cst_35 = arith.constant dense<0.000000e+00> : vector<16x8xf32>
    %45 = tpu.matmul %42, %44, %cst_35 {dimension_numbers = #tpu.dot_dimension_numbers<[1], [0], [0], [1], [0, 0, 1, 1], [], []>} : vector<16x4xbf16>, vector<4x8xbf16>, vector<16x8xf32> -> vector<16x8xf32>
    %46 = arith.addf %41, %45 : vector<16x8xf32>
    %47 = vector.extract_strided_slice %5 {offsets = [2, 0], sizes = [16, 4], strides = [1, 1]} : vector<18x4xbf16> to vector<16x4xbf16>
    %c8 = arith.constant 8 : index
    %c0_36 = arith.constant 0 : index
    %c0_37 = arith.constant 0 : index
    %48 = vector.load %arg5[%c8, %c0_36, %c0_37] : memref<9x4x8xbf16, #tpu.memory_space<vmem>>, vector<1x4x8xbf16>
    %49 = vector.shape_cast %48 : vector<1x4x8xbf16> to vector<4x8xbf16>
    %cst_38 = arith.constant dense<0.000000e+00> : vector<16x8xf32>
    %50 = tpu.matmul %47, %49, %cst_38 {dimension_numbers = #tpu.dot_dimension_numbers<[1], [0], [0], [1], [0, 0, 1, 1], [], []>} : vector<16x4xbf16>, vector<4x8xbf16>, vector<16x8xf32> -> vector<16x8xf32>
    %51 = arith.addf %46, %50 : vector<16x8xf32>
    %c0_39 = arith.constant 0 : index
    %c0_40 = arith.constant 0 : index
    %52 = vector.load %arg6[%c0_39, %c0_40] : memref<1x8xf32, #tpu.memory_space<vmem>>, vector<1x8xf32>
    %53 = vector.broadcast %52 : vector<1x8xf32> to vector<16x8xf32>
    %54 = arith.mulf %51, %53 : vector<16x8xf32>
    %c0_41 = arith.constant 0 : index
    %c0_42 = arith.constant 0 : index
    %55 = vector.load %arg7[%c0_41, %c0_42] : memref<1x8xf32, #tpu.memory_space<vmem>>, vector<1x8xf32>
    %56 = vector.broadcast %55 : vector<1x8xf32> to vector<16x8xf32>
    %57 = arith.addf %54, %56 : vector<16x8xf32>
    %cst_43 = arith.constant 0.000000e+00 : f32
    %58 = vector.broadcast %cst_43 : f32 to vector<16x8xf32>
    %59 = arith.maximumf %57, %58 : vector<16x8xf32>
    %60 = arith.truncf %59 : vector<16x8xf32> to vector<16x8xbf16>
    %c0_44 = arith.constant 0 : index
    %c0_45 = arith.constant 0 : index
    %c0_46 = arith.constant 0 : index
    %c0_47 = arith.constant 0 : index
    %61 = vector.load %arg8[%c0_44, %c0_45, %c0_46, %c0_47] : memref<1x1x16x8xbf16, #tpu.memory_space<vmem>>, vector<1x1x16x8xbf16>
    %62 = vector.shape_cast %61 : vector<1x1x16x8xbf16> to vector<16x8xbf16>
    %63 = vector.shape_cast %60 : vector<16x8xbf16> to vector<1x1x16x8xbf16>
    tpu.vector_store %arg8[%c0_44, %c0_45, %c0_46, %c0_47], %63 {strides = array<i32>} : memref<1x1x16x8xbf16, #tpu.memory_space<vmem>>, vector<1x1x16x8xbf16>,
    return
  }
  func.func @transform_0(%arg0: i32, %arg1: i32) -> (i32, i32, i32, i32) {
    %c0_i32 = arith.constant 0 : i32
    %0 = arith.addi %arg1, %c0_i32 : i32
    %c0_i32_0 = arith.constant 0 : i32
    %c0_i32_1 = arith.constant 0 : i32
    %c0_i32_2 = arith.constant 0 : i32
    return %arg0, %0, %c0_i32_0, %c0_i32_1 : i32, i32, i32, i32
  }
  func.func @transform_1(%arg0: i32, %arg1: i32) -> (i32, i32, i32, i32) {
    %c1_i32 = arith.constant 1 : i32
    %0 = arith.addi %arg1, %c1_i32 : i32
    %c0_i32 = arith.constant 0 : i32
    %c0_i32_0 = arith.constant 0 : i32
    %c0_i32_1 = arith.constant 0 : i32
    return %arg0, %0, %c0_i32, %c0_i32_0 : i32, i32, i32, i32
  }
  func.func @transform_2(%arg0: i32, %arg1: i32) -> (i32, i32, i32, i32) {
    %c2_i32 = arith.constant 2 : i32
    %0 = arith.addi %arg1, %c2_i32 : i32
    %c0_i32 = arith.constant 0 : i32
    %c0_i32_0 = arith.constant 0 : i32
    %c0_i32_1 = arith.constant 0 : i32
    return %arg0, %0, %c0_i32, %c0_i32_0 : i32, i32, i32, i32
  }
  func.func @transform_3(%arg0: i32, %arg1: i32) -> (i32, i32, i32) {
    %c0_i32 = arith.constant 0 : i32
    %c0_i32_0 = arith.constant 0 : i32
    %c0_i32_1 = arith.constant 0 : i32
    %c0_i32_2 = arith.constant 0 : i32
    return %c0_i32, %c0_i32_0, %c0_i32_1 : i32, i32, i32
  }
  func.func @transform_4(%arg0: i32, %arg1: i32) -> (i32, i32) {
    %c0_i32 = arith.constant 0 : i32
    %c0_i32_0 = arith.constant 0 : i32
    %c0_i32_1 = arith.constant 0 : i32
    return %c0_i32, %c0_i32_0 : i32, i32
  }
  func.func @transform_5(%arg0: i32, %arg1: i32) -> (i32, i32) {
    %c0_i32 = arith.constant 0 : i32
    %c0_i32_0 = arith.constant 0 : i32
    %c0_i32_1 = arith.constant 0 : i32
    return %c0_i32, %c0_i32_0 : i32, i32
  }
  func.func @transform_6(%arg0: i32, %arg1: i32) -> (i32, i32, i32, i32) {
    %c0_i32 = arith.constant 0 : i32
    %c0_i32_0 = arith.constant 0 : i32
    %c0_i32_1 = arith.constant 0 : i32
    return %arg0, %arg1, %c0_i32, %c0_i32_0 : i32, i32, i32, i32
  }
}

module attributes {stable_mosaic.version = 11 : i64} {
  func.func @_feat_affinity_kernel(%arg0: i32, %arg1: i32, %arg2: memref<1x256x8xbf16, #tpu.memory_space<vmem>>, %arg3: memref<8x262xbf16, #tpu.memory_space<vmem>>, %arg4: memref<1x262xf32, #tpu.memory_space<vmem>>, %arg5: memref<1x262xf32, #tpu.memory_space<vmem>>, %arg6: memref<1x256x6xf32, #tpu.memory_space<vmem>>, %arg7: memref<1x6x256xf32, #tpu.memory_space<vmem>>, %arg8: memref<6x256xf32, #tpu.memory_space<vmem>>) attributes {dimension_semantics = [#tpu.dimension_semantics<parallel>, #tpu.dimension_semantics<arbitrary>], iteration_bounds = array<i64: 2, 1>, scalar_prefetch = 0 : i64, scratch_operands = 1 : i64, tpu.core_type = #tpu.core_type<tc>, window_params = [{transform_indices = @transform_0, window_bounds = array<i64: 1, 256, 8>}, {pipeline_mode = #tpu.pipeline_mode<synchronous>, transform_indices = @transform_1, window_bounds = array<i64: 8, 262>}, {pipeline_mode = #tpu.pipeline_mode<synchronous>, transform_indices = @transform_2, window_bounds = array<i64: 1, 262>}, {pipeline_mode = #tpu.pipeline_mode<synchronous>, transform_indices = @transform_3, window_bounds = array<i64: 1, 262>}, {transform_indices = @transform_4, window_bounds = array<i64: 1, 256, 6>}, {transform_indices = @transform_5, window_bounds = array<i64: 1, 6, 256>}]} {
    %c0_i32 = arith.constant 0 : i32
    %0 = arith.cmpi eq, %arg1, %c0_i32 : i32
    %1 = arith.extui %0 : i1 to i32
    %c0_i32_0 = arith.constant 0 : i32
    %2 = arith.cmpi ne, %1, %c0_i32_0 : i32
    scf.if %2 {
      %cst_22 = arith.constant 0.000000e+00 : f32
      %38 = vector.broadcast %cst_22 : f32 to vector<6x256xf32>
      %c0_23 = arith.constant 0 : index
      %c0_24 = arith.constant 0 : index
      %39 = vector.load %arg8[%c0_23, %c0_24] : memref<6x256xf32, #tpu.memory_space<vmem>>, vector<6x256xf32>
      tpu.vector_store %arg8[%c0_23, %c0_24], %38 {strides = array<i32>} : memref<6x256xf32, #tpu.memory_space<vmem>>, vector<6x256xf32>,
    } else {
    }
    %c0 = arith.constant 0 : index
    %c0_1 = arith.constant 0 : index
    %c0_2 = arith.constant 0 : index
    %3 = vector.load %arg2[%c0, %c0_1, %c0_2] : memref<1x256x8xbf16, #tpu.memory_space<vmem>>, vector<1x256x8xbf16>
    %4 = vector.shape_cast %3 : vector<1x256x8xbf16> to vector<256x8xbf16>
    %c0_3 = arith.constant 0 : index
    %c0_4 = arith.constant 0 : index
    %5 = vector.load %arg3[%c0_3, %c0_4] : memref<8x262xbf16, #tpu.memory_space<vmem>>, vector<8x262xbf16>
    %cst = arith.constant dense<0.000000e+00> : vector<256x262xf32>
    %6 = tpu.matmul %4, %5, %cst {dimension_numbers = #tpu.dot_dimension_numbers<[1], [0], [0], [1], [0, 0, 1, 1], [], []>} : vector<256x8xbf16>, vector<8x262xbf16>, vector<256x262xf32> -> vector<256x262xf32>
    %c0_5 = arith.constant 0 : index
    %c0_6 = arith.constant 0 : index
    %7 = vector.load %arg4[%c0_5, %c0_6] : memref<1x262xf32, #tpu.memory_space<vmem>>, vector<1x262xf32>
    %8 = vector.broadcast %7 : vector<1x262xf32> to vector<256x262xf32>
    %9 = arith.mulf %6, %8 : vector<256x262xf32>
    %c0_7 = arith.constant 0 : index
    %c0_8 = arith.constant 0 : index
    %10 = vector.load %arg5[%c0_7, %c0_8] : memref<1x262xf32, #tpu.memory_space<vmem>>, vector<1x262xf32>
    %11 = vector.broadcast %10 : vector<1x262xf32> to vector<256x262xf32>
    %12 = arith.addf %9, %11 : vector<256x262xf32>
    %cst_9 = arith.constant 0.000000e+00 : f32
    %13 = vector.broadcast %cst_9 : f32 to vector<256x262xf32>
    %14 = arith.maximumf %12, %13 : vector<256x262xf32>
    %15 = vector.extract_strided_slice %14 {offsets = [0, 0], sizes = [256, 256], strides = [1, 1]} : vector<256x262xf32> to vector<256x256xf32>
    %16 = vector.extract_strided_slice %14 {offsets = [0, 256], sizes = [256, 6], strides = [1, 1]} : vector<256x262xf32> to vector<256x6xf32>
    %cst_10 = arith.constant dense<0xFF800000> : vector<256xf32>
    %17 = vector.multi_reduction <maximumf>, %16, %cst_10 [1] : vector<256x6xf32> to vector<256xf32>
    %18 = vector.shape_cast %17 : vector<256xf32> to vector<256x1xf32>
    %19 = vector.broadcast %18 : vector<256x1xf32> to vector<256x6xf32>
    %20 = arith.subf %16, %19 : vector<256x6xf32>
    %21 = math.exp %20 : vector<256x6xf32>
    %cst_11 = arith.constant dense<0.000000e+00> : vector<256xf32>
    %22 = vector.multi_reduction <add>, %21, %cst_11 [1] : vector<256x6xf32> to vector<256xf32>
    %23 = vector.shape_cast %22 : vector<256xf32> to vector<256x1xf32>
    %24 = vector.broadcast %23 : vector<256x1xf32> to vector<256x6xf32>
    %25 = arith.divf %21, %24 : vector<256x6xf32>
    %c0_12 = arith.constant 0 : index
    %c0_13 = arith.constant 0 : index
    %c0_14 = arith.constant 0 : index
    %26 = vector.load %arg6[%c0_12, %c0_13, %c0_14] : memref<1x256x6xf32, #tpu.memory_space<vmem>>, vector<1x256x6xf32>
    %27 = vector.shape_cast %26 : vector<1x256x6xf32> to vector<256x6xf32>
    %28 = vector.shape_cast %25 : vector<256x6xf32> to vector<1x256x6xf32>
    tpu.vector_store %arg6[%c0_12, %c0_13, %c0_14], %28 {strides = array<i32>} : memref<1x256x6xf32, #tpu.memory_space<vmem>>, vector<1x256x6xf32>,
    %c0_15 = arith.constant 0 : index
    %c0_16 = arith.constant 0 : index
    %29 = vector.load %arg8[%c0_15, %c0_16] : memref<6x256xf32, #tpu.memory_space<vmem>>, vector<6x256xf32>
    %30 = arith.truncf %25 : vector<256x6xf32> to vector<256x6xbf16>
    %31 = arith.truncf %15 : vector<256x256xf32> to vector<256x256xbf16>
    %cst_17 = arith.constant dense<0.000000e+00> : vector<6x256xf32>
    %32 = tpu.matmul %30, %31, %cst_17 {dimension_numbers = #tpu.dot_dimension_numbers<[0], [0], [1], [1], [0, 1, 1, 1], [], []>} : vector<256x6xbf16>, vector<256x256xbf16>, vector<6x256xf32> -> vector<6x256xf32>
    %33 = arith.addf %29, %32 : vector<6x256xf32>
    %c0_18 = arith.constant 0 : index
    %c0_19 = arith.constant 0 : index
    %34 = vector.load %arg8[%c0_18, %c0_19] : memref<6x256xf32, #tpu.memory_space<vmem>>, vector<6x256xf32>
    tpu.vector_store %arg8[%c0_18, %c0_19], %33 {strides = array<i32>} : memref<6x256xf32, #tpu.memory_space<vmem>>, vector<6x256xf32>,
    %c0_i32_20 = arith.constant 0 : i32
    %35 = arith.cmpi eq, %arg1, %c0_i32_20 : i32
    %36 = arith.extui %35 : i1 to i32
    %c0_i32_21 = arith.constant 0 : i32
    %37 = arith.cmpi ne, %36, %c0_i32_21 : i32
    scf.if %37 {
      %c0_22 = arith.constant 0 : index
      %c0_23 = arith.constant 0 : index
      %38 = vector.load %arg8[%c0_22, %c0_23] : memref<6x256xf32, #tpu.memory_space<vmem>>, vector<6x256xf32>
      %cst_24 = arith.constant dense<0xFF800000> : vector<256xf32>
      %39 = vector.multi_reduction <maximumf>, %38, %cst_24 [0] : vector<6x256xf32> to vector<256xf32>
      %40 = vector.shape_cast %39 : vector<256xf32> to vector<1x256xf32>
      %41 = vector.broadcast %40 : vector<1x256xf32> to vector<6x256xf32>
      %42 = arith.subf %38, %41 : vector<6x256xf32>
      %43 = math.exp %42 : vector<6x256xf32>
      %cst_25 = arith.constant dense<0.000000e+00> : vector<256xf32>
      %44 = vector.multi_reduction <add>, %43, %cst_25 [0] : vector<6x256xf32> to vector<256xf32>
      %45 = vector.shape_cast %44 : vector<256xf32> to vector<1x256xf32>
      %46 = vector.broadcast %45 : vector<1x256xf32> to vector<6x256xf32>
      %47 = arith.divf %43, %46 : vector<6x256xf32>
      %c0_26 = arith.constant 0 : index
      %c0_27 = arith.constant 0 : index
      %c0_28 = arith.constant 0 : index
      %48 = vector.load %arg7[%c0_26, %c0_27, %c0_28] : memref<1x6x256xf32, #tpu.memory_space<vmem>>, vector<1x6x256xf32>
      %49 = vector.shape_cast %48 : vector<1x6x256xf32> to vector<6x256xf32>
      %50 = vector.shape_cast %47 : vector<6x256xf32> to vector<1x6x256xf32>
      tpu.vector_store %arg7[%c0_26, %c0_27, %c0_28], %50 {strides = array<i32>} : memref<1x6x256xf32, #tpu.memory_space<vmem>>, vector<1x6x256xf32>,
    } else {
    }
    return
  }
  func.func @transform_0(%arg0: i32, %arg1: i32) -> (i32, i32, i32) {
    %c0_i32 = arith.constant 0 : i32
    %c0_i32_0 = arith.constant 0 : i32
    return %arg0, %arg1, %c0_i32 : i32, i32, i32
  }
  func.func @transform_1(%arg0: i32, %arg1: i32) -> (i32, i32) {
    %c0_i32 = arith.constant 0 : i32
    %c0_i32_0 = arith.constant 0 : i32
    %c0_i32_1 = arith.constant 0 : i32
    return %c0_i32, %c0_i32_0 : i32, i32
  }
  func.func @transform_2(%arg0: i32, %arg1: i32) -> (i32, i32) {
    %c0_i32 = arith.constant 0 : i32
    %c0_i32_0 = arith.constant 0 : i32
    %c0_i32_1 = arith.constant 0 : i32
    return %c0_i32, %c0_i32_0 : i32, i32
  }
  func.func @transform_3(%arg0: i32, %arg1: i32) -> (i32, i32) {
    %c0_i32 = arith.constant 0 : i32
    %c0_i32_0 = arith.constant 0 : i32
    %c0_i32_1 = arith.constant 0 : i32
    return %c0_i32, %c0_i32_0 : i32, i32
  }
  func.func @transform_4(%arg0: i32, %arg1: i32) -> (i32, i32, i32) {
    %c0_i32 = arith.constant 0 : i32
    %c0_i32_0 = arith.constant 0 : i32
    return %arg0, %arg1, %c0_i32 : i32, i32, i32
  }
  func.func @transform_5(%arg0: i32, %arg1: i32) -> (i32, i32, i32) {
    %c0_i32 = arith.constant 0 : i32
    %c0_i32_0 = arith.constant 0 : i32
    %c0_i32_1 = arith.constant 0 : i32
    return %arg0, %c0_i32, %c0_i32_0 : i32, i32, i32
  }
}

module attributes {stable_mosaic.version = 11 : i64} {
  func.func @_tail_kernel(%arg0: i32, %arg1: i32, %arg2: memref<1x256x6xf32, #tpu.memory_space<vmem>>, %arg3: memref<1x6x256xbf16, #tpu.memory_space<vmem>>, %arg4: memref<1x256x8xbf16, #tpu.memory_space<vmem>>, %arg5: memref<256x8xbf16, #tpu.memory_space<vmem>>, %arg6: memref<1x8xf32, #tpu.memory_space<vmem>>, %arg7: memref<1x8xf32, #tpu.memory_space<vmem>>, %arg8: memref<8x8xbf16, #tpu.memory_space<vmem>>, %arg9: memref<8x8xbf16, #tpu.memory_space<vmem>>, %arg10: memref<1x8xf32, #tpu.memory_space<vmem>>, %arg11: memref<1x8xf32, #tpu.memory_space<vmem>>, %arg12: memref<1x256x8xf32, #tpu.memory_space<vmem>>) attributes {dimension_semantics = [#tpu.dimension_semantics<parallel>, #tpu.dimension_semantics<parallel>], iteration_bounds = array<i64: 2, 1>, scalar_prefetch = 0 : i64, scratch_operands = 0 : i64, tpu.core_type = #tpu.core_type<tc>, window_params = [{transform_indices = @transform_0, window_bounds = array<i64: 1, 256, 6>}, {transform_indices = @transform_1, window_bounds = array<i64: 1, 6, 256>}, {transform_indices = @transform_2, window_bounds = array<i64: 1, 256, 8>}, {pipeline_mode = #tpu.pipeline_mode<synchronous>, transform_indices = @transform_3, window_bounds = array<i64: 256, 8>}, {pipeline_mode = #tpu.pipeline_mode<synchronous>, transform_indices = @transform_4, window_bounds = array<i64: 1, 8>}, {pipeline_mode = #tpu.pipeline_mode<synchronous>, transform_indices = @transform_5, window_bounds = array<i64: 1, 8>}, {pipeline_mode = #tpu.pipeline_mode<synchronous>, transform_indices = @transform_6, window_bounds = array<i64: 8, 8>}, {pipeline_mode = #tpu.pipeline_mode<synchronous>, transform_indices = @transform_7, window_bounds = array<i64: 8, 8>}, {pipeline_mode = #tpu.pipeline_mode<synchronous>, transform_indices = @transform_8, window_bounds = array<i64: 1, 8>}, {pipeline_mode = #tpu.pipeline_mode<synchronous>, transform_indices = @transform_9, window_bounds = array<i64: 1, 8>}, {transform_indices = @transform_10, window_bounds = array<i64: 1, 256, 8>}]} {
    %c0 = arith.constant 0 : index
    %c0_0 = arith.constant 0 : index
    %c0_1 = arith.constant 0 : index
    %0 = vector.load %arg2[%c0, %c0_0, %c0_1] : memref<1x256x6xf32, #tpu.memory_space<vmem>>, vector<1x256x6xf32>
    %1 = vector.shape_cast %0 : vector<1x256x6xf32> to vector<256x6xf32>
    %2 = arith.truncf %1 : vector<256x6xf32> to vector<256x6xbf16>
    %c0_2 = arith.constant 0 : index
    %c0_3 = arith.constant 0 : index
    %c0_4 = arith.constant 0 : index
    %3 = vector.load %arg3[%c0_2, %c0_3, %c0_4] : memref<1x6x256xbf16, #tpu.memory_space<vmem>>, vector<1x6x256xbf16>
    %4 = vector.shape_cast %3 : vector<1x6x256xbf16> to vector<6x256xbf16>
    %cst = arith.constant dense<0.000000e+00> : vector<256x256xf32>
    %5 = tpu.matmul %2, %4, %cst {dimension_numbers = #tpu.dot_dimension_numbers<[1], [0], [0], [1], [0, 0, 1, 1], [], []>} : vector<256x6xbf16>, vector<6x256xbf16>, vector<256x256xf32> -> vector<256x256xf32>
    %6 = arith.truncf %5 : vector<256x256xf32> to vector<256x256xbf16>
    %c0_5 = arith.constant 0 : index
    %c0_6 = arith.constant 0 : index
    %7 = vector.load %arg5[%c0_5, %c0_6] : memref<256x8xbf16, #tpu.memory_space<vmem>>, vector<256x8xbf16>
    %cst_7 = arith.constant dense<0.000000e+00> : vector<256x8xf32>
    %8 = tpu.matmul %6, %7, %cst_7 {dimension_numbers = #tpu.dot_dimension_numbers<[1], [0], [0], [1], [0, 0, 1, 1], [], []>} : vector<256x256xbf16>, vector<256x8xbf16>, vector<256x8xf32> -> vector<256x8xf32>
    %c0_8 = arith.constant 0 : index
    %c0_9 = arith.constant 0 : index
    %9 = vector.load %arg6[%c0_8, %c0_9] : memref<1x8xf32, #tpu.memory_space<vmem>>, vector<1x8xf32>
    %10 = vector.broadcast %9 : vector<1x8xf32> to vector<256x8xf32>
    %11 = arith.mulf %8, %10 : vector<256x8xf32>
    %c0_10 = arith.constant 0 : index
    %c0_11 = arith.constant 0 : index
    %12 = vector.load %arg7[%c0_10, %c0_11] : memref<1x8xf32, #tpu.memory_space<vmem>>, vector<1x8xf32>
    %13 = vector.broadcast %12 : vector<1x8xf32> to vector<256x8xf32>
    %14 = arith.addf %11, %13 : vector<256x8xf32>
    %cst_12 = arith.constant 0.000000e+00 : f32
    %15 = vector.broadcast %cst_12 : f32 to vector<256x8xf32>
    %16 = arith.maximumf %14, %15 : vector<256x8xf32>
    %17 = arith.truncf %16 : vector<256x8xf32> to vector<256x8xbf16>
    %c0_13 = arith.constant 0 : index
    %c0_14 = arith.constant 0 : index
    %18 = vector.load %arg8[%c0_13, %c0_14] : memref<8x8xbf16, #tpu.memory_space<vmem>>, vector<8x8xbf16>
    %cst_15 = arith.constant dense<0.000000e+00> : vector<256x8xf32>
    %19 = tpu.matmul %17, %18, %cst_15 {dimension_numbers = #tpu.dot_dimension_numbers<[1], [0], [0], [1], [0, 0, 1, 1], [], []>} : vector<256x8xbf16>, vector<8x8xbf16>, vector<256x8xf32> -> vector<256x8xf32>
    %c0_16 = arith.constant 0 : index
    %c0_17 = arith.constant 0 : index
    %c0_18 = arith.constant 0 : index
    %20 = vector.load %arg4[%c0_16, %c0_17, %c0_18] : memref<1x256x8xbf16, #tpu.memory_space<vmem>>, vector<1x256x8xbf16>
    %21 = vector.shape_cast %20 : vector<1x256x8xbf16> to vector<256x8xbf16>
    %c0_19 = arith.constant 0 : index
    %c0_20 = arith.constant 0 : index
    %22 = vector.load %arg9[%c0_19, %c0_20] : memref<8x8xbf16, #tpu.memory_space<vmem>>, vector<8x8xbf16>
    %cst_21 = arith.constant dense<0.000000e+00> : vector<256x8xf32>
    %23 = tpu.matmul %21, %22, %cst_21 {dimension_numbers = #tpu.dot_dimension_numbers<[1], [0], [0], [1], [0, 0, 1, 1], [], []>} : vector<256x8xbf16>, vector<8x8xbf16>, vector<256x8xf32> -> vector<256x8xf32>
    %24 = arith.addf %19, %23 : vector<256x8xf32>
    %c0_22 = arith.constant 0 : index
    %c0_23 = arith.constant 0 : index
    %25 = vector.load %arg10[%c0_22, %c0_23] : memref<1x8xf32, #tpu.memory_space<vmem>>, vector<1x8xf32>
    %26 = vector.broadcast %25 : vector<1x8xf32> to vector<256x8xf32>
    %27 = arith.mulf %24, %26 : vector<256x8xf32>
    %c0_24 = arith.constant 0 : index
    %c0_25 = arith.constant 0 : index
    %28 = vector.load %arg11[%c0_24, %c0_25] : memref<1x8xf32, #tpu.memory_space<vmem>>, vector<1x8xf32>
    %29 = vector.broadcast %28 : vector<1x8xf32> to vector<256x8xf32>
    %30 = arith.addf %27, %29 : vector<256x8xf32>
    %cst_26 = arith.constant 0.000000e+00 : f32
    %31 = vector.broadcast %cst_26 : f32 to vector<256x8xf32>
    %32 = arith.maximumf %30, %31 : vector<256x8xf32>
    %c0_27 = arith.constant 0 : index
    %c0_28 = arith.constant 0 : index
    %c0_29 = arith.constant 0 : index
    %33 = vector.load %arg12[%c0_27, %c0_28, %c0_29] : memref<1x256x8xf32, #tpu.memory_space<vmem>>, vector<1x256x8xf32>
    %34 = vector.shape_cast %33 : vector<1x256x8xf32> to vector<256x8xf32>
    %35 = vector.shape_cast %32 : vector<256x8xf32> to vector<1x256x8xf32>
    tpu.vector_store %arg12[%c0_27, %c0_28, %c0_29], %35 {strides = array<i32>} : memref<1x256x8xf32, #tpu.memory_space<vmem>>, vector<1x256x8xf32>,
    return
  }
  func.func @transform_0(%arg0: i32, %arg1: i32) -> (i32, i32, i32) {
    %c0_i32 = arith.constant 0 : i32
    %c0_i32_0 = arith.constant 0 : i32
    return %arg0, %arg1, %c0_i32 : i32, i32, i32
  }
  func.func @transform_1(%arg0: i32, %arg1: i32) -> (i32, i32, i32) {
    %c0_i32 = arith.constant 0 : i32
    %c0_i32_0 = arith.constant 0 : i32
    %c0_i32_1 = arith.constant 0 : i32
    return %arg0, %c0_i32, %c0_i32_0 : i32, i32, i32
  }
  func.func @transform_2(%arg0: i32, %arg1: i32) -> (i32, i32, i32) {
    %c0_i32 = arith.constant 0 : i32
    %c0_i32_0 = arith.constant 0 : i32
    return %arg0, %arg1, %c0_i32 : i32, i32, i32
  }
  func.func @transform_3(%arg0: i32, %arg1: i32) -> (i32, i32) {
    %c0_i32 = arith.constant 0 : i32
    %c0_i32_0 = arith.constant 0 : i32
    %c0_i32_1 = arith.constant 0 : i32
    return %c0_i32, %c0_i32_0 : i32, i32
  }
  func.func @transform_4(%arg0: i32, %arg1: i32) -> (i32, i32) {
    %c0_i32 = arith.constant 0 : i32
    %c0_i32_0 = arith.constant 0 : i32
    %c0_i32_1 = arith.constant 0 : i32
    return %c0_i32, %c0_i32_0 : i32, i32
  }
  func.func @transform_5(%arg0: i32, %arg1: i32) -> (i32, i32) {
    %c0_i32 = arith.constant 0 : i32
    %c0_i32_0 = arith.constant 0 : i32
    %c0_i32_1 = arith.constant 0 : i32
    return %c0_i32, %c0_i32_0 : i32, i32
  }
  func.func @transform_6(%arg0: i32, %arg1: i32) -> (i32, i32) {
    %c0_i32 = arith.constant 0 : i32
    %c0_i32_0 = arith.constant 0 : i32
    %c0_i32_1 = arith.constant 0 : i32
    return %c0_i32, %c0_i32_0 : i32, i32
  }
  func.func @transform_7(%arg0: i32, %arg1: i32) -> (i32, i32) {
    %c0_i32 = arith.constant 0 : i32
    %c0_i32_0 = arith.constant 0 : i32
    %c0_i32_1 = arith.constant 0 : i32
    return %c0_i32, %c0_i32_0 : i32, i32
  }
  func.func @transform_8(%arg0: i32, %arg1: i32) -> (i32, i32) {
    %c0_i32 = arith.constant 0 : i32
    %c0_i32_0 = arith.constant 0 : i32
    %c0_i32_1 = arith.constant 0 : i32
    return %c0_i32, %c0_i32_0 : i32, i32
  }
  func.func @transform_9(%arg0: i32, %arg1: i32) -> (i32, i32) {
    %c0_i32 = arith.constant 0 : i32
    %c0_i32_0 = arith.constant 0 : i32
    %c0_i32_1 = arith.constant 0 : i32
    return %c0_i32, %c0_i32_0 : i32, i32
  }
  func.func @transform_10(%arg0: i32, %arg1: i32) -> (i32, i32, i32) {
    %c0_i32 = arith.constant 0 : i32
    %c0_i32_0 = arith.constant 0 : i32
    return %arg0, %arg1, %c0_i32 : i32, i32, i32
  }
}

</mosaic_0001>

<bundles_post_ra>
// kernel: caa_forward.3
= control target key start
LH: loop header
LB: loop body
LE: loop exit
PB: predicated region body
PF: predicated region fallthrough
CT: control target
= control target key end

     0   :  { %s1315_s21 = smov 0   ;;  %s1317_s22 = smov 0   ;;  %s1477_s0 = inlined_call_operand.vmem [shape: bf16[2,18,18,4], index: 0, kind: input, shape index: {}, may-alias: {0,1,2}]   ;;  %s1478_s1 = inlined_call_operand.vmem [shape: bf16[2,18,18,4], index: 1, kind: input, shape index: {}, may-alias: {0,1,2}]   ;;  %s1479_s2 = inlined_call_operand.vmem [shape: bf16[2,18,18,4], index: 2, kind: input, shape index: {}, may-alias: {0,1,2}]   ;;  %s1480_s3 = inlined_call_operand.vmem [shape: bf16[9,4,8], index: 3, kind: input, shape index: {}]   ;;  %s1481_s4 = inlined_call_operand.vmem [shape: f32[1,8], index: 4, kind: input, shape index: {}]   ;;  %s1482_s5 = inlined_call_operand.vmem [shape: f32[1,8], index: 5, kind: input, shape index: {}]   ;;  %s1483_s6 = inlined_call_operand.vmem [shape: bf16[2,16,16,8], index: 6, kind: output, shape index: {}]  }
   0x1   :  { %s1319_s23 = smov 0   ;;  %s1321_s24 = smov 0  }
   0x2   :  { %s1323_s25 = smov 0  }
   0x3 LB: > { %s25_s26 = sadd.s32 1, %s1268_s23  ;;  %s28_s27 = sadd.s32 1, %s1272_s24  ;;  %s1276_s25 = sphi %s1323_s25, %s16_s25   ;;  %s1272_s24 = sphi %s1321_s24, %s1487_s24   ;;  %s1268_s23 = sphi %s1319_s23, %s1486_s23   ;;  %s1264_s22 = sphi %s1317_s22, %s1485_s22   ;;  %s1260_s21 = sphi %s1315_s21, %s1484_s21  }
   0x4   : > { %p26_p0 = scmp.ge.s32.totalorder %s25_s26, 16  ;;  %p1076_p1 = scmp.ge.s32.totalorder %s1276_s25, 1 }
   0x5   : > { %p272_p2 = scmp.lt.s32.totalorder %s1276_s25, 33 }
   0x6   : > { %s1489_s26 = smov (%p26_p0, %s25_s26), 0  ;;  %s1491_s27 = smov (!%p26_p0, %s28_s27), %s1272_s24 }
   0x7   : > { %p273_p3 = pnand %p1076_p1, %p272_p2  ;;  %p30_p4 = scmp.ge.s32.totalorder %s1491_s27, 2 }
   0x8   : > { %p330_p5 = scmp.lt.s32.totalorder (!%p273_p3), %s1264_s22, 1  ;;  %p332_p6 = scmp.lt.s32.totalorder (!%p273_p3), %s1260_s21, 17 }
   0x9   : > { %s1493_s27 = smov (%p30_p4, %s1491_s27), 0  ;;  %276 = sbr.rel (%p273_p3) target bundleno = 271 (0x10f), region = 44 }
   0xa   : > { %s339_s10 = sadd.s32 (!%p273_p3), 1, %s1260_s21  ;;  %s350_s12 = sadd.s32 (!%p273_p3), 2, %s1260_s21 }
   0xb   : > { %p342_p7 = scmp.lt.s32.totalorder (!%p273_p3), %s339_s10, 17  ;;  %p353_p8 = scmp.lt.s32.totalorder (!%p273_p3), %s350_s12, 17 }
   0xc   : > { %p363_p9 = scmp.lt.s32.totalorder (!%p273_p3), %s1260_s21, 15 }
   0xe   : > { %v1083_v0 = vld [vmem:[%s1480_s3 + $0x2] sm:$0x3]  ;;  %vm408_vm0 = vcmask 1041408   ;;  %v380_v1 = vld [vmem:[%s1480_s3] sm:$0x3]  ;;  %v1278_v2 = vmov 0.0  }
   0xf   : > { %1132 = vmatprep.subr.bf16.mxu0 %v1278_v2  ;;  %v410_v3 = vsel %vm408_vm0, %v1083_v0, 0  ;;  %1138 = vmatprep.subr.bf16.mxu1 %v1278_v2  ;;  %v456_v4 = vsel %vm408_vm0, %v380_v1, 0  ;;  %vm1279_vm1 = vmmov 0   ;;  %s1495_s22 = smov (!%p330_p5, %s1264_s22), 1  ;;  %v1090_v5 = vld [vmem:[%s1480_s3 + $0x6] sm:$0x3] }
  0x10   : > { %1133 = vmatpush3.bf16.msra.mxu0 %v410_v3  ;;  %1139 = vmatpush3.bf16.msra.mxu1 %v456_v4  ;;  %s333_s8 = scalar_select %p332_p6, %s1260_s21, 17  ;;  %vm404_vm2 = vcmask 31744   ;;  %v565_v8 = vsel %vm408_vm0, %v1090_v5, 0  ;;  %v1088_v14 = vld [vmem:[%s1480_s3 + $0x4] sm:$0x3]  ;;  %vm501_vm4 = vcmask 1046528  }
  0x11   : > { %1134 = vmatprep.mubr.msk.bf16.mxu0 %vm1279_vm1, %v1278_v2  ;;  %1140 = vmatprep.mubr.msk.bf16.mxu1 %vm1279_vm1, %v1278_v2  ;;  %s1372_s9 = smul.u32 54, %s1495_s22  ;;  %s1497_s10 = smov (!%p342_p7, %s339_s10), 17  ;;  %vm391_vm3 = vsmask.f32 7424  ;;  %v1096_v15 = vld [vmem:[%s1480_s3 + $0xa] sm:$0x3] }
  0x12   : > { %1144 = vmatprep.subr.bf16.mxu0 %v1278_v2  ;;  %1150 = vmatprep.subr.bf16.mxu1 %v1278_v2  ;;  %s1186_s11 = smul.u32 3, %s333_s8  ;;  %s1499_s12 = smov (!%p353_p8, %s350_s12), 17  ;;  %v509_v17 = vsel %vm408_vm0, %v1088_v14, 0  ;;  %v684_v20 = vsel %vm408_vm0, %v1096_v15, 0  ;;  %v1093_v26 = vld [vmem:[%s1480_s3 + $0x8] sm:$0x3] }
  0x13   : > { %s1188_s20 = smul.u32 3, %s1497_s10  ;;  %v1101_v35 = vld [vmem:[%s1480_s3 + $0xe] sm:$0x3]  ;;  %v630_v36 = vsel %vm408_vm0, %v1093_v26, 0  ;;  %v1098_v44 = vld [vmem:[%s1480_s3 + $0xc] sm:$0x3] }
  0x14   : > { %s336_s13 = sadd.s32 %s1372_s9, %s1186_s11  ;;  %s1189_s28 = smul.u32 3, %s1499_s12  ;;  %v805_v41 = vsel %vm408_vm0, %v1101_v35, 0  ;;  %v740_v48 = vsel %vm408_vm0, %v1098_v44, 0  ;;  %v1104_v50 = vld [vmem:[%s1480_s3 + $0x10] sm:$0x3]  ;;  %vm932_vm5 = vcmask 60416  }
  0x15   : > { %s1077_s14 = sshll.u32 %s336_s13, 2  ;;  %s346_s7 = sadd.s32 %s1188_s20, %s1372_s9  ;;  %v859_v51 = vsel %vm408_vm0, %v1104_v50, 0 }
  0x16   : > { %s338_s19 = scalar_lea.vmem %s1477_s0, %s1077_s14  ;;  %s1078_s8 = sshll.u32 %s346_s7, 2 }
  0x17   : > { %v1232_v6 = vld [vmem:[%s338_s19] sm:$0xff]   ;;  %v1233_v7 = vld [vmem:[%s338_s19 + $0x8] ss:$0 sps:$4 sm:$0x11]   ;;  %s357_s10 = sadd.s32 %s1189_s28, %s1372_s9  ;;  %s348_s12 = scalar_lea.vmem %s1478_s1, %s1078_s8 }
  0x18   : > { %v393_v9 = vshrl.u32 %v1232_v6, 16  ;;  %v395_v10 = vshll.u32 %v1232_v6, 16  ;;  %v400_v11 = vshll.u32 %v1233_v7, 16  ;;  %1141 = vmatmul.mubr.msk.bf16.vlgmr.msra.gmra.mxu1 %vm404_vm2, %v1232_v6  ;;  %s1079_s16 = sshll.u32 %s357_s10, 2  ;;  %v1234_v18 = vld [vmem:[%s348_s12] sm:$0xff]   ;;  %v502_v22 = vrot.slane %v1232_v6, 1 }
  0x19   : > { %1151 = vmatpush3.bf16.msra.mxu1 %v565_v8  ;;  %1152 = vmatprep.mubr.msk.bf16.mxu1 %vm1279_vm1, %v1278_v2  ;;  %s359_s19 = scalar_lea.vmem %s1479_s2, %s1079_s16  ;;  %v1235_v23 = vld [vmem:[%s348_s12 + $0x8] ss:$0 sps:$4 sm:$0x11]   ;;  %v503_v24 = vrot.slane %v1233_v7, 1  ;;  %v617_v25 = vshll.u32 %v1234_v18, 16  ;;  %v677_v27 = vrot.slane %v1234_v18, 1 }
  0x1a   : > { %v397_v12 = vrot.slane %v395_v10, 1  ;;  %v402_v13 = vrot.slane %v400_v11, 1  ;;  %1162 = vmatprep.subr.bf16.mxu1 %v1278_v2  ;;  %v1236_v21 = vld [vmem:[%s359_s19] sm:$0xff]   ;;  %v678_v28 = vrot.slane %v1235_v23, 1  ;;  %v615_v32 = vshrl.u32 %v1234_v18, 16  ;;  %s1501_s21 = smov (!%p363_p9, %s1260_s21), 15 }
  0x1b   : > { %v1237_v29 = vld [vmem:[%s359_s19 + $0x8] ss:$0 sps:$4 sm:$0x11]   ;;  %v792_v30 = vshll.u32 %v1236_v21, 16  ;;  %v504_v31 = vsel %vm501_vm4, %v502_v22, %v503_v24  ;;  %v619_v33 = vrot.slane %v617_v25, 1  ;;  %v622_v34 = vshll.u32 %v1235_v23, 16 }
  0x1c   : > { %v398_v16 = vor.u32 %v397_v12, %v393_v9  ;;  %v679_v37 = vsel %vm501_vm4, %v677_v27, %v678_v28  ;;  %v790_v38 = vshrl.u32 %v1236_v21, 16  ;;  %v797_v40 = vshll.u32 %v1237_v29, 16  ;;  %s1080_s13 = sshll.u32 %s1501_s21, 1  ;;  %s1081_s10 = sshll.u32 %s1495_s22, 5 }
  0x1d   : > { %v794_v39 = vrot.slane %v792_v30, 1  ;;  %v620_v42 = vor.u32 %v619_v33, %v615_v32  ;;  %v624_v43 = vrot.slane %v622_v34, 1  ;;  %v852_v52 = vrot.slane %v1236_v21, 1  ;;  %s367_s12 = sadd.s32 %s1081_s10, %s1080_s13 }
  0x1e   : > { %v403_v19 = vsel %vm391_vm3, %v398_v16, %v402_v13  ;;  %v799_v46 = vrot.slane %v797_v40, 1  ;;  %v853_v53 = vrot.slane %v1237_v29, 1  ;;  %s1082_s18 = sshll.u32 %s367_s12, 2 }
  0x1f   : > { %1135 = vmatmul.mubr.msk.bf16.vlgmr.msra.gmra.mxu0 %vm404_vm2, %v403_v19  ;;  %v795_v45 = vor.u32 %v794_v39, %v790_v38  ;;  %v625_v47 = vsel %vm391_vm3, %v620_v42, %v624_v43  ;;  %v1107_v39 = vld [vmem:[%s1482_s5] ss:$0 sm:$0xff]  ;;  %s369_s19 = scalar_lea.vmem %s1483_s6, %s1082_s18 }
  0x20   : > { %1145 = vmatpush3.bf16.msra.mxu0 %v509_v17  ;;  %1146 = vmatprep.mubr.msk.bf16.mxu0 %vm1279_vm1, %v1278_v2  ;;  %v854_v54 = vsel %vm501_vm4, %v852_v52, %v853_v53 }
  0x21   : > { %1156 = vmatprep.subr.bf16.mxu0 %v1278_v2  ;;  %1153 = vmatmul.mubr.msk.bf16.vlgmr.msra.gmra.mxu1 %vm404_vm2, %v1234_v18  ;;  %v800_v49 = vsel %vm391_vm3, %v795_v45, %v799_v46 }
  0x22   : > { %1163 = vmatpush3.bf16.msra.mxu1 %v684_v20  ;;  %1164 = vmatprep.mubr.msk.bf16.mxu1 %vm1279_vm1, %v1278_v2 }
  0x23   : > { %1174 = vmatprep.subr.bf16.mxu1 %v1278_v2 }
  0x27   : > { %1147 = vmatmul.mubr.msk.bf16.vlgmr.msra.gmra.mxu0 %vm404_vm2, %v504_v31 }
  0x28   : > { %1157 = vmatpush3.bf16.msra.mxu0 %v630_v36  ;;  %1158 = vmatprep.mubr.msk.bf16.mxu0 %vm1279_vm1, %v1278_v2 }
  0x29   : > { %1168 = vmatprep.subr.bf16.mxu0 %v1278_v2  ;;  %1165 = vmatmul.mubr.msk.bf16.vlgmr.msra.gmra.mxu1 %vm404_vm2, %v679_v37  ;;  %v1106_v37 = vld [vmem:[%s1481_s4] ss:$0 sm:$0xff] }
  0x2a   : > { %1175 = vmatpush3.bf16.msra.mxu1 %v805_v41  ;;  %1176 = vmatprep.mubr.msk.bf16.mxu1 %vm1279_vm1, %v1278_v2 }
  0x2f   : > { %1159 = vmatmul.mubr.msk.bf16.vlgmr.msra.gmra.mxu0 %vm404_vm2, %v625_v47 }
  0x30   : > { %1169 = vmatpush3.bf16.msra.mxu0 %v740_v48  ;;  %1170 = vmatprep.mubr.msk.bf16.mxu0 %vm1279_vm1, %v1278_v2 }
  0x31   : > { %1180 = vmatprep.subr.bf16.mxu0 %v1278_v2  ;;  %1177 = vmatmul.mubr.msk.bf16.vlgmr.msra.gmra.mxu1 %vm404_vm2, %v800_v49 }
  0x37   : > { %1171 = vmatmul.mubr.msk.bf16.vlgmr.msra.gmra.mxu0 %vm404_vm2, %v1236_v21 }
  0x38   : > { %1181 = vmatpush3.bf16.msra.mxu0 %v859_v51  ;;  %1182 = vmatprep.mubr.msk.bf16.mxu0 %vm1279_vm1, %v1278_v2 }
  0x3f   : > { %1183 = vmatmul.mubr.msk.bf16.vlgmr.msra.gmra.mxu0 %vm404_vm2, %v854_v54 }
  0xd8   : > { %v492_v55 = vpop.f32.mrf.mxu1 }
  0xda   : > { %v1142_v56 = vpop.f32.mrf.mxu1 }
  0xdc   : > { %v495_v57 = vpop.f32.mrf.mxu1 }
  0xde   : > { %v1143_v58 = vpop.f32.mrf.mxu1 }
  0xdf   : > { %v446_v59 = vpop.f32.mrf.mxu0 }
  0xe0   : > { %v493_v8 = vadd.f32 %v492_v55, %v446_v59 }
  0xe1   : > { %v1136_v60 = vpop.f32.mrf.mxu0  ;;  %v601_v61 = vpop.f32.mrf.mxu1 }
  0xe3   : > { %v449_v62 = vpop.f32.mrf.mxu0  ;;  %v1154_v63 = vpop.f32.mrf.mxu1 }
  0xe4   : > { %v496_v14 = vadd.f32 %v495_v57, %v449_v62 }
  0xe5   : > { %v1137_v0 = vpop.f32.mrf.mxu0  ;;  %v604_v1 = vpop.f32.mrf.mxu1 }
  0xe7   : > { %v545_v3 = vpop.f32.mrf.mxu0  ;;  %v1155_v4 = vpop.f32.mrf.mxu1 }
  0xe8   : > { %v552_v11 = vadd.f32 %v545_v3, %v493_v8 }
  0xe9   : > { %v1148_v2 = vpop.f32.mrf.mxu0  ;;  %v720_v5 = vpop.f32.mrf.mxu1 }
  0xea   : > { %v608_v17 = vadd.f32 %v601_v61, %v552_v11 }
  0xeb   : > { %v548_v6 = vpop.f32.mrf.mxu0  ;;  %v1166_v7 = vpop.f32.mrf.mxu1 }
  0xec   : > { %v553_v18 = vadd.f32 %v548_v6, %v496_v14 }
  0xed   : > { %v1149_v9 = vpop.f32.mrf.mxu0  ;;  %v723_v10 = vpop.f32.mrf.mxu1 }
  0xee   : > { %v609_v24 = vadd.f32 %v604_v1, %v553_v18 }
  0xef   : > { %v666_v12 = vpop.f32.mrf.mxu0  ;;  %v1167_v13 = vpop.f32.mrf.mxu1 }
  0xf0   : > { %v673_v21 = vadd.f32 %v666_v12, %v608_v17 }
  0xf1   : > { %v1160_v15 = vpop.f32.mrf.mxu0  ;;  %v841_v16 = vpop.f32.mrf.mxu1 }
  0xf2   : > { %v727_v27 = vadd.f32 %v720_v5, %v673_v21 }
  0xf3   : > { %v669_v19 = vpop.f32.mrf.mxu0  ;;  %v1178_v20 = vpop.f32.mrf.mxu1 }
  0xf4   : > { %v674_v28 = vadd.f32 %v669_v19, %v609_v24 }
  0xf5   : > { %v1161_v22 = vpop.f32.mrf.mxu0  ;;  %v844_v23 = vpop.f32.mrf.mxu1 }
  0xf6   : > { %v728_v32 = vadd.f32 %v723_v10, %v674_v28 }
  0xf7   : > { %v776_v25 = vpop.f32.mrf.mxu0  ;;  %v1179_v26 = vpop.f32.mrf.mxu1 }
  0xf8   : > { %v783_v30 = vadd.f32 %v776_v25, %v727_v27 }
  0xf9   : > { %v1172_v29 = vpop.f32.mrf.mxu0 }
  0xfa   : > { %v848_v34 = vadd.f32 %v841_v16, %v783_v30 }
  0xfb   : > { %v779_v31 = vpop.f32.mrf.mxu0 }
  0xfc   : > { %v784_v35 = vadd.f32 %v779_v31, %v728_v32 }
  0xfd   : > { %v1173_v33 = vpop.f32.mrf.mxu0 }
  0xfe   : > { %v849_v41 = vadd.f32 %v844_v23, %v784_v35 }
  0xff   : > { %v895_v36 = vpop.f32.mrf.mxu0 }
 0x100   : > { %v902_v38 = vadd.f32 %v895_v36, %v848_v34 }
 0x101   : > { %v1184_v40 = vpop.f32.mrf.mxu0 }
 0x102   : > { %v911_v42 = vmul.f32 %v1106_v37, %v902_v38 }
 0x103   : > { %v898_v43 = vpop.f32.mrf.mxu0 }
 0x104   : > { %v920_v44 = vadd.f32 %v1107_v39, %v911_v42  ;;  %v903_v45 = vadd.f32 %v898_v43, %v849_v41 }
 0x105   : > { %v1185_v46 = vpop.f32.mrf.mxu0 }
 0x106   : > { %v922_v47 = vmax.f32 %v920_v44, 0.0  ;;  %v912_v48 = vmul.f32 %v1106_v37, %v903_v45 }
 0x108   : > { %v1112_v49 = vpack.c.bf16 %v922_v47, %v922_v47  ;;  %v921_v50 = vadd.f32 %v1107_v39, %v912_v48 }
 0x10a   : > { %933 = vst.msk [vmem:[%s369_s19] sm:$0xf] %vm932_vm5, %v1112_v49  ;;  %v923_v51 = vmax.f32 %v921_v50, 0.0 }
 0x10c   : > { %v1113_v52 = vpack.c.bf16 %v923_v51, %v923_v51 }
 0x10e   : > { %934 = vst.msk [vmem:[%s369_s19 + $0x4] sm:$0xf] %vm932_vm5, %v1113_v52 }
 0x10f PF: > { %s16_s25 = sadd.s32 1, %s1276_s25   ;;  %s1484_s21 = smov %s1268_s23 }
 0x110   : > { %p13_p10 = scmp.ge.s32.totalorder %s16_s25, 34   ;;  %s1485_s22 = smov %s1272_s24 }
 0x111   : > { %s1486_s23 = smov %s1489_s26  ;;  %s1487_s24 = smov %s1493_s27 }
 0x112   :  { %15 = sbr.rel (!%p13_p10) target bundleno = 3 (0x3), region = 88 }

// kernel: caa_forward.4
= control target key start
LH: loop header
LB: loop body
LE: loop exit
PB: predicated region body
PF: predicated region fallthrough
CT: control target
= control target key end

     0   :  { %s2178_s18 = smov 0   ;;  %s2180_s19 = smov 0   ;;  %s3127_s0 = inlined_call_operand.vmem [shape: bf16[2,256,8], index: 0, kind: input, shape index: {}]   ;;  %s3128_s1 = inlined_call_operand.vmem [shape: bf16[8,262], index: 1, kind: input, shape index: {}]   ;;  %s3129_s2 = inlined_call_operand.vmem [shape: f32[1,262], index: 2, kind: input, shape index: {}]   ;;  %s3130_s3 = inlined_call_operand.vmem [shape: f32[1,262], index: 3, kind: input, shape index: {}]   ;;  %s3131_s4 = inlined_call_operand.vmem [shape: f32[2,256,6], index: 4, kind: output, shape index: {0}]   ;;  %s3132_s5 = inlined_call_operand.vmem [shape: f32[2,6,256], index: 5, kind: output, shape index: {1}]  }
   0x1   :  { %s2182_s20 = smov 0  }
   0x2 LB: > { %s28_s21 = sadd.s32 1, %s2140_s19  ;;  %p1823_p0 = scmp.ge.s32.totalorder %s2144_s20, 1  ;;  %s2144_s20 = sphi %s2182_s20, %s16_s20   ;;  %s2140_s19 = sphi %s2180_s19, %s3219_s19   ;;  %s2136_s18 = sphi %s2178_s18, %s3218_s18  }
   0x3   : > { %p30_p1 = scmp.ge.s32.totalorder %s28_s21, 2  ;;  %p211_p2 = scmp.lt.s32.totalorder %s2144_s20, 3 }
   0x5   : > { %s3221_s21 = smov (%p30_p1, %s28_s21), 0  ;;  %p212_p3 = pnand %p1823_p0, %p211_p2 }
   0x7   : > { %215 = sbr.rel (%p212_p3) target bundleno = 964 (0x3c4), region = 36 }
   0xc   : > { %v316_v0 = vld [vmem:[%s3128_s1] sm:$0xff]  ;;  %vm455_vm0 = vcmask 1043456   ;;  %p253_p4 = scmp.lt.s32.totalorder %s2136_s18, 1  ;;  %v2146_v3 = vmov 0   ;;  %v1969_v4 = vld [vmem:[%s3128_s1 + $0x8] ss:$0 sps:$4 sm:$0xff]   ;;  %v821_v23 = vlaneseq }
   0xd   : > { %v1847_v1 = vcombine.high %v316_v0, %v316_v0  ;;  %v1846_v2 = vcombine.low %v316_v0, %v316_v0  ;;  %497 = vmatprep.mubr.bf16.mxu0 %v2146_v3  ;;  %627 = vmatprep.mubr.bf16.mxu1 %v2146_v3  ;;  %vm406_vm1 = vcmask 64512   ;;  %v463_v8 = vsel %vm455_vm0, %v1969_v4, 0  ;;  %v2285_v26 = vld [vmem:[%s3129_s2] sm:$0x7] }
   0xe   : > { %s3223_s18 = smov (!%p253_p4, %s2136_s18), 1  ;;  %v2279_v24 = vshrl.u32 %v821_v23, 7  ;;  %v2294_v29 = vld [vmem:[%s3130_s3] sm:$0x7]  ;;  %vm1141_vm2 = vcmask 48128   ;;  %vm1658_vm3 = vcmask 1045504  }
   0xf   : > { %1938 = vmatprep.subr.msk.bf16.mxu1 %vm455_vm0, %v1847_v1  ;;  %1849 = vmatprep.subr.msk.bf16.mxu0 %vm455_vm0, %v1847_v1  ;;  %v457_v5 = vsel %vm455_vm0, %v1846_v2, 0  ;;  %s1884_s26 = sshll.u32 %s3223_s18, 7  ;;  %s1885_s9 = sshll.u32 %s3223_s18, 8 }
  0x10   : > { %1939 = vmatpush1.bf16.msra.mxu1 %v457_v5  ;;  %480 = vmatpush1.bf16.msra.mxu0 %v457_v5  ;;  %s2214_s29 = scalar_lea.vmem %s3127_s0, %s1884_s26  ;;  %v823_v25 = vsub.s32 0, %v2279_v24  ;;  %v827_v27 = vsub.s32 1, %v2279_v24  ;;  %s3012_s12 = scalar_lea.vmem %s3131_s4, %s1885_s9 }
  0x11   : > { %1940 = vmatprep.subr.msk.bf16.mxu1 %vm455_vm0, %v1969_v4  ;;  %v1970_v6 = vld [vmem:[%s2214_s29] sm:$0xff]   ;;  %v1971_v7 = vld [vmem:[%s2214_s29 + $0x68] sm:$0xff]   ;;  %v1973_v10 = vld [vmem:[%s2214_s29 + $0x70] sm:$0xff]   ;;  %s1886_s13 = sshll.u32 %s3223_s18, 4 }
  0x12   : > { %v1972_v9 = vld [vmem:[%s2214_s29 + $0x8] sm:$0xff]   ;;  %v1974_v11 = vld [vmem:[%s2214_s29 + $0x10] sm:$0xff]   ;;  %v1975_v12 = vld [vmem:[%s2214_s29 + $0x78] sm:$0xff]   ;;  %v2289_v28 = vrot.slane %v2285_v26, %v823_v25  ;;  %v2297_v31 = vrot.slane %v2285_v26, %v827_v27  ;;  %v2301_v33 = vrot.slane %v2294_v29, %v823_v25  ;;  %v2307_v39 = vrot.slane %v2294_v29, %v827_v27  ;;  %s276_s16 = scalar_lea.vmem %s3132_s5, %s1886_s13 }
  0x13   : > { %1850 = vmatmul.mubr.msk.bf16.vlgmr.msra.gmra.mxu0 %vm406_vm1, %v1970_v6  ;;  %1863 = vmatmul.mubr.msk.bf16.vlgmr.msra.gmra.mxu1 %vm406_vm1, %v1971_v7  ;;  %v1976_v13 = vld [vmem:[%s2214_s29 + $0x18] sm:$0xff]   ;;  %v1977_v14 = vld [vmem:[%s2214_s29 + $0x20] sm:$0xff]   ;;  %v1978_v15 = vld [vmem:[%s2214_s29 + $0x28] sm:$0xff]  }
  0x14   : > { %507 = vmatprep.mubr.bf16.mxu0 %v2146_v3  ;;  %1905 = vmatpush3.bf16.msra.mxu1 %v463_v8  ;;  %v1979_v16 = vld [vmem:[%s2214_s29 + $0x30] sm:$0xff]   ;;  %v1980_v17 = vld [vmem:[%s2214_s29 + $0x38] sm:$0xff]   ;;  %v1981_v18 = vld [vmem:[%s2214_s29 + $0x40] sm:$0xff]   ;;  %3168 = vst [vmem:[#allocation3_spill] sm:$0xff] %v2289_v28 }
  0x15   : > { %637 = vmatprep.mubr.bf16.mxu1 %v2146_v3  ;;  %v1982_v19 = vld [vmem:[%s2214_s29 + $0x48] sm:$0xff]   ;;  %v1983_v20 = vld [vmem:[%s2214_s29 + $0x50] sm:$0xff]   ;;  %v1984_v21 = vld [vmem:[%s2214_s29 + $0x58] sm:$0xff]   ;;  %3169 = vst [vmem:[#allocation4_spill] sm:$0xff] %v2297_v31 }
  0x16   : > { %v1985_v22 = vld [vmem:[%s2214_s29 + $0x60] sm:$0xff]  }
  0x1b   : > { %1851 = vmatmul.mubr.msk.bf16.gmra.mxu0 %vm406_vm1, %v1972_v9  ;;  %1864 = vmatmul.mubr.msk.bf16.gmra.mxu1 %vm406_vm1, %v1973_v10 }
  0x1c   : > { %517 = vmatprep.mubr.bf16.mxu0 %v2146_v3  ;;  %647 = vmatprep.mubr.bf16.mxu1 %v2146_v3 }
  0x23   : > { %1852 = vmatmul.mubr.msk.bf16.gmra.mxu0 %vm406_vm1, %v1974_v11  ;;  %1865 = vmatmul.mubr.msk.bf16.gmra.mxu1 %vm406_vm1, %v1975_v12 }
  0x24   : > { %527 = vmatprep.mubr.bf16.mxu0 %v2146_v3  ;;  %1906 = vmatprep.mubr.msk.bf16.mxu1 %vm406_vm1, %v1970_v6 }
  0x2b   : > { %1853 = vmatmul.mubr.msk.bf16.gmra.mxu0 %vm406_vm1, %v1976_v13  ;;  %1907 = vmatmul.mubr.msk.bf16.vlgmr.msra.gmra.mxu1 %vm406_vm1, %v1972_v9 }
  0x2c   : > { %537 = vmatprep.mubr.bf16.mxu0 %v2146_v3  ;;  %1910 = vmatprep.mubr.msk.bf16.mxu1 %vm406_vm1, %v1974_v11 }
  0x33   : > { %1854 = vmatmul.mubr.msk.bf16.gmra.mxu0 %vm406_vm1, %v1977_v14  ;;  %1911 = vmatmul.mubr.msk.bf16.gmra.mxu1 %vm406_vm1, %v1976_v13 }
  0x34   : > { %547 = vmatprep.mubr.bf16.mxu0 %v2146_v3  ;;  %1914 = vmatprep.mubr.msk.bf16.mxu1 %vm406_vm1, %v1977_v14 }
  0x3b   : > { %1855 = vmatmul.mubr.msk.bf16.gmra.mxu0 %vm406_vm1, %v1978_v15  ;;  %1915 = vmatmul.mubr.msk.bf16.gmra.mxu1 %vm406_vm1, %v1978_v15 }
  0x3c   : > { %557 = vmatprep.mubr.bf16.mxu0 %v2146_v3  ;;  %1918 = vmatprep.mubr.msk.bf16.mxu1 %vm406_vm1, %v1979_v16 }
  0x43   : > { %1856 = vmatmul.mubr.msk.bf16.gmra.mxu0 %vm406_vm1, %v1979_v16  ;;  %1919 = vmatmul.mubr.msk.bf16.gmra.mxu1 %vm406_vm1, %v1980_v17 }
  0x44   : > { %567 = vmatprep.mubr.bf16.mxu0 %v2146_v3  ;;  %1922 = vmatprep.mubr.msk.bf16.mxu1 %vm406_vm1, %v1981_v18 }
  0x4b   : > { %1857 = vmatmul.mubr.msk.bf16.gmra.mxu0 %vm406_vm1, %v1980_v17  ;;  %1923 = vmatmul.mubr.msk.bf16.gmra.mxu1 %vm406_vm1, %v1982_v19 }
  0x4c   : > { %577 = vmatprep.mubr.bf16.mxu0 %v2146_v3  ;;  %1926 = vmatprep.mubr.msk.bf16.mxu1 %vm406_vm1, %v1983_v20 }
  0x53   : > { %1858 = vmatmul.mubr.msk.bf16.gmra.mxu0 %vm406_vm1, %v1981_v18  ;;  %1927 = vmatmul.mubr.msk.bf16.gmra.mxu1 %vm406_vm1, %v1984_v21 }
  0x54   : > { %587 = vmatprep.mubr.bf16.mxu0 %v2146_v3  ;;  %1930 = vmatprep.mubr.msk.bf16.mxu1 %vm406_vm1, %v1985_v22 }
  0x5b   : > { %1859 = vmatmul.mubr.msk.bf16.gmra.mxu0 %vm406_vm1, %v1982_v19  ;;  %1931 = vmatmul.mubr.msk.bf16.gmra.mxu1 %vm406_vm1, %v1971_v7 }
  0x5c   : > { %597 = vmatprep.mubr.bf16.mxu0 %v2146_v3  ;;  %1934 = vmatprep.mubr.msk.bf16.mxu1 %vm406_vm1, %v1973_v10 }
  0x63   : > { %1860 = vmatmul.mubr.msk.bf16.gmra.mxu0 %vm406_vm1, %v1983_v20  ;;  %1935 = vmatmul.mubr.msk.bf16.gmra.mxu1 %vm406_vm1, %v1975_v12 }
  0x64   : > { %607 = vmatprep.mubr.bf16.mxu0 %v2146_v3 }
  0x6b   : > { %1861 = vmatmul.mubr.msk.bf16.gmra.mxu0 %vm406_vm1, %v1984_v21 }
  0x6c   : > { %617 = vmatprep.mubr.bf16.mxu0 %v2146_v3 }
  0x73   : > { %1862 = vmatmul.mubr.msk.bf16.gmra.mxu0 %vm406_vm1, %v1985_v22 }
  0xd3   : > { %v499_v30 = vpop.f32.mrf.mxu0  ;;  %v629_v34 = vpop.f32.mrf.mxu1 }
  0xd4   : > { %v836_v32 = vmul.f32 %v2289_v28, %v499_v30  ;;  %v914_v35 = vmul.f32 %v2289_v28, %v629_v34 }
  0xd5   : > { %v501_v36 = vpop.f32.mrf.mxu0  ;;  %v631_v40 = vpop.f32.mrf.mxu1 }
  0xd6   : > { %v949_v37 = vadd.f32 %v2301_v33, %v836_v32  ;;  %v837_v38 = vmul.f32 %v2297_v31, %v501_v36  ;;  %v915_v41 = vmul.f32 %v2297_v31, %v631_v40  ;;  %v1027_v46 = vadd.f32 %v2301_v33, %v914_v35 }
  0xd7   : > { %v503_v42 = vpop.f32.mrf.mxu0  ;;  %v633_v45 = vpop.f32.mrf.mxu1  ;;  %v831_v40 = vsub.s32 2, %v2279_v24 }
  0xd8   : > { %v950_v43 = vadd.f32 %v2307_v39, %v837_v38  ;;  %v839_v44 = vmul.f32 %v2289_v28, %v503_v42  ;;  %v917_v47 = vmul.f32 %v2289_v28, %v633_v45  ;;  %v1045_v49 = vmax.f32 %v949_v37, 0.0 }
  0xd9   : > { %v505_v48 = vpop.f32.mrf.mxu0  ;;  %v635_v52 = vpop.f32.mrf.mxu1  ;;  %v1028_v53 = vadd.f32 %v2307_v39, %v915_v41  ;;  %v1123_v62 = vmax.f32 %v1027_v46, 0.0 }
  0xda   : > { %v952_v50 = vadd.f32 %v2301_v33, %v839_v44  ;;  %v840_v51 = vmul.f32 %v2297_v31, %v505_v48  ;;  %v1030_v54 = vadd.f32 %v2301_v33, %v917_v47  ;;  %v918_v55 = vmul.f32 %v2297_v31, %v635_v52 }
  0xdb   : > { %v509_v56 = vpop.f32.mrf.mxu0  ;;  %v1046_v57 = vmax.f32 %v950_v43, 0.0  ;;  %v639_v61 = vpop.f32.mrf.mxu1  ;;  %v1124_v8 = vmax.f32 %v1028_v53, 0.0 }
  0xdc   : > { %v1048_v58 = vmax.f32 %v952_v50, 0.0  ;;  %v953_v59 = vadd.f32 %v2307_v39, %v840_v51  ;;  %v842_v60 = vmul.f32 %v2289_v28, %v509_v56  ;;  %v1126_v63 = vmax.f32 %v1030_v54, 0.0 }
  0xdd   : > { %v1031_v0 = vadd.f32 %v2307_v39, %v918_v55  ;;  %v920_v1 = vmul.f32 %v2289_v28, %v639_v61  ;;  %v511_v2 = vpop.f32.mrf.mxu0  ;;  %v641_v7 = vpop.f32.mrf.mxu1 }
  0xde   : > { %v2323_v3 = vpack.c.bf16 %v1048_v58, %v1045_v49  ;;  %v1049_v4 = vmax.f32 %v953_v59, 0.0  ;;  %v955_v5 = vadd.f32 %v2301_v33, %v842_v60  ;;  %v843_v6 = vmul.f32 %v2297_v31, %v511_v2 }
  0xdf   : > { %v2327_v9 = vpack.c.bf16 %v1126_v63, %v1123_v62  ;;  %v1127_v10 = vmax.f32 %v1031_v0, 0.0  ;;  %v921_v11 = vmul.f32 %v2297_v31, %v641_v7  ;;  %v513_v12 = vpop.f32.mrf.mxu0  ;;  %v643_v15 = vpop.f32.mrf.mxu1  ;;  %v1033_v17 = vadd.f32 %v2301_v33, %v920_v1 }
  0xe0   : > { %v956_v13 = vadd.f32 %v2307_v39, %v843_v6  ;;  %v845_v14 = vmul.f32 %v2289_v28, %v513_v12  ;;  %v2332_v16 = vpack.c.bf16 %v1049_v4, %v1046_v57  ;;  %v923_v18 = vmul.f32 %v2289_v28, %v643_v15 }
  0xe1   : > { %v515_v19 = vpop.f32.mrf.mxu0  ;;  %v2336_v20 = vpack.c.bf16 %v1127_v10, %v1124_v8  ;;  %v1051_v21 = vmax.f32 %v955_v5, 0.0  ;;  %v645_v25 = vpop.f32.mrf.mxu1  ;;  %v1034_v27 = vadd.f32 %v2307_v39, %v921_v11  ;;  %v1129_v41 = vmax.f32 %v1033_v17, 0.0 }
  0xe2   : > { %v958_v22 = vadd.f32 %v2301_v33, %v845_v14  ;;  %v846_v23 = vmul.f32 %v2297_v31, %v515_v19  ;;  %v1036_v30 = vadd.f32 %v2301_v33, %v923_v18  ;;  %v924_v32 = vmul.f32 %v2297_v31, %v645_v25 }
  0xe3   : > { %v2343_v34 = vpop.f32.mrf.mxu0  ;;  %v1052_v35 = vmax.f32 %v956_v13, 0.0  ;;  %v649_v38 = vpop.f32.mrf.mxu1  ;;  %v1130_v49 = vmax.f32 %v1034_v27, 0.0  ;;  %v2365_v58 = vrot.slane %v2285_v26, %v831_v40  ;;  %v2375_v1 = vrot.slane %v2294_v29, %v831_v40 }
  0xe4   : > { %v1054_v36 = vmax.f32 %v958_v22, 0.0  ;;  %v959_v37 = vadd.f32 %v2307_v39, %v846_v23  ;;  %v1132_v42 = vmax.f32 %v1036_v30, 0.0  ;;  %v1037_v43 = vadd.f32 %v2307_v39, %v924_v32 }
  0xe5   : > { %v926_v44 = vmul.f32 %v2289_v28, %v649_v38  ;;  %v2349_v45 = vpop.f32.mrf.mxu0  ;;  %v651_v48 = vpop.f32.mrf.mxu1 }
  0xe6   : > { %v2351_v46 = vpack.c.bf16 %v1054_v36, %v1051_v21  ;;  %v1055_v47 = vmax.f32 %v959_v37, 0.0  ;;  %v2353_v50 = vpack.c.bf16 %v1132_v42, %v1129_v41  ;;  %v1133_v51 = vmax.f32 %v1037_v43, 0.0 }
  0xe7   : > { %v927_v52 = vmul.f32 %v2297_v31, %v651_v48  ;;  %v2356_v53 = vpop.f32.mrf.mxu0  ;;  %v653_v24 = vpop.f32.mrf.mxu1  ;;  %v1039_v55 = vadd.f32 %v2301_v33, %v926_v44 }
  0xe8   : > { %v2358_v54 = vpack.c.bf16 %v1055_v47, %v1052_v35  ;;  %v929_v56 = vmul.f32 %v2289_v28, %v653_v24  ;;  %v2367_v59 = vpack.c.bf16 %v1133_v51, %v1130_v49 }
  0xe9   : > { %v2362_v57 = vpop.f32.mrf.mxu0  ;;  %v1040_v60 = vadd.f32 %v2307_v39, %v927_v52  ;;  %v655_v61 = vpop.f32.mrf.mxu1  ;;  %v1135_v4 = vmax.f32 %v1039_v55, 0.0 }
  0xea   : > { %v1042_v62 = vadd.f32 %v2301_v33, %v929_v56  ;;  %v930_v63 = vmul.f32 %v2297_v31, %v655_v61  ;;  %v848_v61 = vmul.f32 %v2289_v28, %v2343_v34 }
  0xeb   : > { %v2372_v0 = vpop.f32.mrf.mxu0  ;;  %v1908_v2 = vpop.f32.mrf.mxu1  ;;  %v1136_v8 = vmax.f32 %v1040_v60, 0.0 }
  0xec   : > { %v1138_v5 = vmax.f32 %v1042_v62, 0.0  ;;  %v1043_v26 = vadd.f32 %v2307_v39, %v930_v63  ;;  %v844_v6 = vmul.f32 %v1908_v2, %v2365_v58 }
  0xed   : > { %v2379_v7 = vpop.f32.mrf.mxu0  ;;  %v692_v10 = vpop.f32.mrf.mxu1 }
  0xee   : > { %v2381_v11 = vpack.c.bf16 %v1138_v5, %v1135_v4  ;;  %v1139_v12 = vmax.f32 %v1043_v26, 0.0  ;;  %v838_v13 = vmul.f32 %v2365_v58, %v692_v10  ;;  %v2385_v29 = vadd.f32 %v2375_v1, %v844_v6 }
  0xef   : > { %v533_v14 = vpop.f32.mrf.mxu0  ;;  %v1909_v15 = vpop.f32.mrf.mxu1 }
  0xf0   : > { %v847_v17 = vmul.f32 %v1909_v15, %v2365_v58  ;;  %v3143_v19 = vmax.f32 %v2385_v29, 0.0  ;;  %v2392_v21 = vadd.f32 %v2375_v1, %v838_v13  ;;  %v2394_v22 = vpack.c.bf16 %v1139_v12, %v1136_v8 }
  0xf1   : > { %v2388_v18 = vpop.f32.mrf.mxu0  ;;  %v695_v23 = vpop.f32.mrf.mxu1 }
  0xf2   : > { %v2397_v25 = vadd.f32 %v2375_v1, %v847_v17  ;;  %v841_v27 = vmul.f32 %v2365_v58, %v695_v23  ;;  %v1148_v30 = vsel %vm1141_vm2, %v3143_v19, -inf  ;;  %v3142_v35 = vmax.f32 %v2392_v21, 0.0 }
  0xf3   : > { %v539_v32 = vpop.f32.mrf.mxu0  ;;  %1149 = vmax.xlane.f32.xlu0 %v1148_v30  ;;  %v1912_v36 = vpop.f32.mrf.mxu1  ;;  %v2448_v17 = vadd.f32 %v2301_v33, %v848_v61 }
  0xf4   : > { %v2405_v37 = vadd.f32 %v2375_v1, %v841_v27  ;;  %v856_v38 = vmul.f32 %v1912_v36, %v2365_v58  ;;  %v1142_v40 = vsel %vm1141_vm2, %v3142_v35, -inf  ;;  %v3141_v42 = vmax.f32 %v2397_v25, 0.0 }
  0xf5   : > { %v541_v41 = vpop.f32.mrf.mxu0  ;;  %1143 = vmax.xlane.f32.xlu1 %v1142_v40  ;;  %v708_v43 = vpop.f32.mrf.mxu1  ;;  %v855_v40 = vmul.f32 %v2297_v31, %v2379_v7  ;;  %v2473_v7 = vmul.f32 %v2297_v31, %v2349_v45 }
  0xf6   : > { %v2413_v44 = vadd.f32 %v2375_v1, %v856_v38  ;;  %v850_v47 = vmul.f32 %v2365_v58, %v708_v43  ;;  %v1151_v51 = vsel %vm1141_vm2, %v3141_v42, -inf  ;;  %v3138_v60 = vmax.f32 %v2405_v37, 0.0 }
  0xf7   : > { %v2416_v48 = vpop.f32.mrf.mxu0  ;;  %v1913_v49 = vpop.f32.mrf.mxu1  ;;  %v854_v38 = vmul.f32 %v2289_v28, %v2372_v0  ;;  %v857_v43 = vmul.f32 %v2289_v28, %v533_v14  ;;  %v2477_v14 = vmul.f32 %v2289_v28, %v2356_v53 }
  0xf8   : > { %v2422_v52 = vadd.f32 %v2375_v1, %v850_v47  ;;  %v859_v24 = vmul.f32 %v1913_v49, %v2365_v58  ;;  %v3140_v56 = vmax.f32 %v2413_v44, 0.0  ;;  %v1145_v10 = vsel %vm1141_vm2, %v3138_v60, -inf }
  0xf9   : > { %v2425_v55 = vpop.f32.mrf.mxu0  ;;  %1152 = vmax.xlane.f32.xlu1 %v1151_v51  ;;  %v711_v62 = vpop.f32.mrf.mxu1 }
  0xfa   : > { %v2432_v63 = vadd.f32 %v2375_v1, %v859_v24  ;;  %v853_v2 = vmul.f32 %v2365_v58, %v711_v62  ;;  %v1160_v4 = vsel %vm1141_vm2, %v3140_v56, -inf  ;;  %v3136_v26 = vmax.f32 %v2422_v52, 0.0 }
  0xfb   : > { %v549_v5 = vpop.f32.mrf.mxu0  ;;  %1161 = vmax.xlane.f32.xlu0 %v1160_v4  ;;  %v1916_v6 = vpop.f32.mrf.mxu1  ;;  %v860_v4 = vmul.f32 %v2289_v28, %v539_v32  ;;  %v2499_v32 = vadd.f32 %v2301_v33, %v857_v43  ;;  %v2512_v43 = vmul.f32 %v2297_v31, %v2388_v18 }
  0xfc   : > { %3170 = vst [vmem:[#allocation5_spill] sm:$0xff] %v2432_v63  ;;  %v2440_v8 = vadd.f32 %v2375_v1, %v853_v2  ;;  %v868_v34 = vmul.f32 %v1916_v6, %v2365_v58  ;;  %v3135_v13 = vmax.f32 %v2432_v63, 0.0  ;;  %v1154_v30 = vsel %vm1141_vm2, %v3136_v26, -inf }
  0xfd   : > { %v551_v12 = vpop.f32.mrf.mxu0  ;;  %1146 = vmax.xlane.f32.xlu1 %v1145_v10  ;;  %v724_v15 = vpop.f32.mrf.mxu1  ;;  %v2481_v2 = vmul.f32 %v2297_v31, %v2362_v57  ;;  %v2496_v57 = vadd.f32 %v2307_v39, %v855_v40 }
  0xfe   : > { %3171 = vst [vmem:[#allocation6_spill] sm:$0xff] %v2440_v8  ;;  %v2451_v23 = vadd.f32 %v2375_v1, %v868_v34  ;;  %v862_v27 = vmul.f32 %v2365_v58, %v724_v15  ;;  %v1163_v49 = vsel %vm1141_vm2, %v3135_v13, -inf  ;;  %v3134_v0 = vmax.f32 %v2440_v8, 0.0 }
  0xff   : > { %v553_v36 = vpop.f32.mrf.mxu0  ;;  %1155 = vmax.xlane.f32.xlu0 %v1154_v30  ;;  %v1917_v47 = vpop.f32.mrf.mxu1  ;;  %v861_v30 = vmul.f32 %v2297_v31, %v541_v41  ;;  %v866_v41 = vmul.f32 %v2289_v28, %v549_v5 }
 0x100   : > { %3172 = vst [vmem:[#allocation7_spill] sm:$0xff] %v2451_v23  ;;  %v2466_v51 = vadd.f32 %v2375_v1, %v862_v27  ;;  %v871_v24 = vmul.f32 %v1917_v47, %v2365_v58  ;;  %v3133_v62 = vmax.f32 %v2451_v23, 0.0  ;;  %v2493_v27 = vadd.f32 %v2301_v33, %v854_v38 }
 0x101   : > { %v555_v61 = vpop.f32.mrf.mxu0  ;;  %1164 = vmax.xlane.f32.xlu1 %v1163_v49  ;;  %v727_v6 = vpop.f32.mrf.mxu1  ;;  %v1157_v38 = vsel %vm1141_vm2, %v3134_v0, -inf  ;;  %v2528_v5 = vadd.f32 %v2307_v39, %v861_v30 }
 0x102   : > { %3173 = vst [vmem:[#allocation8_spill] sm:$0xff] %v2466_v51  ;;  %v2485_v34 = vadd.f32 %v2375_v1, %v871_v24  ;;  %v865_v10 = vmul.f32 %v2365_v58, %v727_v6  ;;  %v1172_v45 = vsel %vm1141_vm2, %v3133_v62, -inf  ;;  %v3137_v53 = vmax.f32 %v2466_v51, 0.0 }
 0x103   : > { %v559_v15 = vpop.f32.mrf.mxu0  ;;  %1173 = vmax.xlane.f32.xlu0 %v1172_v45  ;;  %v1920_v47 = vpop.f32.mrf.mxu1  ;;  %v867_v45 = vmul.f32 %v2297_v31, %v551_v12  ;;  %v2532_v12 = vmul.f32 %v2289_v28, %v2416_v48  ;;  %v2546_v48 = vmul.f32 %v2297_v31, %v2425_v55 }
 0x104   : > { %3174 = vst [vmem:[#allocation9_spill] sm:$0xff] %v2485_v34  ;;  %v2503_v49 = vadd.f32 %v2375_v1, %v865_v10  ;;  %v880_v24 = vmul.f32 %v1920_v47, %v2365_v58  ;;  %v3139_v40 = vmax.f32 %v2485_v34, 0.0  ;;  %v869_v10 = vmul.f32 %v2289_v28, %v553_v36 }
 0x105   : > { %v561_v6 = vpop.f32.mrf.mxu0  ;;  %1158 = vmax.xlane.f32.xlu1 %v1157_v38  ;;  %v740_v62 = vpop.f32.mrf.mxu1  ;;  %v2518_v47 = vadd.f32 %v2301_v33, %v860_v4  ;;  %v1166_v18 = vsel %vm1141_vm2, %v3137_v53, -inf  ;;  %v870_v36 = vmul.f32 %v2297_v31, %v555_v61  ;;  %v2549_v61 = vadd.f32 %v2301_v33, %v866_v41 }
 0x106   : > { %3175 = vst [vmem:[#allocation10_spill] sm:$0xff] %v2503_v49  ;;  %v2521_v0 = vadd.f32 %v2375_v1, %v880_v24  ;;  %v874_v13 = vmul.f32 %v2365_v58, %v740_v62  ;;  %v873_v4 = vmul.f32 %v2297_v31, %v561_v6  ;;  %v1175_v30 = vsel %vm1141_vm2, %v3139_v40, -inf }
 0x107   : > { %v563_v26 = vpop.f32.mrf.mxu0  ;;  %1167 = vmax.xlane.f32.xlu0 %v1166_v18  ;;  %v1921_v24 = vpop.f32.mrf.mxu1  ;;  %v3145_v60 = vmax.f32 %v2503_v49, 0.0  ;;  %v2552_v6 = vadd.f32 %v2307_v39, %v867_v45  ;;  %v2564_v41 = vadd.f32 %v2307_v39, %v870_v36 }
 0x108   : > { %v2537_v62 = vadd.f32 %v2375_v1, %v874_v13  ;;  %v883_v38 = vmul.f32 %v1921_v24, %v2365_v58  ;;  %v2555_v13 = vadd.f32 %v2301_v33, %v869_v10  ;;  %v872_v24 = vmul.f32 %v2289_v28, %v559_v15 }
 0x109   : > { %v565_v53 = vpop.f32.mrf.mxu0  ;;  %1176 = vmax.xlane.f32.xlu1 %v1175_v30  ;;  %v743_v18 = vpop.f32.mrf.mxu1  ;;  %v2567_v45 = vadd.f32 %v2307_v39, %v873_v4  ;;  %v875_v19 = vmul.f32 %v2289_v28, %v563_v26 }
 0x10a   : > { %3176 = vst [vmem:[#allocation11_spill] sm:$0xff] %v2537_v62  ;;  %v2559_v40 = vadd.f32 %v2375_v1, %v883_v38  ;;  %v877_v56 = vmul.f32 %v2365_v58, %v743_v18  ;;  %v3147_v42 = vmax.f32 %v2537_v62, 0.0  ;;  %v876_v10 = vmul.f32 %v2297_v31, %v565_v53 }
 0x10b   : > { %v569_v55 = vpop.f32.mrf.mxu0  ;;  %v1924_v35 = vpop.f32.mrf.mxu1  ;;  %v1169_v18 = vsel %vm1141_vm2, %v3145_v60, -inf  ;;  %v1082_v34 = vmax.f32 %v2567_v45, 0.0  ;;  %v988_v45 = vadd.f32 %v2301_v33, %v875_v19 }
 0x10c   : > { %v878_v30 = vmul.f32 %v2289_v28, %v569_v55  ;;  %v2572_v15 = vadd.f32 %v2375_v1, %v877_v56  ;;  %v892_v38 = vmul.f32 %v1924_v35, %v2365_v58  ;;  %v1178_v36 = vsel %vm1141_vm2, %v3147_v42, -inf }
 0x10d   : > { %v571_v4 = vpop.f32.mrf.mxu0  ;;  %1170 = vmax.xlane.f32.xlu1 %v1169_v18  ;;  %1179 = vmax.xlane.f32.xlu0 %v1178_v36  ;;  %v756_v55 = vpop.f32.mrf.mxu1  ;;  %v985_v35 = vadd.f32 %v2301_v33, %v872_v24  ;;  %v989_v26 = vadd.f32 %v2307_v39, %v876_v10 }
 0x10e   : > { %3177 = vst [vmem:[#allocation12_spill] sm:$0xff] %v2572_v15  ;;  %v991_v53 = vadd.f32 %v2301_v33, %v878_v30  ;;  %v879_v56 = vmul.f32 %v2297_v31, %v571_v4  ;;  %v2586_v49 = vadd.f32 %v2375_v1, %v892_v38  ;;  %v886_v60 = vmul.f32 %v2365_v58, %v756_v55 }
 0x10f   : > { %v573_v62 = vpop.f32.mrf.mxu0  ;;  %v3152_v42 = vmax.f32 %v2572_v15, 0.0  ;;  %v1925_v36 = vpop.f32.mrf.mxu1  ;;  %v1085_v8 = vmax.f32 %v989_v26, 0.0 }
 0x110   : > { %3178 = vst [vmem:[#allocation13_spill] sm:$0xff] %v2586_v49  ;;  %v992_v30 = vadd.f32 %v2307_v39, %v879_v56  ;;  %v881_v18 = vmul.f32 %v2289_v28, %v573_v62  ;;  %v2595_v4 = vadd.f32 %v2375_v1, %v886_v60  ;;  %v895_v24 = vmul.f32 %v1925_v36, %v2365_v58 }
 0x111   : > { %v1181_v38 = vsel %vm1141_vm2, %v3152_v42, -inf  ;;  %v575_v55 = vpop.f32.mrf.mxu0  ;;  %v3159_v51 = vmax.f32 %v2586_v49, 0.0  ;;  %v1087_v10 = vmax.f32 %v991_v53, 0.0  ;;  %v759_v28 = vpop.f32.mrf.mxu1  ;;  %v1084_v49 = vmax.f32 %v988_v45, 0.0 }
 0x112   : > { %v994_v56 = vadd.f32 %v2301_v33, %v881_v18  ;;  %1182 = vmax.xlane.f32.xlu1 %v1181_v38  ;;  %v882_v62 = vmul.f32 %v2297_v31, %v575_v55  ;;  %v2606_v60 = vadd.f32 %v2375_v1, %v895_v24  ;;  %v889_v36 = vmul.f32 %v2365_v58, %v759_v28 }
 0x113   : > { %v1196_v42 = vsel %vm1141_vm2, %v3159_v51, -inf  ;;  %v1095_v15 = vmax.f32 %v2595_v4, 0.0  ;;  %v1088_v19 = vmax.f32 %v992_v30, 0.0  ;;  %v1928_v38 = vpop.f32.mrf.mxu1  ;;  %v1081_v55 = vmax.f32 %v985_v35, 0.0 }
 0x114   : > { %v1090_v53 = vmax.f32 %v994_v56, 0.0  ;;  %v995_v18 = vadd.f32 %v2307_v39, %v882_v62  ;;  %1197 = vmax.xlane.f32.xlu0 %v1196_v42  ;;  %v2615_v31 = vadd.f32 %v2375_v1, %v889_v36  ;;  %v904_v24 = vmul.f32 %v1928_v38, %v2365_v58 }
 0x115   : > { %v3161_v28 = vmax.f32 %v2606_v60, 0.0  ;;  %v772_v63 = vpop.f32.mrf.mxu1  ;;  %v1190_v26 = vsel %vm1141_vm2, %v1095_v15, -inf  ;;  %v977_v45 = vadd.f32 %v2307_v39, %v2546_v48  ;;  %v1557_v36 = vpack.c.bf16 %v1085_v8, %v1082_v34 }
 0x116   : > { %v1558_v23 = vpack.c.bf16 %v1090_v53, %v1087_v10  ;;  %v1091_v51 = vmax.f32 %v995_v18, 0.0  ;;  %v2623_v30 = vadd.f32 %v2375_v1, %v904_v24  ;;  %v898_v42 = vmul.f32 %v2365_v58, %v772_v63 }
 0x117   : > { %v1199_v35 = vsel %vm1141_vm2, %v3161_v28, -inf  ;;  %v1098_v56 = vmax.f32 %v2615_v31, 0.0  ;;  %v1929_v10 = vpop.f32.mrf.mxu1  ;;  %v976_v53 = vadd.f32 %v2301_v33, %v2532_v12  ;;  %v1076_v18 = vmax.f32 %v2552_v6, 0.0 }
 0x118   : > { %1191 = vmax.xlane.f32.xlu0 %v1190_v26  ;;  %1200 = vmax.xlane.f32.xlu1 %v1199_v35  ;;  %v1559_v62 = vpack.c.bf16 %v1091_v51, %v1088_v19  ;;  %v1079_v63 = vmax.f32 %v2564_v41, 0.0  ;;  %v907_v38 = vmul.f32 %v1929_v10, %v2365_v58  ;;  %v1075_v24 = vmax.f32 %v2549_v61, 0.0 }
 0x119   : > { %v1078_v28 = vmax.f32 %v2555_v13, 0.0  ;;  %v2640_v48 = vadd.f32 %v2375_v1, %v898_v42  ;;  %v775_v26 = vpop.f32.mrf.mxu1  ;;  %v1113_v8 = vmax.f32 %v2623_v30, 0.0  ;;  %v1556_v51 = vpack.c.bf16 %v1084_v49, %v1081_v55 }
 0x11a   : > { %1608 = vmatprep.subr.bf16.mxu1 %v1559_v62  ;;  %v2644_v34 = vadd.f32 %v2375_v1, %v907_v38  ;;  %v901_v12 = vmul.f32 %v2365_v58, %v775_v26  ;;  %v1193_v6 = vsel %vm1141_vm2, %v1098_v56, -inf  ;;  %v971_v61 = vadd.f32 %v2307_v39, %v2512_v43 }
 0x11b   : > { %1609 = vmatpush1.bf16.msra.mxu1 %v1558_v23  ;;  %v1069_v13 = vmax.f32 %v2518_v47, 0.0  ;;  %v1070_v41 = vmax.f32 %v2528_v5, 0.0  ;;  %v1073_v19 = vmax.f32 %v977_v45, 0.0  ;;  %v1932_v49 = vpop.f32.mrf.mxu1  ;;  %v1555_v10 = vpack.c.bf16 %v1079_v63, %v1076_v18 }
 0x11c   : > { %1194 = vmax.xlane.f32.xlu0 %v1193_v6  ;;  %1610 = vmatprep.subr.bf16.mxu1 %v1557_v36  ;;  %v2655_v55 = vadd.f32 %v2375_v1, %v901_v12  ;;  %v916_v42 = vmul.f32 %v1932_v49, %v2365_v58  ;;  %v1116_v35 = vmax.f32 %v2644_v34, 0.0  ;;  %v1072_v23 = vmax.f32 %v976_v53, 0.0 }
 0x11d   : > { %v1554_v62 = vpack.c.bf16 %v1078_v28, %v1075_v24  ;;  %v788_v38 = vpop.f32.mrf.mxu1  ;;  %v1208_v43 = vsel %vm1141_vm2, %v1113_v8, -inf  ;;  %v1107_v47 = vmax.f32 %v2640_v48, 0.0  ;;  %v962_v28 = vadd.f32 %v2307_v39, %v2473_v7 }
 0x11e   : > { %v2664_v5 = vadd.f32 %v2375_v1, %v916_v42  ;;  %v910_v45 = vmul.f32 %v2365_v58, %v788_v38  ;;  %v1211_v36 = vsel %vm1141_vm2, %v1116_v35, -inf  ;;  %v1110_v53 = vmax.f32 %v2655_v55, 0.0 }
 0x11f   : > { %1611 = vmatpush1.bf16.msra.mxu1 %v1556_v51  ;;  %v964_v18 = vadd.f32 %v2301_v33, %v2477_v14  ;;  %v965_v63 = vadd.f32 %v2307_v39, %v2481_v2  ;;  %v1063_v24 = vmax.f32 %v2493_v27, 0.0  ;;  %1212 = vmax.xlane.f32.xlu1 %v1211_v36  ;;  %v1933_v26 = vpop.f32.mrf.mxu1  ;;  %v1064_v12 = vmax.f32 %v2496_v57, 0.0 }
 0x120   : > { %1209 = vmax.xlane.f32.xlu0 %v1208_v43  ;;  %v1067_v6 = vmax.f32 %v971_v61, 0.0  ;;  %v919_v51 = vmul.f32 %v1933_v26, %v2365_v58  ;;  %1612 = vmatprep.subr.bf16.mxu1 %v1555_v10  ;;  %v1553_v49 = vpack.c.bf16 %v1073_v19, %v1070_v41  ;;  %v1066_v7 = vmax.f32 %v2499_v32, 0.0 }
 0x121   : > { %v1552_v42 = vpack.c.bf16 %v1072_v23, %v1069_v13  ;;  %v2682_v14 = vadd.f32 %v2375_v1, %v910_v45  ;;  %v791_v38 = vpop.f32.mrf.mxu1  ;;  %v1125_v2 = vmax.f32 %v2664_v5, 0.0  ;;  %v1202_v57 = vsel %vm1141_vm2, %v1107_v47, -inf }
 0x122   : > { %v2686_v27 = vadd.f32 %v2375_v1, %v919_v51  ;;  %v913_v43 = vmul.f32 %v2365_v58, %v791_v38  ;;  %v1205_v32 = vsel %vm1141_vm2, %v1110_v53, -inf  ;;  %v1057_v61 = vmax.f32 %v2448_v17, 0.0 }
 0x123   : > { %1613 = vmatpush1.bf16.msra.mxu1 %v1554_v62  ;;  %v1058_v13 = vmax.f32 %v962_v28, 0.0  ;;  %v1061_v41 = vmax.f32 %v965_v63, 0.0  ;;  %1206 = vmax.xlane.f32.xlu1 %v1205_v32  ;;  %v1936_v19 = vpop.f32.mrf.mxu1  ;;  %v1551_v36 = vpack.c.bf16 %v1067_v6, %v1064_v12  ;;  %v1060_v26 = vmax.f32 %v964_v18, 0.0 }
 0x124   : > { %1203 = vmax.xlane.f32.xlu0 %v1202_v57  ;;  %v2697_v10 = vadd.f32 %v2375_v1, %v913_v43  ;;  %v928_v23 = vmul.f32 %v1936_v19, %v2365_v58  ;;  %1614 = vmatprep.subr.bf16.mxu1 %v1553_v49  ;;  %v1128_v45 = vmax.f32 %v2686_v27, 0.0  ;;  %v1550_v51 = vpack.c.bf16 %v1066_v7, %v1063_v24 }
 0x125   : > { %v804_v38 = vpop.f32.mrf.mxu1  ;;  %v1220_v17 = vsel %vm1141_vm2, %v1125_v2, -inf  ;;  %v1119_v62 = vmax.f32 %v2682_v14, 0.0  ;;  %v1549_v7 = vpack.c.bf16 %v1061_v41, %v1058_v13  ;;  %v1548_v43 = vpack.c.bf16 %v1060_v26, %v1057_v61 }
 0x126   : > { %v2706_v28 = vadd.f32 %v2375_v1, %v928_v23  ;;  %v922_v63 = vmul.f32 %v2365_v58, %v804_v38  ;;  %v1223_v49 = vsel %vm1141_vm2, %v1128_v45, -inf  ;;  %v1122_v18 = vmax.f32 %v2697_v10, 0.0 }
 0x127   : > { %1615 = vmatpush1.bf16.msra.mxu1 %v1552_v42  ;;  %1224 = vmax.xlane.f32.xlu1 %v1223_v49  ;;  %v1937_v24 = vpop.f32.mrf.mxu1  ;;  %v1214_v32 = vsel %vm1141_vm2, %v1119_v62, -inf }
 0x128   : > { %1221 = vmax.xlane.f32.xlu0 %v1220_v17  ;;  %v2714_v12 = vadd.f32 %v2375_v1, %v922_v63  ;;  %v931_v6 = vmul.f32 %v1937_v24, %v2365_v58  ;;  %1616 = vmatprep.subr.bf16.mxu1 %v1551_v36  ;;  %v1217_v23 = vsel %vm1141_vm2, %v1122_v18, -inf  ;;  %v1137_v38 = vmax.f32 %v2706_v28, 0.0 }
 0x129   : > { %v807_v57 = vpop.f32.mrf.mxu1  ;;  %v1089_v17 = vmax.f32 %v2521_v0, 0.0  ;;  %v1092_v63 = vmax.f32 %v2559_v40, 0.0 }
 0x12a   : > { %v2721_v42 = vadd.f32 %v2375_v1, %v931_v6  ;;  %v925_v19 = vmul.f32 %v2365_v58, %v807_v57  ;;  %v1232_v41 = vsel %vm1141_vm2, %v1137_v38, -inf  ;;  %v1131_v36 = vmax.f32 %v2714_v12, 0.0 }
 0x12b   : > { %1617 = vmatpush1.bf16.msra.mxu1 %v1550_v51  ;;  %1218 = vmax.xlane.f32.xlu1 %v1217_v23  ;;  %v1187_v49 = vsel %vm1141_vm2, %v1092_v63, -inf  ;;  %v3183_v23 = vmax.f32 %v2405_v37, 0.0 }
 0x12c   : > { %1215 = vmax.xlane.f32.xlu0 %v1214_v32  ;;  %v2729_v61 = vadd.f32 %v2375_v1, %v925_v19  ;;  %1618 = vmatprep.subr.bf16.mxu1 %v1549_v7  ;;  %v1140_v13 = vmax.f32 %v2721_v42, 0.0  ;;  %v1226_v1 = vsel %vm1141_vm2, %v1131_v36, -inf  ;;  %v3180_v7 = vmax.f32 %v2392_v21, 0.0 }
 0x12e   : > { %v1235_v58 = vsel %vm1141_vm2, %v1140_v13, -inf  ;;  %v1134_v26 = vmax.f32 %v2729_v61, 0.0 }
 0x12f   : > { %1619 = vmatpush1.bf16.msra.mxu1 %v1548_v43  ;;  %1236 = vmax.xlane.f32.xlu1 %v1235_v58 }
 0x130   : > { %1233 = vmax.xlane.f32.xlu0 %v1232_v41  ;;  %1620 = vmatprep.subr.bf16.mxu1 %v2358_v54  ;;  %v1229_v51 = vsel %vm1141_vm2, %v1134_v26, -inf  ;;  %v1184_v54 = vsel %vm1141_vm2, %v1089_v17, -inf }
 0x133   : > { %1621 = vmatpush1.bf16.msra.mxu1 %v2351_v46  ;;  %1230 = vmax.xlane.f32.xlu1 %v1229_v51  ;;  %v3179_v46 = vmax.f32 %v2385_v29, 0.0 }
 0x134   : > { %1227 = vmax.xlane.f32.xlu0 %v1226_v1  ;;  %1622 = vmatprep.subr.bf16.mxu1 %v2332_v16  ;;  %v3184_v1 = vmax.f32 %v2422_v52, 0.0 }
 0x137   : > { %1623 = vmatpush1.bf16.msra.mxu1 %v2323_v3  ;;  %1188 = vmax.xlane.f32.xlu1 %v1187_v49  ;;  %v3185_v49 = vld [vmem:[#allocation5_spill] sm:$0xff] }
 0x138   : > { %1185 = vmax.xlane.f32.xlu0 %v1184_v54  ;;  %1624 = vmatprep.subr.bf16.mxu1 %v2394_v22 }
 0x13b   : > { %1625 = vmatpush2.bf16.msra.mxu1 %v2381_v11 }
 0x13c   : > { %1626 = vmatprep.subr.bf16.mxu1 %v2367_v59  ;;  %v3181_v59 = vmax.f32 %v2397_v25, 0.0 }
 0x13f   : > { %1627 = vmatpush2.bf16.msra.mxu1 %v2353_v50 }
 0x140   : > { %1628 = vmatprep.subr.bf16.mxu1 %v2336_v20 }
 0x143   : > { %1629 = vmatpush2.bf16.msra.mxu1 %v2327_v9  ;;  %v3182_v9 = vmax.f32 %v2413_v44, 0.0 }
 0x17c   : > { %v1150_v16 = vpop.xlane.xlu0 %1149 }
 0x17d   : > { %v1240_v24 = vsub.f32 %v3179_v46, %v1150_v16  ;;  %v3186_v16 = vmax.f32 %v3185_v49, 0.0 }
 0x17e   : > { %v1144_v6 = vpop.xlane.xlu1 %1143 }
 0x17f   : > { %v1274_v3 = vmul.f32 1.442695, %v1240_v24  ;;  %v1238_v43 = vsub.f32 %v3180_v7, %v1144_v6  ;;  %v3187_v6 = vld [vmem:[#allocation7_spill] sm:$0xff] }
 0x181   : > { %1986 = vpow2.f32 %v1274_v3  ;;  %v1270_v22 = vmul.f32 1.442695, %v1238_v43  ;;  %v3188_v3 = vmax.f32 %v3187_v6, 0.0 }
 0x182   : > { %v1153_v11 = vpop.xlane.xlu1 %1152 }
 0x183   : > { %1988 = vpow2.f32 %v1270_v22  ;;  %v1241_v50 = vsub.f32 %v3181_v59, %v1153_v11  ;;  %v3189_v11 = vld [vmem:[#allocation6_spill] sm:$0xff] }
 0x184   : > { %v1162_v57 = vpop.xlane.xlu0 %1161  ;;  %v3190_v52 = vmax.f32 %v3189_v11, 0.0 }
 0x185   : > { %v1276_v20 = vmul.f32 1.442695, %v1241_v50  ;;  %v1244_v32 = vsub.f32 %v3182_v9, %v1162_v57 }
 0x186   : > { %v1147_v19 = vpop.xlane.xlu1 %1146 }
 0x187   : > { %1990 = vpow2.f32 %v1276_v20  ;;  %v1282_v29 = vmul.f32 1.442695, %v1244_v32  ;;  %v1239_v41 = vsub.f32 %v3183_v23, %v1147_v19  ;;  %v3191_v32 = vld [vmem:[#allocation8_spill] sm:$0xff] }
 0x188   : > { %v1156_v21 = vpop.xlane.xlu0 %1155  ;;  %v3192_v19 = vmax.f32 %v3191_v32, 0.0 }
 0x189   : > { %1992 = vpow2.f32 %v1282_v29  ;;  %v1272_v58 = vmul.f32 1.442695, %v1239_v41  ;;  %v1242_v51 = vsub.f32 %v3184_v1, %v1156_v21  ;;  %v3193_v21 = vld [vmem:[#allocation9_spill] sm:$0xff] }
 0x18a   : > { %v1165_v54 = vpop.xlane.xlu1 %1164 }
 0x18b   : > { %1994 = vpow2.f32 %v1272_v58  ;;  %v1278_v25 = vmul.f32 1.442695, %v1242_v51  ;;  %v1245_v46 = vsub.f32 %v3186_v16, %v1165_v54  ;;  %v3194_v58 = vmax.f32 %v3193_v21, 0.0 }
 0x18c   : > { %v1174_v44 = vpop.xlane.xlu0 %1173 }
 0x18d   : > { %1996 = vpow2.f32 %v1278_v25  ;;  %v1284_v24 = vmul.f32 1.442695, %v1245_v46  ;;  %v1248_v7 = vsub.f32 %v3188_v3, %v1174_v44 }
 0x18e   : > { %v2780_v37 = vpop.eup %1986  ;;  %v1159_v43 = vpop.xlane.xlu1 %1158 }
 0x18f   : > { %1998 = vpow2.f32 %v1284_v24  ;;  %v1290_v22 = vmul.f32 1.442695, %v1248_v7  ;;  %v1243_v59 = vsub.f32 %v3190_v52, %v1159_v43  ;;  %v1340_v50 = vsel %vm1141_vm2, %v2780_v37, 0.0  ;;  %v3195_v24 = vld [vmem:[#allocation10_spill] sm:$0xff]  ;;  %v3197_v7 = vld [vmem:[#allocation11_spill] sm:$0xff] }
 0x190   : > { %v2786_v57 = vpop.eup %1988  ;;  %v1168_v20 = vpop.xlane.xlu0 %1167  ;;  %1341 = vadd.xlane.f32.xlu0 %v1340_v50  ;;  %v3196_v6 = vmax.f32 %v3195_v24, 0.0  ;;  %v3198_v43 = vmax.f32 %v3197_v7, 0.0 }
 0x191   : > { %2000 = vpow2.f32 %v1290_v22  ;;  %v1280_v9 = vmul.f32 1.442695, %v1243_v59  ;;  %v1246_v29 = vsub.f32 %v3192_v19, %v1168_v20  ;;  %v1334_v51 = vsel %vm1141_vm2, %v2786_v57, 0.0  ;;  %v3199_v19 = vld [vmem:[#allocation12_spill] sm:$0xff] }
 0x192   : > { %v1177_v23 = vpop.xlane.xlu1 %1176 }
 0x193   : > { %2002 = vpow2.f32 %v1280_v9  ;;  %v1286_v41 = vmul.f32 1.442695, %v1246_v29  ;;  %v1249_v1 = vsub.f32 %v3194_v58, %v1177_v23  ;;  %v3200_v29 = vmax.f32 %v3199_v19, 0.0 }
 0x194   : > { %v2794_v54 = vpop.eup %1990  ;;  %1335 = vadd.xlane.f32.xlu0 %v1334_v51  ;;  %v3201_v51 = vld [vmem:[#allocation13_spill] sm:$0xff] }
 0x195   : > { %2004 = vpow2.f32 %v1286_v41  ;;  %v1292_v25 = vmul.f32 1.442695, %v1249_v1  ;;  %v1343_v49 = vsel %vm1141_vm2, %v2794_v54, 0.0 }
 0x196   : > { %v2798_v16 = vpop.eup %1992  ;;  %v1171_v46 = vpop.xlane.xlu1 %1170  ;;  %1344 = vadd.xlane.f32.xlu1 %v1343_v49 }
 0x197   : > { %v1180_v44 = vpop.xlane.xlu0 %1179  ;;  %2006 = vpow2.f32 %v1292_v25  ;;  %v1247_v3 = vsub.f32 %v3196_v6, %v1171_v46  ;;  %v1352_v11 = vsel %vm1141_vm2, %v2798_v16, 0.0  ;;  %v3202_v25 = vmax.f32 %v3201_v51, 0.0 }
 0x198   : > { %v1250_v22 = vsub.f32 %v3198_v43, %v1180_v44  ;;  %v2806_v52 = vpop.eup %1994  ;;  %1353 = vadd.xlane.f32.xlu0 %v1352_v11  ;;  %v3203_v11 = vmax.f32 %v2606_v60, 0.0 }
 0x199   : > { %v1288_v59 = vmul.f32 1.442695, %v1247_v3  ;;  %v1337_v20 = vsel %vm1141_vm2, %v2806_v52, 0.0 }
 0x19a   : > { %v1294_v50 = vmul.f32 1.442695, %v1250_v22  ;;  %v2810_v9 = vpop.eup %1996  ;;  %1338 = vadd.xlane.f32.xlu1 %v1337_v20 }
 0x19b   : > { %v1183_v32 = vpop.xlane.xlu1 %1182  ;;  %2008 = vpow2.f32 %v1288_v59  ;;  %v1346_v41 = vsel %vm1141_vm2, %v2810_v9, 0.0 }
 0x19c   : > { %v1251_v23 = vsub.f32 %v3200_v29, %v1183_v32  ;;  %v2816_v21 = vpop.eup %1998  ;;  %2010 = vpow2.f32 %v1294_v50  ;;  %1347 = vadd.xlane.f32.xlu0 %v1346_v41 }
 0x19d   : > { %v1198_v58 = vpop.xlane.xlu0 %1197  ;;  %v1355_v46 = vsel %vm1141_vm2, %v2816_v21, 0.0 }
 0x19e   : > { %v1296_v1 = vmul.f32 1.442695, %v1251_v23  ;;  %v1256_v49 = vsub.f32 %v3202_v25, %v1198_v58  ;;  %v2822_v44 = vpop.eup %2000  ;;  %1356 = vadd.xlane.f32.xlu1 %v1355_v46 }
 0x19f   : > { %v1364_v6 = vsel %vm1141_vm2, %v2822_v44, 0.0 }
 0x1a0   : > { %2012 = vpow2.f32 %v1296_v1  ;;  %v1306_v24 = vmul.f32 1.442695, %v1256_v49  ;;  %v2826_v3 = vpop.eup %2002  ;;  %1365 = vadd.xlane.f32.xlu0 %v1364_v6 }
 0x1a1   : > { %v1192_v7 = vpop.xlane.xlu0 %1191  ;;  %v1201_v43 = vpop.xlane.xlu1 %1200  ;;  %v1349_v50 = vsel %vm1141_vm2, %v2826_v3, 0.0 }
 0x1a2   : > { %2014 = vpow2.f32 %v1306_v24  ;;  %v1254_v22 = vsub.f32 %v1095_v15, %v1192_v7  ;;  %v1257_v59 = vsub.f32 %v3203_v11, %v1201_v43  ;;  %v2834_v20 = vpop.eup %2004  ;;  %1350 = vadd.xlane.f32.xlu1 %v1349_v50 }
 0x1a3   : > { %v1358_v29 = vsel %vm1141_vm2, %v2834_v20, 0.0 }
 0x1a4   : > { %v1302_v32 = vmul.f32 1.442695, %v1254_v22  ;;  %v1308_v19 = vmul.f32 1.442695, %v1257_v59  ;;  %v2838_v23 = vpop.eup %2006  ;;  %1359 = vadd.xlane.f32.xlu0 %v1358_v29 }
 0x1a5   : > { %v1195_v41 = vpop.xlane.xlu0 %1194  ;;  %v1367_v4 = vsel %vm1141_vm2, %v2838_v23, 0.0 }
 0x1a6   : > { %2016 = vpow2.f32 %v1302_v32  ;;  %v1255_v15 = vsub.f32 %v1098_v56, %v1195_v41  ;;  %1368 = vadd.xlane.f32.xlu1 %v1367_v4 }
 0x1a7   : > { %2018 = vpow2.f32 %v1308_v19 }
 0x1a8   : > { %v1304_v60 = vmul.f32 1.442695, %v1255_v15  ;;  %v2844_v58 = vpop.eup %2008  ;;  %v1213_v51 = vpop.xlane.xlu1 %1212 }
 0x1a9   : > { %v1210_v1 = vpop.xlane.xlu0 %1209  ;;  %v2846_v25 = vpop.eup %2010  ;;  %v1261_v31 = vsub.f32 %v1116_v35, %v1213_v51  ;;  %v1361_v56 = vsel %vm1141_vm2, %v2844_v58, 0.0 }
 0x1aa   : > { %2020 = vpow2.f32 %v1304_v60  ;;  %v1260_v49 = vsub.f32 %v1113_v8, %v1210_v1  ;;  %v1370_v46 = vsel %vm1141_vm2, %v2846_v25, 0.0  ;;  %1362 = vadd.xlane.f32.xlu1 %v1361_v56 }
 0x1ab   : > { %v1316_v6 = vmul.f32 1.442695, %v1261_v31  ;;  %1371 = vadd.xlane.f32.xlu0 %v1370_v46 }
 0x1ac   : > { %v1314_v24 = vmul.f32 1.442695, %v1260_v49  ;;  %v1207_v22 = vpop.xlane.xlu1 %1206 }
 0x1ad   : > { %v2856_v7 = vpop.eup %2012  ;;  %v1204_v43 = vpop.xlane.xlu0 %1203  ;;  %v1259_v8 = vsub.f32 %v1110_v53, %v1207_v22 }
 0x1ae   : > { %2022 = vpow2.f32 %v1314_v24  ;;  %v1258_v30 = vsub.f32 %v1107_v47, %v1204_v43  ;;  %v1373_v34 = vsel %vm1141_vm2, %v2856_v7, 0.0 }
 0x1af   : > { %v2864_v35 = vpop.eup %2014  ;;  %2024 = vpow2.f32 %v1316_v6  ;;  %1374 = vadd.xlane.f32.xlu1 %v1373_v34  ;;  %v1312_v59 = vmul.f32 1.442695, %v1259_v8 }
 0x1b0   : > { %v1310_v11 = vmul.f32 1.442695, %v1258_v30  ;;  %v1388_v50 = vsel %vm1141_vm2, %v2864_v35, 0.0  ;;  %v1225_v19 = vpop.xlane.xlu1 %1224 }
 0x1b1   : > { %v1222_v32 = vpop.xlane.xlu0 %1221  ;;  %1389 = vadd.xlane.f32.xlu0 %v1388_v50  ;;  %v1265_v55 = vsub.f32 %v1128_v45, %v1225_v19 }
 0x1b2   : > { %2026 = vpow2.f32 %v1310_v11  ;;  %v1264_v48 = vsub.f32 %v1125_v2, %v1222_v32 }
 0x1b3   : > { %v2872_v47 = vpop.eup %2016  ;;  %2028 = vpow2.f32 %v1312_v59  ;;  %v1324_v41 = vmul.f32 1.442695, %v1265_v55  ;;  %v2910_v59 = vpop.f32.mrf.mxu0 }
 0x1b4   : > { %v2874_v53 = vpop.eup %2018  ;;  %v1322_v29 = vmul.f32 1.442695, %v1264_v48  ;;  %v1382_v15 = vsel %vm1141_vm2, %v2872_v47, 0.0  ;;  %v1219_v60 = vpop.xlane.xlu1 %1218 }
 0x1b5   : > { %v1216_v4 = vpop.xlane.xlu0 %1215  ;;  %1383 = vadd.xlane.f32.xlu0 %v1382_v15  ;;  %v1391_v5 = vsel %vm1141_vm2, %v2874_v53, 0.0  ;;  %v1263_v27 = vsub.f32 %v1122_v18, %v1219_v60  ;;  %v581_v32 = vpop.f32.mrf.mxu0 }
 0x1b6   : > { %2030 = vpow2.f32 %v1322_v29  ;;  %v1262_v2 = vsub.f32 %v1119_v62, %v1216_v4  ;;  %1392 = vadd.xlane.f32.xlu1 %v1391_v5 }
 0x1b7   : > { %v2884_v45 = vpop.eup %2020  ;;  %2032 = vpow2.f32 %v1324_v41  ;;  %v1320_v51 = vmul.f32 1.442695, %v1263_v27  ;;  %v2924_v15 = vpop.f32.mrf.mxu0 }
 0x1b8   : > { %v1318_v1 = vmul.f32 1.442695, %v1262_v2  ;;  %v1385_v49 = vsel %vm1141_vm2, %v2884_v45, 0.0  ;;  %v1237_v56 = vpop.xlane.xlu1 %1236 }
 0x1b9   : > { %v1234_v31 = vpop.xlane.xlu0 %1233  ;;  %v1269_v14 = vsub.f32 %v1140_v13, %v1237_v56  ;;  %v2928_v40 = vpop.f32.mrf.mxu0 }
 0x1ba   : > { %2034 = vpow2.f32 %v1318_v1  ;;  %v1268_v46 = vsub.f32 %v1137_v38, %v1234_v31  ;;  %1386 = vadd.xlane.f32.xlu1 %v1385_v49 }
 0x1bb   : > { %v2892_v10 = vpop.eup %2022  ;;  %2036 = vpow2.f32 %v1320_v51  ;;  %v1332_v24 = vmul.f32 1.442695, %v1269_v14  ;;  %v2936_v60 = vpop.f32.mrf.mxu0 }
 0x1bc   : > { %v2894_v62 = vpop.eup %2024  ;;  %v1330_v18 = vmul.f32 1.442695, %v1268_v46  ;;  %v1400_v6 = vsel %vm1141_vm2, %v2892_v10, 0.0  ;;  %v1231_v38 = vpop.xlane.xlu1 %1230 }
 0x1bd   : > { %1401 = vadd.xlane.f32.xlu0 %v1400_v6  ;;  %v1228_v43 = vpop.xlane.xlu0 %1227  ;;  %v1403_v28 = vsel %vm1141_vm2, %v2894_v62, 0.0  ;;  %v1267_v13 = vsub.f32 %v1134_v26, %v1231_v38  ;;  %v591_v2 = vpop.f32.mrf.mxu0 }
 0x1be   : > { %2038 = vpow2.f32 %v1330_v18  ;;  %v1266_v42 = vsub.f32 %v1131_v36, %v1228_v43  ;;  %1404 = vadd.xlane.f32.xlu1 %v1403_v28 }
 0x1bf   : > { %v2904_v22 = vpop.eup %2026  ;;  %2040 = vpow2.f32 %v1332_v24  ;;  %v1328_v34 = vmul.f32 1.442695, %v1267_v13  ;;  %v593_v49 = vpop.f32.mrf.mxu0 }
 0x1c0   : > { %v2906_v30 = vpop.eup %2028  ;;  %v1326_v8 = vmul.f32 1.442695, %v1266_v42  ;;  %v1394_v11 = vsel %vm1141_vm2, %v2904_v22, 0.0  ;;  %v1189_v36 = vpop.xlane.xlu1 %1188 }
 0x1c1   : > { %1395 = vadd.xlane.f32.xlu0 %v1394_v11  ;;  %v1186_v50 = vpop.xlane.xlu0 %1185  ;;  %v1397_v12 = vsel %vm1141_vm2, %v2906_v30, 0.0  ;;  %v1253_v26 = vsub.f32 %v1092_v63, %v1189_v36  ;;  %v595_v56 = vpop.f32.mrf.mxu0 }
 0x1c2   : > { %2042 = vpow2.f32 %v1326_v8  ;;  %v1252_v61 = vsub.f32 %v1089_v17, %v1186_v50  ;;  %1398 = vadd.xlane.f32.xlu1 %v1397_v12 }
 0x1c3   : > { %v2918_v19 = vpop.eup %2030  ;;  %2044 = vpow2.f32 %v1328_v34  ;;  %v1300_v29 = vmul.f32 1.442695, %v1253_v26  ;;  %v599_v24 = vpop.f32.mrf.mxu0  ;;  %v3210_v26 = vld [vmem:[#allocation3_spill] sm:$0xff] }
 0x1c4   : > { %v2920_v48 = vpop.eup %2032  ;;  %v1298_v55 = vmul.f32 1.442695, %v1252_v61  ;;  %v1412_v41 = vsel %vm1141_vm2, %v2918_v19, 0.0 }
 0x1c5   : > { %1413 = vadd.xlane.f32.xlu0 %v1412_v41  ;;  %v1415_v0 = vsel %vm1141_vm2, %v2920_v48, 0.0  ;;  %v601_v43 = vpop.f32.mrf.mxu0  ;;  %v3211_v41 = vld [vmem:[#allocation4_spill] sm:$0xff] }
 0x1c6   : > { %2046 = vpow2.f32 %v1298_v55  ;;  %1416 = vadd.xlane.f32.xlu1 %v1415_v0 }
 0x1c7   : > { %v2930_v17 = vpop.eup %2034  ;;  %2048 = vpow2.f32 %v1300_v29  ;;  %v603_v13 = vpop.f32.mrf.mxu0 }
 0x1c8   : > { %v2932_v63 = vpop.eup %2036  ;;  %v1406_v4 = vsel %vm1141_vm2, %v2930_v17, 0.0 }
 0x1c9   : > { %1407 = vadd.xlane.f32.xlu0 %v1406_v4  ;;  %v1409_v5 = vsel %vm1141_vm2, %v2932_v63, 0.0  ;;  %v605_v34 = vpop.f32.mrf.mxu0 }
 0x1ca   : > { %1410 = vadd.xlane.f32.xlu1 %v1409_v5 }
 0x1cb   : > { %v2940_v27 = vpop.eup %2038  ;;  %v609_v11 = vpop.f32.mrf.mxu0 }
 0x1cc   : > { %3204 = vst [vmem:[#allocation5_spill] sm:$0xff] %v2940_v27  ;;  %v2942_v1 = vpop.eup %2040  ;;  %v1424_v51 = vsel %vm1141_vm2, %v2940_v27, 0.0  ;;  %v902_v4 = vmul.f32 %v3210_v26, %v609_v11  ;;  %v897_v11 = vmul.f32 %v3211_v41, %v601_v43 }
 0x1cd   : > { %3205 = vst [vmem:[#allocation7_spill] sm:$0xff] %v2942_v1  ;;  %1425 = vadd.xlane.f32.xlu0 %v1424_v51  ;;  %v1427_v31 = vsel %vm1141_vm2, %v2942_v1, 0.0  ;;  %v611_v50 = vpop.f32.mrf.mxu0 }
 0x1ce   : > { %1428 = vadd.xlane.f32.xlu1 %v1427_v31  ;;  %v903_v5 = vmul.f32 %v3211_v41, %v611_v50  ;;  %v900_v50 = vmul.f32 %v3211_v41, %v605_v34 }
 0x1cf   : > { %v2948_v46 = vpop.eup %2042  ;;  %v613_v12 = vpop.f32.mrf.mxu0 }
 0x1d0   : > { %3206 = vst [vmem:[#allocation6_spill] sm:$0xff] %v2948_v46  ;;  %v2950_v14 = vpop.eup %2044  ;;  %v1418_v18 = vsel %vm1141_vm2, %v2948_v46, 0.0  ;;  %v905_v51 = vmul.f32 %v3210_v26, %v613_v12 }
 0x1d1   : > { %3207 = vst [vmem:[#allocation8_spill] sm:$0xff] %v2950_v14  ;;  %1419 = vadd.xlane.f32.xlu0 %v1418_v18  ;;  %v1421_v6 = vsel %vm1141_vm2, %v2950_v14, 0.0  ;;  %v615_v36 = vpop.f32.mrf.mxu0 }
 0x1d2   : > { %1422 = vadd.xlane.f32.xlu1 %v1421_v6  ;;  %v885_v6 = vmul.f32 %v3211_v41, %v581_v32 }
 0x1d3   : > { %v2956_v28 = vpop.eup %2046  ;;  %v619_v61 = vpop.f32.mrf.mxu0 }
 0x1d4   : > { %3208 = vst [vmem:[#allocation9_spill] sm:$0xff] %v2956_v28  ;;  %v2958_v38 = vpop.eup %2048  ;;  %v1376_v42 = vsel %vm1141_vm2, %v2956_v28, 0.0  ;;  %v908_v55 = vmul.f32 %v3210_v26, %v619_v61  ;;  %v899_v28 = vmul.f32 %v3210_v26, %v603_v13  ;;  %v890_v13 = vmul.f32 %v3210_v26, %v2936_v60 }
 0x1d5   : > { %3209 = vst [vmem:[#allocation10_spill] sm:$0xff] %v2958_v38  ;;  %1377 = vadd.xlane.f32.xlu0 %v1376_v42  ;;  %v1379_v8 = vsel %vm1141_vm2, %v2958_v38, 0.0  ;;  %v621_v29 = vpop.f32.mrf.mxu0  ;;  %v906_v42 = vmul.f32 %v3211_v41, %v615_v36  ;;  %v891_v38 = vmul.f32 %v3211_v41, %v591_v2  ;;  %v1018_v2 = vadd.f32 %v2301_v33, %v905_v51 }
 0x1d6   : > { %1380 = vadd.xlane.f32.xlu1 %v1379_v8  ;;  %v909_v0 = vmul.f32 %v3211_v41, %v621_v29  ;;  %v1021_v31 = vadd.f32 %v2301_v33, %v908_v55  ;;  %v894_v29 = vmul.f32 %v3211_v41, %v595_v56  ;;  %v896_v55 = vmul.f32 %v3210_v26, %v599_v24 }
 0x1d7   : > { %v623_v18 = vpop.f32.mrf.mxu0  ;;  %v1019_v43 = vadd.f32 %v2307_v39, %v906_v42  ;;  %v888_v24 = vmul.f32 %v3211_v41, %v2928_v40  ;;  %v893_v51 = vmul.f32 %v3210_v26, %v593_v49  ;;  %v998_v49 = vadd.f32 %v2307_v39, %v885_v6 }
 0x1d8   : > { %v1022_v8 = vadd.f32 %v2307_v39, %v909_v0  ;;  %v911_v61 = vmul.f32 %v3210_v26, %v623_v18  ;;  %v1015_v0 = vadd.f32 %v2301_v33, %v902_v4  ;;  %v1016_v18 = vadd.f32 %v2307_v39, %v903_v5 }
 0x1d9   : > { %v625_v12 = vpop.f32.mrf.mxu0  ;;  %v1117_v56 = vmax.f32 %v1021_v31, 0.0  ;;  %v1013_v4 = vadd.f32 %v2307_v39, %v900_v50  ;;  %v1004_v5 = vadd.f32 %v2307_v39, %v891_v38  ;;  %v1009_v31 = vadd.f32 %v2301_v33, %v896_v55 }
 0x1da   : > { %v1024_v32 = vadd.f32 %v2301_v33, %v911_v61  ;;  %v912_v36 = vmul.f32 %v3211_v41, %v625_v12  ;;  %v1118_v14 = vmax.f32 %v1022_v8, 0.0  ;;  %v1010_v61 = vadd.f32 %v2307_v39, %v897_v11 }
 0x1db   : > { %v1012_v8 = vadd.f32 %v2301_v33, %v899_v28  ;;  %v1111_v12 = vmax.f32 %v1015_v0, 0.0  ;;  %v1007_v40 = vadd.f32 %v2307_v39, %v894_v29  ;;  %v1112_v41 = vmax.f32 %v1016_v18, 0.0 }
 0x1dc   : > { %v1120_v34 = vmax.f32 %v1024_v32, 0.0  ;;  %v1025_v46 = vadd.f32 %v2307_v39, %v912_v36  ;;  %v1114_v32 = vmax.f32 %v1018_v2, 0.0  ;;  %v1115_v60 = vmax.f32 %v1019_v43, 0.0 }
 0x1dd   : > { %v1106_v11 = vmax.f32 %v1010_v61, 0.0  ;;  %v1109_v27 = vmax.f32 %v1013_v4, 0.0  ;;  %v884_v38 = vmul.f32 %v3210_v26, %v2910_v59  ;;  %v1003_v28 = vadd.f32 %v2301_v33, %v890_v13 }
 0x1de   : > { %v1121_v42 = vmax.f32 %v1025_v46, 0.0  ;;  %v1568_v36 = vpack.c.bf16 %v1120_v34, %v1117_v56  ;;  %v887_v46 = vmul.f32 %v3210_v26, %v2924_v15  ;;  %v1006_v50 = vadd.f32 %v2301_v33, %v893_v51 }
 0x1df   : > { %v1105_v55 = vmax.f32 %v1009_v31, 0.0  ;;  %v1108_v29 = vmax.f32 %v1012_v8, 0.0  ;;  %v1566_v0 = vpack.c.bf16 %v1114_v32, %v1111_v12  ;;  %v1100_v18 = vmax.f32 %v1004_v5, 0.0 }
 0x1e0   : > { %v1569_v1 = vpack.c.bf16 %v1121_v42, %v1118_v14  ;;  %v1001_v14 = vadd.f32 %v2307_v39, %v888_v24  ;;  %v1103_v2 = vmax.f32 %v1007_v40, 0.0  ;;  %v1567_v56 = vpack.c.bf16 %v1115_v60, %v1112_v41 }
 0x1e1   : > { %v1565_v59 = vpack.c.bf16 %v1109_v27, %v1106_v11  ;;  %v997_v6 = vadd.f32 %v2301_v33, %v884_v38  ;;  %v1000_v15 = vadd.f32 %v2301_v33, %v887_v46  ;;  %v1099_v26 = vmax.f32 %v1003_v28, 0.0 }
 0x1e2   : > { %1630 = vmatprep.subr.bf16.mxu1 %v1569_v1  ;;  %v1102_v43 = vmax.f32 %v1006_v50, 0.0  ;;  %v1564_v1 = vpack.c.bf16 %v1108_v29, %v1105_v55  ;;  %v1094_v34 = vmax.f32 %v998_v49, 0.0  ;;  %v1097_v13 = vmax.f32 %v1001_v14, 0.0 }
 0x1e3   : > { %1631 = vmatpush2.bf16.msra.mxu1 %v1568_v36  ;;  %v1563_v61 = vpack.c.bf16 %v1103_v2, %v1100_v18  ;;  %v1093_v4 = vmax.f32 %v997_v6, 0.0  ;;  %v1096_v51 = vmax.f32 %v1000_v15, 0.0 }
 0x1e4   : > { %1632 = vmatprep.subr.bf16.mxu1 %v1567_v56  ;;  %v1562_v39 = vpack.c.bf16 %v1102_v43, %v1099_v26  ;;  %v1561_v27 = vpack.c.bf16 %v1097_v13, %v1094_v34 }
 0x1e5   : > { %v1560_v24 = vpack.c.bf16 %v1096_v51, %v1093_v4 }
 0x1e7   : > { %1633 = vmatpush2.bf16.msra.mxu1 %v1566_v0 }
 0x1e8   : > { %1634 = vmatprep.subr.bf16.mxu1 %v1565_v59 }
 0x1eb   : > { %1635 = vmatpush2.bf16.msra.mxu1 %v1564_v1  ;;  %v2147_v1 = vmov 0.0  }
 0x1ec   : > { %1636 = vmatprep.subr.bf16.mxu1 %v1563_v61  ;;  %282 = vst [vmem:[#allocation2] sm:$0x3f] %v2147_v1  ;;  %283 = vst [vmem:[#allocation2 + $0x8] sm:$0x3f] %v2147_v1 }
 0x1ef   : > { %1637 = vmatpush2.bf16.msra.mxu1 %v1562_v39 }
 0x1f0   : > { %1638 = vmatprep.subr.bf16.mxu1 %v1561_v27 }
 0x1f3   : > { %1639 = vmatpush2.bf16.msra.mxu1 %v1560_v24 }
 0x219   : > { %v1342_v33 = vpop.xlane.xlu0 %1341 }
 0x21a   : > { %2050 = vrcp.f32 %v1342_v33 }
 0x21d   : > { %v1336_v5 = vpop.xlane.xlu0 %1335 }
 0x21e   : > { %2052 = vrcp.f32 %v1336_v5 }
 0x21f   : > { %v1345_v31 = vpop.xlane.xlu1 %1344 }
 0x220   : > { %2054 = vrcp.f32 %v1345_v31 }
 0x221   : > { %v1354_v42 = vpop.xlane.xlu0 %1353 }
 0x222   : > { %2056 = vrcp.f32 %v1354_v42 }
 0x223   : > { %v1339_v8 = vpop.xlane.xlu1 %1338 }
 0x224   : > { %2058 = vrcp.f32 %v1339_v8 }
 0x225   : > { %v1348_v12 = vpop.xlane.xlu0 %1347 }
 0x226   : > { %2060 = vrcp.f32 %v1348_v12 }
 0x227   : > { %v2051_v32 = vpop.eup %2050  ;;  %v1357_v36 = vpop.xlane.xlu1 %1356 }
 0x228   : > { %2062 = vrcp.f32 %v1357_v36  ;;  %v1435_v40 = vmul.f32 %v2051_v32, %v2780_v37 }
 0x229   : > { %v1366_v41 = vpop.xlane.xlu0 %1365 }
 0x22a   : > { %2064 = vrcp.f32 %v1366_v41  ;;  %1496 = vst.msk [vmem:[%s3012_s12 + $0x10] sm:$0xff] %vm1141_vm2, %v1435_v40 }
 0x22b   : > { %v2053_v60 = vpop.eup %2052  ;;  %v1351_v11 = vpop.xlane.xlu1 %1350 }
 0x22c   : > { %2066 = vrcp.f32 %v1351_v11  ;;  %v1431_v38 = vmul.f32 %v2053_v60, %v2786_v57 }
 0x22d   : > { %v2055_v49 = vpop.eup %2054  ;;  %v1360_v46 = vpop.xlane.xlu0 %1359 }
 0x22e   : > { %2068 = vrcp.f32 %v1360_v46  ;;  %1494 = vst.msk [vmem:[%s3012_s12] sm:$0xff] %vm1141_vm2, %v1431_v38  ;;  %v1437_v28 = vmul.f32 %v2055_v49, %v2794_v54 }
 0x22f   : > { %v2057_v37 = vpop.eup %2056  ;;  %v1369_v50 = vpop.xlane.xlu1 %1368 }
 0x230   : > { %2070 = vrcp.f32 %v1369_v50  ;;  %1497 = vst.msk [vmem:[%s3012_s12 + $0x18] sm:$0xff] %vm1141_vm2, %v1437_v28  ;;  %v1443_v55 = vmul.f32 %v2057_v37, %v2798_v16  ;;  %v1529_v6 = vpack.c.bf16 %v1437_v28, %v1435_v40 }
 0x231   : > { %v2059_v29 = vpop.eup %2058 }
 0x232   : > { %v1433_v0 = vmul.f32 %v2059_v29, %v2806_v52  ;;  %1500 = vst.msk [vmem:[%s3012_s12 + $0x30] sm:$0xff] %vm1141_vm2, %v1443_v55 }
 0x233   : > { %v2061_v57 = vpop.eup %2060  ;;  %v1363_v14 = vpop.xlane.xlu1 %1362 }
 0x234   : > { %v1372_v18 = vpop.xlane.xlu0 %1371  ;;  %2072 = vrcp.f32 %v1363_v14  ;;  %v1528_v2 = vpack.c.bf16 %v1433_v0, %v1431_v38  ;;  %1495 = vst.msk [vmem:[%s3012_s12 + $0x8] sm:$0xff] %vm1141_vm2, %v1433_v0  ;;  %v1439_v54 = vmul.f32 %v2061_v57, %v2810_v9 }
 0x235   : > { %v2063_v56 = vpop.eup %2062  ;;  %2074 = vrcp.f32 %v1372_v18 }
 0x236   : > { %1576 = vxpose.xlu1.c.b16.start [1/8] (narrow) %v1528_v2, 16  ;;  %1498 = vst.msk [vmem:[%s3012_s12 + $0x20] sm:$0xff] %vm1141_vm2, %v1439_v54  ;;  %v1445_v16 = vmul.f32 %v2063_v56, %v2816_v21 }
 0x237   : > { %v2065_v52 = vpop.eup %2064 }
 0x238   : > { %v1375_v59 = vpop.xlane.xlu1 %1374  ;;  %1501 = vst.msk [vmem:[%s3012_s12 + $0x38] sm:$0xff] %vm1141_vm2, %v1445_v16  ;;  %v1451_v15 = vmul.f32 %v2065_v52, %v2822_v44  ;;  %v1531_v51 = vpack.c.bf16 %v1445_v16, %v1443_v55 }
 0x239   : > { %2076 = vrcp.f32 %v1375_v59  ;;  %v2067_v26 = vpop.eup %2066 }
 0x23a   : > { %v1390_v43 = vpop.xlane.xlu0 %1389  ;;  %1577 = vxpose.xlu1.c.b16.cont [2/8] (narrow) %v1529_v6, 16  ;;  %v1441_v9 = vmul.f32 %v2067_v26, %v2826_v3  ;;  %1504 = vst.msk [vmem:[%s3012_s12 + $0x50] sm:$0xff] %vm1141_vm2, %v1451_v15 }
 0x23b   : > { %2078 = vrcp.f32 %v1390_v43  ;;  %v2069_v21 = vpop.eup %2068 }
 0x23c   : > { %v1530_v34 = vpack.c.bf16 %v1441_v9, %v1439_v54  ;;  %1499 = vst.msk [vmem:[%s3012_s12 + $0x28] sm:$0xff] %vm1141_vm2, %v1441_v9  ;;  %v1447_v13 = vmul.f32 %v2069_v21, %v2834_v20 }
 0x23d   : > { %v2071_v44 = vpop.eup %2070 }
 0x23e   : > { %v1384_v61 = vpop.xlane.xlu0 %1383  ;;  %1578 = vxpose.xlu1.c.b16.cont [3/8] (narrow) %v1530_v34, 16  ;;  %1502 = vst.msk [vmem:[%s3012_s12 + $0x40] sm:$0xff] %vm1141_vm2, %v1447_v13  ;;  %v1453_v3 = vmul.f32 %v2071_v44, %v2838_v23  ;;  %v3212_v34 = vld [vmem:[#allocation5_spill] sm:$0xff]  ;;  %v3213_v44 = vld [vmem:[#allocation7_spill] sm:$0xff] }
 0x23f   : > { %2080 = vrcp.f32 %v1384_v61  ;;  %v1393_v4 = vpop.xlane.xlu1 %1392 }
 0x240   : > { %2082 = vrcp.f32 %v1393_v4  ;;  %1505 = vst.msk [vmem:[%s3012_s12 + $0x58] sm:$0xff] %vm1141_vm2, %v1453_v3  ;;  %v1533_v32 = vpack.c.bf16 %v1453_v3, %v1451_v15  ;;  %v3214_v3 = vld [vmem:[#allocation6_spill] sm:$0xff] }
 0x241   : > { %v2073_v39 = vpop.eup %2072 }
 0x242   : > { %v2075_v27 = vpop.eup %2074  ;;  %1579 = vxpose.xlu1.c.b16.cont [4/8] (narrow) %v1531_v51, 16  ;;  %v1449_v20 = vmul.f32 %v2073_v39, %v2844_v58  ;;  %v3215_v39 = vld [vmem:[#allocation8_spill] sm:$0xff] }
 0x243   : > { %v1387_v24 = vpop.xlane.xlu1 %1386  ;;  %v1455_v33 = vmul.f32 %v2075_v27, %v2846_v25 }
 0x244   : > { %2084 = vrcp.f32 %v1387_v24  ;;  %v1532_v5 = vpack.c.bf16 %v1449_v20, %v1447_v13  ;;  %1503 = vst.msk [vmem:[%s3012_s12 + $0x48] sm:$0xff] %vm1141_vm2, %v1449_v20 }
 0x245   : > { %1506 = vst.msk [vmem:[%s3012_s12 + $0x60] sm:$0xff] %vm1141_vm2, %v1455_v33 }
 0x246   : > { %v2077_v31 = vpop.eup %2076  ;;  %v1402_v23 = vpop.xlane.xlu0 %1401  ;;  %1580 = vxpose.xlu1.c.b16.cont [5/8] (narrow) %v1532_v5, 16  ;;  %v3216_v5 = vld [vmem:[#allocation9_spill] sm:$0xff] }
 0x247   : > { %2086 = vrcp.f32 %v1402_v23  ;;  %v1405_v42 = vpop.xlane.xlu1 %1404  ;;  %v1457_v8 = vmul.f32 %v2077_v31, %v2856_v7  ;;  %v3217_v23 = vld [vmem:[#allocation10_spill] sm:$0xff] }
 0x248   : > { %v2079_v12 = vpop.eup %2078  ;;  %2088 = vrcp.f32 %v1405_v42 }
 0x249   : > { %1507 = vst.msk [vmem:[%s3012_s12 + $0x68] sm:$0xff] %vm1141_vm2, %v1457_v8  ;;  %v1467_v58 = vmul.f32 %v2079_v12, %v2864_v35  ;;  %v1534_v60 = vpack.c.bf16 %v1457_v8, %v1455_v33 }
 0x24a   : > { %v1396_v25 = vpop.xlane.xlu0 %1395  ;;  %1581 = vxpose.xlu1.c.b16.cont [6/8] (narrow) %v1533_v32, 16 }
 0x24b   : > { %2090 = vrcp.f32 %v1396_v25  ;;  %v1399_v36 = vpop.xlane.xlu1 %1398  ;;  %1512 = vst.msk [vmem:[%s3012_s12 + $0x90] sm:$0xff] %vm1141_vm2, %v1467_v58  ;;  %v1526_v25 = vld [vmem:[#allocation2] sm:$0x3f] }
 0x24c   : > { %v2081_v40 = vpop.eup %2080  ;;  %2092 = vrcp.f32 %v1399_v36 }
 0x24d   : > { %v2083_v41 = vpop.eup %2082  ;;  %v1463_v7 = vmul.f32 %v2081_v40, %v2872_v47  ;;  %v1527_v40 = vld [vmem:[#allocation2 + $0x8] sm:$0x3f] }
 0x24e   : > { %v1414_v11 = vpop.xlane.xlu0 %1413  ;;  %v1469_v38 = vmul.f32 %v2083_v41, %v2874_v53  ;;  %1582 = vxpose.xlu1.c.b16.cont [7/8] (narrow) %v1534_v60, 16 }
 0x24f   : > { %2094 = vrcp.f32 %v1414_v11  ;;  %v1417_v35 = vpop.xlane.xlu1 %1416  ;;  %1510 = vst.msk [vmem:[%s3012_s12 + $0x80] sm:$0xff] %vm1141_vm2, %v1463_v7 }
 0x250   : > { %2096 = vrcp.f32 %v1417_v35  ;;  %1513 = vst.msk [vmem:[%s3012_s12 + $0x98] sm:$0xff] %vm1141_vm2, %v1469_v38  ;;  %v1537_v14 = vpack.c.bf16 %v1469_v38, %v1467_v58 }
 0x251   : > { %v2085_v49 = vpop.eup %2084 }
 0x252   : > { %v1408_v46 = vpop.xlane.xlu0 %1407  ;;  %v1465_v28 = vmul.f32 %v2085_v49, %v2884_v45 }
 0x253   : > { %2098 = vrcp.f32 %v1408_v46  ;;  %v1411_v37 = vpop.xlane.xlu1 %1410 }
 0x254   : > { %v2087_v47 = vpop.eup %2086  ;;  %2100 = vrcp.f32 %v1411_v37  ;;  %v1536_v50 = vpack.c.bf16 %v1465_v28, %v1463_v7  ;;  %1511 = vst.msk [vmem:[%s3012_s12 + $0x88] sm:$0xff] %vm1141_vm2, %v1465_v28 }
 0x255   : > { %v2089_v53 = vpop.eup %2088  ;;  %v1475_v55 = vmul.f32 %v2087_v47, %v2892_v10 }
 0x256   : > { %1592 = vxpose.xlu0.c.b16.start [1/8] (narrow) %v1536_v50, 16  ;;  %v1426_v29 = vpop.xlane.xlu0 %1425  ;;  %v1477_v0 = vmul.f32 %v2089_v53, %v2894_v62 }
 0x257   : > { %2102 = vrcp.f32 %v1426_v29  ;;  %v1429_v57 = vpop.xlane.xlu1 %1428  ;;  %1516 = vst.msk [vmem:[%s3012_s12 + $0xb0] sm:$0xff] %vm1141_vm2, %v1475_v55 }
 0x258   : > { %v2091_v45 = vpop.eup %2090  ;;  %2104 = vrcp.f32 %v1429_v57  ;;  %1517 = vst.msk [vmem:[%s3012_s12 + $0xb8] sm:$0xff] %vm1141_vm2, %v1477_v0  ;;  %v1539_v26 = vpack.c.bf16 %v1477_v0, %v1475_v55 }
 0x259   : > { %v2093_v18 = vpop.eup %2092  ;;  %v1471_v2 = vmul.f32 %v2091_v45, %v2904_v22 }
 0x25a   : > { %1593 = vxpose.xlu0.c.b16.cont [2/8] (narrow) %v1537_v14, 16  ;;  %v1420_v10 = vpop.xlane.xlu0 %1419  ;;  %v1473_v54 = vmul.f32 %v2093_v18, %v2906_v30 }
 0x25b   : > { %2106 = vrcp.f32 %v1420_v10  ;;  %v1423_v62 = vpop.xlane.xlu1 %1422  ;;  %1514 = vst.msk [vmem:[%s3012_s12 + $0xa0] sm:$0xff] %vm1141_vm2, %v1471_v2 }
 0x25c   : > { %v2095_v56 = vpop.eup %2094  ;;  %2108 = vrcp.f32 %v1423_v62  ;;  %v1538_v16 = vpack.c.bf16 %v1473_v54, %v1471_v2  ;;  %1515 = vst.msk [vmem:[%s3012_s12 + $0xa8] sm:$0xff] %vm1141_vm2, %v1473_v54 }
 0x25d   : > { %v2097_v52 = vpop.eup %2096  ;;  %v1483_v59 = vmul.f32 %v2095_v56, %v2918_v19 }
 0x25e   : > { %1594 = vxpose.xlu0.c.b16.cont [3/8] (narrow) %v1538_v16, 16  ;;  %v1378_v22 = vpop.xlane.xlu0 %1377  ;;  %v1485_v6 = vmul.f32 %v2097_v52, %v2920_v48 }
 0x25f   : > { %2110 = vrcp.f32 %v1378_v22  ;;  %v1381_v30 = vpop.xlane.xlu1 %1380  ;;  %1520 = vst.msk [vmem:[%s3012_s12 + $0xd0] sm:$0xff] %vm1141_vm2, %v1483_v59 }
 0x260   : > { %v2099_v15 = vpop.eup %2098  ;;  %2112 = vrcp.f32 %v1381_v30  ;;  %1521 = vst.msk [vmem:[%s3012_s12 + $0xd8] sm:$0xff] %vm1141_vm2, %v1485_v6  ;;  %v1541_v4 = vpack.c.bf16 %v1485_v6, %v1483_v59 }
 0x261   : > { %v2101_v43 = vpop.eup %2100  ;;  %v1479_v9 = vmul.f32 %v2099_v15, %v2930_v17 }
 0x262   : > { %1595 = vxpose.xlu0.c.b16.cont [4/8] (narrow) %v1539_v26, 16  ;;  %v1481_v19 = vmul.f32 %v2101_v43, %v2932_v63 }
 0x263   : > { %1518 = vst.msk [vmem:[%s3012_s12 + $0xc0] sm:$0xff] %vm1141_vm2, %v1479_v9 }
 0x264   : > { %v2103_v48 = vpop.eup %2102  ;;  %v1540_v1 = vpack.c.bf16 %v1481_v19, %v1479_v9  ;;  %1519 = vst.msk [vmem:[%s3012_s12 + $0xc8] sm:$0xff] %vm1141_vm2, %v1481_v19 }
 0x265   : > { %v2105_v21 = vpop.eup %2104  ;;  %v1491_v13 = vmul.f32 %v2103_v48, %v3212_v34 }
 0x266   : > { %1596 = vxpose.xlu0.c.b16.cont [5/8] (narrow) %v1540_v1, 16  ;;  %v1493_v61 = vmul.f32 %v2105_v21, %v3213_v44 }
 0x267   : > { %1524 = vst.msk [vmem:[%s3012_s12 + $0xf0] sm:$0xff] %vm1141_vm2, %v1491_v13 }
 0x268   : > { %v2107_v17 = vpop.eup %2106  ;;  %1525 = vst.msk [vmem:[%s3012_s12 + $0xf8] sm:$0xff] %vm1141_vm2, %v1493_v61  ;;  %v1543_v8 = vpack.c.bf16 %v1493_v61, %v1491_v13 }
 0x269   : > { %v2109_v63 = vpop.eup %2108  ;;  %v1487_v51 = vmul.f32 %v2107_v17, %v3214_v3 }
 0x26a   : > { %1597 = vxpose.xlu0.c.b16.cont [6/8] (narrow) %v1541_v4, 16  ;;  %v1489_v27 = vmul.f32 %v2109_v63, %v3215_v39 }
 0x26b   : > { %1522 = vst.msk [vmem:[%s3012_s12 + $0xe0] sm:$0xff] %vm1141_vm2, %v1487_v51 }
 0x26c   : > { %v2111_v24 = vpop.eup %2110  ;;  %v1542_v20 = vpack.c.bf16 %v1489_v27, %v1487_v51  ;;  %1523 = vst.msk [vmem:[%s3012_s12 + $0xe8] sm:$0xff] %vm1141_vm2, %v1489_v27 }
 0x26d   : > { %v2113_v33 = vpop.eup %2112  ;;  %v1459_v31 = vmul.f32 %v2111_v24, %v3216_v5 }
 0x26e   : > { %1598 = vxpose.xlu0.c.b16.cont [7/8] (narrow) %v1542_v20, 16  ;;  %v1461_v42 = vmul.f32 %v2113_v33, %v3217_v23 }
 0x26f   : > { %1508 = vst.msk [vmem:[%s3012_s12 + $0x70] sm:$0xff] %vm1141_vm2, %v1459_v31 }
 0x270   : > { %v1535_v12 = vpack.c.bf16 %v1461_v42, %v1459_v31  ;;  %1509 = vst.msk [vmem:[%s3012_s12 + $0x78] sm:$0xff] %vm1141_vm2, %v1461_v42 }
 0x272   : > { %1599 = vxpose.xlu0.c.b16.end [8/8] (narrow) %v1543_v8, 16  ;;  %1583 = vxpose.xlu1.c.b16.end [8/8] (narrow) %v1535_v12, 16 }
 0x2b8   : > { %v1600_v32 = vpop.trf.xlu0  ;;  %v1584_v58 = vpop.trf.xlu1 }
 0x2b9   : > { %1640 = vmatprep.mubr.bf16.mxu1 %v1600_v32 }
 0x2ba   : > { %1641 = vmatmul.mubr.bf16.vlgmr.msra.gmra.mxu1 %v1584_v58 }
 0x37a   : > { %v1642_v36 = vpop.f32.mrf.mxu1 }
 0x37b   : > { %v1649_v41 = vadd.f32 %v1642_v36, %v1526_v25 }
 0x37c   : > { %v1644_v60 = vpop.f32.mrf.mxu1 }
 0x37d   : > { %1651 = vst [vmem:[#allocation2] sm:$0x3f] %v1649_v41  ;;  %v1650_v7 = vadd.f32 %v1644_v60, %v1527_v40 }
 0x37e   : > { %v1646_v11 = vpop.f32.mrf.mxu1 }
 0x37f   : > { %1652 = vst [vmem:[#allocation2 + $0x8] sm:$0x3f] %v1650_v7 }
 0x380   : > { %v1647_v38 = vpop.f32.mrf.mxu1 }
 0x384   : > { %v1656_v35 = vld [vmem:[#allocation2] sm:$0x3f] }
 0x385   : > { %v1659_v49 = vsel %vm1658_vm3, %v1656_v35, -inf }
 0x386   : > { %v1660_v46 = vrot.slane %v1659_v49, 4  ;;  %v1657_v28 = vld [vmem:[#allocation2 + $0x8] sm:$0x3f] }
 0x387   : > { %v1666_v37 = vsel %vm1658_vm3, %v1657_v28, -inf }
 0x388   : > { %v1661_v47 = vmax.f32 %v1659_v49, %v1660_v46  ;;  %v1667_v50 = vrot.slane %v1666_v37, 4 }
 0x38a   : > { %v1662_v53 = vrot.slane %v1661_v47, 2  ;;  %v1668_v55 = vmax.f32 %v1666_v37, %v1667_v50 }
 0x38c   : > { %v1663_v29 = vmax.f32 %v1661_v47, %v1662_v53  ;;  %v1669_v0 = vrot.slane %v1668_v55, 2 }
 0x38e   : > { %v1664_v57 = vrot.slane %v1663_v29, 1  ;;  %v1670_v45 = vmax.f32 %v1668_v55, %v1669_v0 }
 0x390   : > { %v1665_v14 = vmax.f32 %v1663_v29, %v1664_v57  ;;  %v1671_v18 = vrot.slane %v1670_v45, 1 }
 0x392   : > { %v1673_v2 = vsub.f32 %v1656_v35, %v1665_v14  ;;  %v1672_v10 = vmax.f32 %v1670_v45, %v1671_v18 }
 0x394   : > { %v1675_v54 = vmul.f32 1.442695, %v1673_v2  ;;  %v1674_v62 = vsub.f32 %v1657_v28, %v1672_v10 }
 0x396   : > { %2114 = vpow2.f32 %v1675_v54  ;;  %v1677_v56 = vmul.f32 1.442695, %v1674_v62 }
 0x398   : > { %2116 = vpow2.f32 %v1677_v56 }
 0x3a3   : > { %v2115_v16 = vpop.eup %2114 }
 0x3a4   : > { %v1679_v52 = vsel %vm1658_vm3, %v2115_v16, 0.0 }
 0x3a5   : > { %v2117_v59 = vpop.eup %2116  ;;  %v1680_v22 = vrot.slane %v1679_v52, 4 }
 0x3a6   : > { %v1686_v6 = vsel %vm1658_vm3, %v2117_v59, 0.0 }
 0x3a7   : > { %v1681_v30 = vadd.f32 %v1680_v22, %v1679_v52  ;;  %v1687_v15 = vrot.slane %v1686_v6, 4 }
 0x3a9   : > { %v1682_v26 = vrot.slane %v1681_v30, 2  ;;  %v1688_v43 = vadd.f32 %v1687_v15, %v1686_v6 }
 0x3ab   : > { %v1683_v9 = vadd.f32 %v1682_v26, %v1681_v30  ;;  %v1689_v19 = vrot.slane %v1688_v43, 2 }
 0x3ad   : > { %v1684_v48 = vrot.slane %v1683_v9, 1  ;;  %v1690_v1 = vadd.f32 %v1689_v19, %v1688_v43 }
 0x3af   : > { %v1685_v21 = vadd.f32 %v1684_v48, %v1683_v9  ;;  %v1691_v34 = vrot.slane %v1690_v1, 1 }
 0x3b1   : > { %2118 = vrcp.f32 %v1685_v21  ;;  %v1692_v13 = vadd.f32 %v1691_v34, %v1690_v1 }
 0x3b3   : > { %2120 = vrcp.f32 %v1692_v13 }
 0x3be   : > { %v2119_v44 = vpop.eup %2118 }
 0x3bf   : > { %v1694_v61 = vmul.f32 %v2119_v44, %v2115_v16 }
 0x3c0   : > { %v2121_v17 = vpop.eup %2120 }
 0x3c1   : > { %1697 = vst [vmem:[%s276_s16] sm:$0x3f] %v1694_v61  ;;  %v1696_v4 = vmul.f32 %v2121_v17, %v2117_v59 }
 0x3c3   : > { %1698 = vst [vmem:[%s276_s16 + $0x8] sm:$0x3f] %v1696_v4 }
 0x3c4 PF: > { %s16_s20 = sadd.s32 1, %s2144_s20   ;;  %s3218_s18 = smov %s2140_s19 }
 0x3c5   : > { %p13_p5 = scmp.ge.s32.totalorder %s16_s20, 4   ;;  %s3219_s19 = smov %s3221_s21 }
 0x3c7   :  { %15 = sbr.rel (!%p13_p5) target bundleno = 2 (0x2), region = 86 }

// kernel: caa_forward.5
= control target key start
LH: loop header
LB: loop body
LE: loop exit
PB: predicated region body
PF: predicated region fallthrough
CT: control target
= control target key end

     0   :  { %s2482_s13 = smov 0   ;;  %s2484_s14 = smov 0   ;;  %s2918_s0 = inlined_call_operand.vmem [shape: f32[2,256,6], index: 0, kind: input, shape index: {}]   ;;  %s2919_s1 = inlined_call_operand.vmem [shape: bf16[2,6,256], index: 1, kind: input, shape index: {}]   ;;  %s2920_s2 = inlined_call_operand.vmem [shape: bf16[2,256,8], index: 2, kind: input, shape index: {}]   ;;  %s2921_s3 = inlined_call_operand.vmem [shape: bf16[256,8], index: 3, kind: input, shape index: {}]   ;;  %s2922_s4 = inlined_call_operand.vmem [shape: f32[1,8], index: 4, kind: input, shape index: {}]   ;;  %s2923_s5 = inlined_call_operand.vmem [shape: f32[1,8], index: 5, kind: input, shape index: {}]   ;;  %s2924_s6 = inlined_call_operand.vmem [shape: bf16[8,8], index: 6, kind: input, shape index: {}]   ;;  %s2925_s7 = inlined_call_operand.vmem [shape: bf16[8,8], index: 7, kind: input, shape index: {}]   ;;  %s2926_s8 = inlined_call_operand.vmem [shape: f32[1,8], index: 8, kind: input, shape index: {}]   ;;  %s2927_s9 = inlined_call_operand.vmem [shape: f32[1,8], index: 9, kind: input, shape index: {}]   ;;  %s2928_s10 = inlined_call_operand.vmem [shape: f32[2,256,8], index: 10, kind: output, shape index: {}]  }
   0x1   :  { %s2486_s15 = smov 0  }
   0x2 LB: > { %s32_s16 = sadd.s32 1, %s2420_s14  ;;  %p2009_p0 = scmp.ge.s32.totalorder %s2424_s15, 1  ;;  %s2424_s15 = sphi %s2486_s15, %s20_s15   ;;  %s2420_s14 = sphi %s2484_s14, %s2930_s14   ;;  %s2416_s13 = sphi %s2482_s13, %s2929_s13  }
   0x3   : > { %p34_p1 = scmp.ge.s32.totalorder %s32_s16, 2  ;;  %p360_p2 = scmp.lt.s32.totalorder %s2424_s15, 3 }
   0x5   : > { %s2932_s16 = smov (%p34_p1, %s32_s16), 0  ;;  %p361_p3 = pnand %p2009_p0, %p360_p2 }
   0x6   : > { %p421_p4 = scmp.lt.s32.totalorder (!%p361_p3), %s2416_s13, 1 }
   0x7   : > { %364 = sbr.rel (%p361_p3) target bundleno = 761 (0x2f9), region = 60 }
   0xc   : > { %v2426_v0 = vmov 0   ;;  %s2934_s13 = smov (!%p421_p4, %s2416_s13), 1  ;;  %v2370_v1 = vld [vmem:[%s2921_s3 + $0x78] sm:$0xff]   ;;  %vm559_vm0 = vcmask 1042432   ;;  %v2372_v8 = vld [vmem:[%s2921_s3 + $0x70] sm:$0xff]   ;;  %vm510_vm1 = vcmask 48128  }
   0xd   : > { %598 = vmatprep.mubr.bf16.mxu0 %v2426_v0  ;;  %s2107_s17 = sshll.u32 %s2934_s13, 8  ;;  %s2108_s18 = sshll.u32 %s2934_s13, 3  ;;  %v2371_v2 = vld [vmem:[%s2921_s3 + $0x38] sm:$0xff]   ;;  %2325 = vmatprep.subr.bf16.mxu1 %v2370_v1  ;;  %v2373_v14 = vld [vmem:[%s2921_s3 + $0x30] sm:$0xff]   ;;  %v2374_v15 = vld [vmem:[%s2921_s3 + $0x68] sm:$0xff]   ;;  %vm1369_vm2 = vcmask 1043456  }
   0xe   : > { %s2510_s21 = scalar_lea.vmem %s2918_s0, %s2107_s17  ;;  %s434_s24 = scalar_lea.vmem %s2919_s1, %s2108_s18  ;;  %2333 = vmatpush3.bf16.msra.mxu1 %v2371_v2  ;;  %v2375_v16 = vld [vmem:[%s2921_s3 + $0x28] sm:$0xff]   ;;  %v2376_v17 = vld [vmem:[%s2921_s3 + $0x60] sm:$0xff]   ;;  %v2378_v21 = vld [vmem:[%s2921_s3 + $0x58] sm:$0xff]   ;;  %vm1320_vm3 = vcmask 64512  }
   0xf   : > { %v504_v3 = vld [vmem:[%s434_s24] sm:$0x77]  ;;  %v457_v5 = vld [vmem:[%s2510_s21 + $0x8] sm:$0xff]  ;;  %2326 = vmatprep.subr.bf16.mxu1 %v2372_v8  ;;  %v458_v11 = vld [vmem:[%s2510_s21 + $0x10] sm:$0xff]  ;;  %s2109_s25 = sshll.u32 %s2934_s13, 7  ;;  %s2782_s12 = scalar_lea.vmem %s2928_s10, %s2107_s17 }
  0x10   : > { %v456_v4 = vld [vmem:[%s2510_s21] sm:$0xff]  ;;  %v2019_v6 = vcombine.high %v504_v3, %v504_v3  ;;  %v2018_v7 = vcombine.low %v504_v3, %v504_v3  ;;  %v459_v12 = vld [vmem:[%s2510_s21 + $0x18] sm:$0xff]  ;;  %v461_v19 = vld [vmem:[%s2510_s21 + $0x28] sm:$0xff]  ;;  %s2559_s19 = scalar_lea.vmem %s2920_s2, %s2109_s25 }
  0x11   : > { %v488_v10 = vpack.c.bf16 %v457_v5, %v456_v4  ;;  %v489_v13 = vpack.c.bf16 %v459_v12, %v458_v11  ;;  %v460_v18 = vld [vmem:[%s2510_s21 + $0x20] sm:$0xff]  ;;  %v2379_v23 = vld [vmem:[%s2921_s3 + $0x18] sm:$0xff]   ;;  %v2380_v24 = vld [vmem:[%s2921_s3 + $0x50] sm:$0xff]  }
  0x12   : > { %2020 = vmatprep.subr.msk.bf16.mxu0 %vm559_vm0, %v2019_v6  ;;  %v561_v9 = vsel %vm559_vm0, %v2018_v7, 0  ;;  %2334 = vmatpush3.bf16.msra.mxu1 %v2373_v14  ;;  %v2377_v20 = vld [vmem:[%s2921_s3 + $0x20] sm:$0xff]   ;;  %v490_v22 = vpack.c.bf16 %v461_v19, %v460_v18  ;;  %v462_v25 = vld [vmem:[%s2510_s21 + $0x30] sm:$0xff]  ;;  %v463_v26 = vld [vmem:[%s2510_s21 + $0x38] sm:$0xff] }
  0x13   : > { %581 = vmatpush1.bf16.msra.mxu0 %v561_v9  ;;  %2327 = vmatprep.subr.bf16.mxu1 %v2374_v15  ;;  %v2381_v27 = vld [vmem:[%s2921_s3 + $0x10] sm:$0xff]   ;;  %v491_v28 = vpack.c.bf16 %v463_v26, %v462_v25  ;;  %v464_v29 = vld [vmem:[%s2510_s21 + $0x40] sm:$0xff]  ;;  %v465_v30 = vld [vmem:[%s2510_s21 + $0x48] sm:$0xff] }
  0x14   : > { %2111 = vmatprep.subr.bf16.mxu0 %v2370_v1  ;;  %v492_v31 = vpack.c.bf16 %v465_v30, %v464_v29  ;;  %v466_v32 = vld [vmem:[%s2510_s21 + $0x50] sm:$0xff]  ;;  %v467_v33 = vld [vmem:[%s2510_s21 + $0x58] sm:$0xff]  ;;  %v468_v35 = vld [vmem:[%s2510_s21 + $0x60] sm:$0xff] }
  0x15   : > { %v493_v34 = vpack.c.bf16 %v467_v33, %v466_v32  ;;  %v469_v36 = vld [vmem:[%s2510_s21 + $0x68] sm:$0xff]  ;;  %v470_v38 = vld [vmem:[%s2510_s21 + $0x70] sm:$0xff]  ;;  %v471_v39 = vld [vmem:[%s2510_s21 + $0x78] sm:$0xff] }
  0x16   : > { %2021 = vmatmul.mubr.msk.bf16.vlgmr.msra.gmra.mxu0 %vm510_vm1, %v488_v10  ;;  %2335 = vmatpush3.bf16.msra.mxu1 %v2375_v16  ;;  %v494_v37 = vpack.c.bf16 %v469_v36, %v468_v35  ;;  %v495_v40 = vpack.c.bf16 %v471_v39, %v470_v38  ;;  %v472_v41 = vld [vmem:[%s2510_s21 + $0x80] sm:$0xff]  ;;  %v473_v42 = vld [vmem:[%s2510_s21 + $0x88] sm:$0xff]  ;;  %v474_v45 = vld [vmem:[%s2510_s21 + $0x90] sm:$0xff] }
  0x17   : > { %608 = vmatprep.mubr.bf16.mxu0 %v2426_v0  ;;  %2112 = vmatpush3.bf16.msra.mxu0 %v2371_v2  ;;  %v496_v43 = vpack.c.bf16 %v473_v42, %v472_v41  ;;  %v2382_v44 = vld [vmem:[%s2921_s3 + $0x48] sm:$0xff]   ;;  %v475_v46 = vld [vmem:[%s2510_s21 + $0x98] sm:$0xff]  ;;  %v2384_v49 = vld [vmem:[%s2921_s3 + $0x40] sm:$0xff]  }
  0x18   : > { %2113 = vmatprep.subr.bf16.mxu0 %v2372_v8  ;;  %2328 = vmatprep.subr.bf16.mxu1 %v2376_v17  ;;  %v2383_v47 = vld [vmem:[%s2921_s3 + $0x8] sm:$0xff]   ;;  %v497_v48 = vpack.c.bf16 %v475_v46, %v474_v45  ;;  %v2385_v50 = vld [vmem:[%s2921_s3] sm:$0xff]   ;;  %v478_v54 = vld [vmem:[%s2510_s21 + $0xb0] sm:$0xff] }
  0x19   : > { %v476_v51 = vld [vmem:[%s2510_s21 + $0xa0] sm:$0xff]  ;;  %v477_v52 = vld [vmem:[%s2510_s21 + $0xa8] sm:$0xff]  ;;  %v479_v55 = vld [vmem:[%s2510_s21 + $0xb8] sm:$0xff] }
  0x1a   : > { %2336 = vmatpush3.bf16.msra.mxu1 %v2377_v20  ;;  %v498_v53 = vpack.c.bf16 %v477_v52, %v476_v51  ;;  %v499_v56 = vpack.c.bf16 %v479_v55, %v478_v54  ;;  %v480_v57 = vld [vmem:[%s2510_s21 + $0xc0] sm:$0xff]  ;;  %v481_v58 = vld [vmem:[%s2510_s21 + $0xc8] sm:$0xff]  ;;  %v482_v60 = vld [vmem:[%s2510_s21 + $0xd0] sm:$0xff] }
  0x1b   : > { %2114 = vmatpush3.bf16.msra.mxu0 %v2373_v14  ;;  %2329 = vmatprep.subr.bf16.mxu1 %v2378_v21  ;;  %v500_v59 = vpack.c.bf16 %v481_v58, %v480_v57  ;;  %v483_v61 = vld [vmem:[%s2510_s21 + $0xd8] sm:$0xff]  ;;  %v484_v63 = vld [vmem:[%s2510_s21 + $0xe0] sm:$0xff]  ;;  %v485_v1 = vld [vmem:[%s2510_s21 + $0xe8] sm:$0xff] }
  0x1c   : > { %2115 = vmatprep.subr.bf16.mxu0 %v2374_v15  ;;  %v501_v62 = vpack.c.bf16 %v483_v61, %v482_v60  ;;  %v502_v2 = vpack.c.bf16 %v485_v1, %v484_v63  ;;  %v486_v3 = vld [vmem:[%s2510_s21 + $0xf0] sm:$0xff]  ;;  %v487_v4 = vld [vmem:[%s2510_s21 + $0xf8] sm:$0xff]  ;;  %v1206_v8 = vld [vmem:[%s2924_s6] sm:$0xf] }
  0x1d   : > { %v503_v5 = vpack.c.bf16 %v487_v4, %v486_v3  ;;  %v1583_v19 = vsel %vm1369_vm2, %v1206_v8, 0 }
  0x1e   : > { %2022 = vmatmul.mubr.msk.bf16.gmra.mxu0 %vm510_vm1, %v489_v13  ;;  %2337 = vmatpush3.bf16.msra.mxu1 %v2379_v23 }
  0x1f   : > { %618 = vmatprep.mubr.bf16.mxu0 %v2426_v0  ;;  %2116 = vmatpush3.bf16.msra.mxu0 %v2375_v16 }
  0x20   : > { %2117 = vmatprep.subr.bf16.mxu0 %v2376_v17  ;;  %2330 = vmatprep.subr.bf16.mxu1 %v2380_v24 }
  0x22   : > { %2338 = vmatpush3.bf16.msra.mxu1 %v2381_v27 }
  0x23   : > { %2118 = vmatpush3.bf16.msra.mxu0 %v2377_v20  ;;  %2331 = vmatprep.subr.bf16.mxu1 %v2382_v44 }
  0x24   : > { %2119 = vmatprep.subr.bf16.mxu0 %v2378_v21 }
  0x26   : > { %2023 = vmatmul.mubr.msk.bf16.gmra.mxu0 %vm510_vm1, %v490_v22  ;;  %2339 = vmatpush3.bf16.msra.mxu1 %v2383_v47 }
  0x27   : > { %628 = vmatprep.mubr.bf16.mxu0 %v2426_v0  ;;  %2120 = vmatpush3.bf16.msra.mxu0 %v2379_v23 }
  0x28   : > { %2121 = vmatprep.subr.bf16.mxu0 %v2380_v24  ;;  %2332 = vmatprep.subr.bf16.mxu1 %v2384_v49 }
  0x2a   : > { %2340 = vmatpush3.bf16.msra.mxu1 %v2385_v50 }
  0x2b   : > { %2122 = vmatpush3.bf16.msra.mxu0 %v2381_v27  ;;  %2342 = vmatprep.subr.msk.bf16.mxu1 %vm1369_vm2, %v1206_v8 }
  0x2c   : > { %2123 = vmatprep.subr.bf16.mxu0 %v2382_v44 }
  0x2e   : > { %2024 = vmatmul.mubr.msk.bf16.gmra.mxu0 %vm510_vm1, %v491_v28 }
  0x2f   : > { %638 = vmatprep.mubr.bf16.mxu0 %v2426_v0  ;;  %2124 = vmatpush3.bf16.msra.mxu0 %v2383_v47 }
  0x30   : > { %2125 = vmatprep.subr.bf16.mxu0 %v2384_v49 }
  0x33   : > { %2126 = vmatpush3.bf16.msra.mxu0 %v2385_v50 }
  0x36   : > { %2025 = vmatmul.mubr.msk.bf16.gmra.mxu0 %vm510_vm1, %v492_v31 }
  0x37   : > { %648 = vmatprep.mubr.bf16.mxu0 %v2426_v0 }
  0x3e   : > { %2026 = vmatmul.mubr.msk.bf16.gmra.mxu0 %vm510_vm1, %v493_v34 }
  0x3f   : > { %658 = vmatprep.mubr.bf16.mxu0 %v2426_v0 }
  0x46   : > { %2027 = vmatmul.mubr.msk.bf16.gmra.mxu0 %vm510_vm1, %v494_v37 }
  0x47   : > { %668 = vmatprep.mubr.bf16.mxu0 %v2426_v0 }
  0x4e   : > { %2028 = vmatmul.mubr.msk.bf16.gmra.mxu0 %vm510_vm1, %v495_v40 }
  0x4f   : > { %678 = vmatprep.mubr.bf16.mxu0 %v2426_v0 }
  0x56   : > { %2029 = vmatmul.mubr.msk.bf16.gmra.mxu0 %vm510_vm1, %v496_v43 }
  0x57   : > { %688 = vmatprep.mubr.bf16.mxu0 %v2426_v0 }
  0x5e   : > { %2030 = vmatmul.mubr.msk.bf16.gmra.mxu0 %vm510_vm1, %v497_v48 }
  0x5f   : > { %698 = vmatprep.mubr.bf16.mxu0 %v2426_v0 }
  0x66   : > { %2031 = vmatmul.mubr.msk.bf16.gmra.mxu0 %vm510_vm1, %v498_v53 }
  0x67   : > { %708 = vmatprep.mubr.bf16.mxu0 %v2426_v0 }
  0x6e   : > { %2032 = vmatmul.mubr.msk.bf16.gmra.mxu0 %vm510_vm1, %v499_v56 }
  0x6f   : > { %718 = vmatprep.mubr.bf16.mxu0 %v2426_v0 }
  0x76   : > { %2033 = vmatmul.mubr.msk.bf16.gmra.mxu0 %vm510_vm1, %v500_v59 }
  0x77   : > { %728 = vmatprep.mubr.bf16.mxu0 %v2426_v0 }
  0x7e   : > { %2034 = vmatmul.mubr.msk.bf16.gmra.mxu0 %vm510_vm1, %v501_v62 }
  0x7f   : > { %738 = vmatprep.mubr.bf16.mxu0 %v2426_v0 }
  0x86   : > { %2035 = vmatmul.mubr.msk.bf16.gmra.mxu0 %vm510_vm1, %v502_v2 }
  0x87   : > { %748 = vmatprep.mubr.bf16.mxu0 %v2426_v0 }
  0x8e   : > { %2036 = vmatmul.mubr.msk.bf16.gmra.mxu0 %vm510_vm1, %v503_v5 }
  0xd6   : > { %v600_v6 = vpop.f32.mrf.mxu0 }
  0xd8   : > { %v602_v7 = vpop.f32.mrf.mxu0 }
  0xda   : > { %v604_v9 = vpop.f32.mrf.mxu0 }
  0xdb   : > { %v759_v12 = vpack.c.bf16 %v604_v9, %v600_v6 }
  0xdc   : > { %v606_v10 = vpop.f32.mrf.mxu0 }
  0xdd   : > { %v760_v11 = vpack.c.bf16 %v606_v10, %v602_v7 }
  0xde   : > { %v610_v13 = vpop.f32.mrf.mxu0 }
  0xdf   : > { %951 = vmatprep.mubr.bf16.mxu0 %v760_v11 }
  0xe0   : > { %v612_v0 = vpop.f32.mrf.mxu0  ;;  %952 = vmatmul.mubr.bf16.vlgmr.msra.gmra.mxu0 %v759_v12 }
  0xe2   : > { %v614_v14 = vpop.f32.mrf.mxu0 }
  0xe3   : > { %v761_v17 = vpack.c.bf16 %v614_v14, %v610_v13 }
  0xe4   : > { %v616_v15 = vpop.f32.mrf.mxu0 }
  0xe5   : > { %v762_v16 = vpack.c.bf16 %v616_v15, %v612_v0  ;;  %v1239_v0 = vld [vmem:[%s2925_s7] sm:$0xf] }
  0xe6   : > { %v620_v18 = vpop.f32.mrf.mxu0  ;;  %2341 = vmatprep.subr.msk.bf16.mxu0 %vm1369_vm2, %v1239_v0  ;;  %v1371_v15 = vsel %vm1369_vm2, %v1239_v0, 0 }
  0xe7   : > { %959 = vmatprep.mubr.bf16.mxu1 %v762_v16  ;;  %2258 = vmatpush3.bf16.msra.mxu0 %v1371_v15 }
  0xe8   : > { %v622_v20 = vpop.f32.mrf.mxu0  ;;  %960 = vmatmul.mubr.bf16.vlgmr.msra.gmra.mxu1 %v761_v17 }
  0xe9   : > { %2292 = vmatpush3.bf16.msra.mxu1 %v1583_v19  ;;  %v2387_v19 = vld [vmem:[%s2559_s19 + $0x8] sm:$0xff]  }
  0xea   : > { %v624_v21 = vpop.f32.mrf.mxu0 }
  0xeb   : > { %v763_v24 = vpack.c.bf16 %v624_v21, %v620_v18  ;;  %v2386_v18 = vld [vmem:[%s2559_s19] sm:$0xff]  }
  0xec   : > { %v626_v22 = vpop.f32.mrf.mxu0  ;;  %2259 = vmatprep.mubr.msk.bf16.mxu0 %vm1320_vm3, %v2386_v18 }
  0xed   : > { %v764_v23 = vpack.c.bf16 %v626_v22, %v622_v20  ;;  %2260 = vmatmul.mubr.msk.bf16.vlgmr.msra.gmra.mxu0 %vm1320_vm3, %v2387_v19 }
  0xee   : > { %v630_v25 = vpop.f32.mrf.mxu0 }
  0xef   : > { %967 = vmatprep.mubr.bf16.mxu1 %v764_v23 }
  0xf0   : > { %v632_v26 = vpop.f32.mrf.mxu0  ;;  %968 = vmatmul.mubr.bf16.gmra.mxu1 %v763_v24 }
  0xf2   : > { %v634_v27 = vpop.f32.mrf.mxu0 }
  0xf3   : > { %v765_v30 = vpack.c.bf16 %v634_v27, %v630_v25 }
  0xf4   : > { %v636_v28 = vpop.f32.mrf.mxu0 }
  0xf5   : > { %v766_v29 = vpack.c.bf16 %v636_v28, %v632_v26 }
  0xf6   : > { %v640_v31 = vpop.f32.mrf.mxu0 }
  0xf7   : > { %975 = vmatprep.mubr.bf16.mxu1 %v766_v29 }
  0xf8   : > { %v642_v32 = vpop.f32.mrf.mxu0  ;;  %976 = vmatmul.mubr.bf16.gmra.mxu1 %v765_v30 }
  0xfa   : > { %v644_v33 = vpop.f32.mrf.mxu0 }
  0xfb   : > { %v767_v36 = vpack.c.bf16 %v644_v33, %v640_v31  ;;  %v2389_v33 = vld [vmem:[%s2559_s19 + $0x18] sm:$0xff]  }
  0xfc   : > { %v646_v34 = vpop.f32.mrf.mxu0 }
  0xfd   : > { %v768_v35 = vpack.c.bf16 %v646_v34, %v642_v32  ;;  %v2388_v32 = vld [vmem:[%s2559_s19 + $0x10] sm:$0xff]  }
  0xfe   : > { %v650_v37 = vpop.f32.mrf.mxu0  ;;  %2263 = vmatprep.mubr.msk.bf16.mxu0 %vm1320_vm3, %v2388_v32 }
  0xff   : > { %983 = vmatprep.mubr.bf16.mxu1 %v768_v35  ;;  %2264 = vmatmul.mubr.msk.bf16.gmra.mxu0 %vm1320_vm3, %v2389_v33 }
 0x100   : > { %v652_v38 = vpop.f32.mrf.mxu0  ;;  %984 = vmatmul.mubr.bf16.gmra.mxu1 %v767_v36 }
 0x102   : > { %v654_v39 = vpop.f32.mrf.mxu0 }
 0x103   : > { %v769_v42 = vpack.c.bf16 %v654_v39, %v650_v37 }
 0x104   : > { %v656_v40 = vpop.f32.mrf.mxu0 }
 0x105   : > { %v770_v41 = vpack.c.bf16 %v656_v40, %v652_v38 }
 0x106   : > { %v660_v43 = vpop.f32.mrf.mxu0 }
 0x107   : > { %991 = vmatprep.mubr.bf16.mxu1 %v770_v41 }
 0x108   : > { %v662_v44 = vpop.f32.mrf.mxu0  ;;  %992 = vmatmul.mubr.bf16.gmra.mxu1 %v769_v42 }
 0x10a   : > { %v664_v45 = vpop.f32.mrf.mxu0 }
 0x10b   : > { %v771_v48 = vpack.c.bf16 %v664_v45, %v660_v43  ;;  %v2390_v45 = vld [vmem:[%s2559_s19 + $0x20] sm:$0xff]  }
 0x10c   : > { %v666_v46 = vpop.f32.mrf.mxu0  ;;  %2267 = vmatprep.mubr.msk.bf16.mxu0 %vm1320_vm3, %v2390_v45 }
 0x10d   : > { %v772_v47 = vpack.c.bf16 %v666_v46, %v662_v44  ;;  %v2391_v46 = vld [vmem:[%s2559_s19 + $0x28] sm:$0xff]  }
 0x10e   : > { %v670_v49 = vpop.f32.mrf.mxu0  ;;  %2268 = vmatmul.mubr.msk.bf16.gmra.mxu0 %vm1320_vm3, %v2391_v46 }
 0x10f   : > { %999 = vmatprep.mubr.bf16.mxu1 %v772_v47  ;;  %v2392_v47 = vld [vmem:[%s2559_s19 + $0x30] sm:$0xff]  }
 0x110   : > { %v672_v50 = vpop.f32.mrf.mxu0  ;;  %1000 = vmatmul.mubr.bf16.gmra.mxu1 %v771_v48  ;;  %v2393_v48 = vld [vmem:[%s2559_s19 + $0x38] sm:$0xff]   ;;  %2271 = vmatprep.mubr.msk.bf16.mxu0 %vm1320_vm3, %v2392_v47 }
 0x112   : > { %v674_v51 = vpop.f32.mrf.mxu0 }
 0x113   : > { %v773_v54 = vpack.c.bf16 %v674_v51, %v670_v49  ;;  %v2394_v49 = vld [vmem:[%s2559_s19 + $0x40] sm:$0xff]   ;;  %v2396_v51 = vld [vmem:[%s2559_s19 + $0x50] sm:$0xff]  }
 0x114   : > { %v676_v52 = vpop.f32.mrf.mxu0 }
 0x115   : > { %v774_v53 = vpack.c.bf16 %v676_v52, %v672_v50  ;;  %v2395_v50 = vld [vmem:[%s2559_s19 + $0x48] sm:$0xff]   ;;  %v2397_v52 = vld [vmem:[%s2559_s19 + $0x58] sm:$0xff]  }
 0x116   : > { %v680_v55 = vpop.f32.mrf.mxu0  ;;  %2272 = vmatmul.mubr.msk.bf16.gmra.mxu0 %vm1320_vm3, %v2393_v48 }
 0x117   : > { %1007 = vmatprep.mubr.bf16.mxu1 %v774_v53  ;;  %2275 = vmatprep.mubr.msk.bf16.mxu0 %vm1320_vm3, %v2394_v49  ;;  %v2398_v53 = vld [vmem:[%s2559_s19 + $0x60] sm:$0xff]  }
 0x118   : > { %v682_v56 = vpop.f32.mrf.mxu0  ;;  %1008 = vmatmul.mubr.bf16.gmra.mxu1 %v773_v54  ;;  %v2399_v54 = vld [vmem:[%s2559_s19 + $0x68] sm:$0xff]  }
 0x11a   : > { %v684_v57 = vpop.f32.mrf.mxu0 }
 0x11b   : > { %v775_v60 = vpack.c.bf16 %v684_v57, %v680_v55  ;;  %v2401_v57 = vld [vmem:[%s2559_s19 + $0x78] sm:$0xff]  }
 0x11c   : > { %v686_v58 = vpop.f32.mrf.mxu0 }
 0x11d   : > { %v776_v59 = vpack.c.bf16 %v686_v58, %v682_v56  ;;  %v2400_v56 = vld [vmem:[%s2559_s19 + $0x70] sm:$0xff]  }
 0x11e   : > { %v690_v61 = vpop.f32.mrf.mxu0  ;;  %2276 = vmatmul.mubr.msk.bf16.gmra.mxu0 %vm1320_vm3, %v2395_v50 }
 0x11f   : > { %1015 = vmatprep.mubr.bf16.mxu1 %v776_v59  ;;  %2279 = vmatprep.mubr.msk.bf16.mxu0 %vm1320_vm3, %v2396_v51  ;;  %v2675_v59 = vld [vmem:[%s2922_s4] ss:$0 sm:$0xff] }
 0x120   : > { %v692_v62 = vpop.f32.mrf.mxu0  ;;  %1016 = vmatmul.mubr.bf16.gmra.mxu1 %v775_v60 }
 0x122   : > { %v694_v63 = vpop.f32.mrf.mxu0 }
 0x123   : > { %v777_v3 = vpack.c.bf16 %v694_v63, %v690_v61  ;;  %v2683_v63 = vld [vmem:[%s2923_s5] ss:$0 sm:$0xff] }
 0x124   : > { %v696_v1 = vpop.f32.mrf.mxu0 }
 0x125   : > { %v778_v2 = vpack.c.bf16 %v696_v1, %v692_v62 }
 0x126   : > { %v700_v4 = vpop.f32.mrf.mxu0  ;;  %2280 = vmatmul.mubr.msk.bf16.gmra.mxu0 %vm1320_vm3, %v2397_v52 }
 0x127   : > { %1023 = vmatprep.mubr.bf16.mxu1 %v778_v2  ;;  %2283 = vmatprep.mubr.msk.bf16.mxu0 %vm1320_vm3, %v2398_v53 }
 0x128   : > { %v702_v5 = vpop.f32.mrf.mxu0  ;;  %1024 = vmatmul.mubr.bf16.gmra.mxu1 %v777_v3 }
 0x12a   : > { %v704_v6 = vpop.f32.mrf.mxu0 }
 0x12b   : > { %v779_v9 = vpack.c.bf16 %v704_v6, %v700_v4 }
 0x12c   : > { %v706_v7 = vpop.f32.mrf.mxu0 }
 0x12d   : > { %v780_v8 = vpack.c.bf16 %v706_v7, %v702_v5 }
 0x12e   : > { %v710_v10 = vpop.f32.mrf.mxu0  ;;  %2284 = vmatmul.mubr.msk.bf16.gmra.mxu0 %vm1320_vm3, %v2399_v54 }
 0x12f   : > { %1031 = vmatprep.mubr.bf16.mxu1 %v780_v8  ;;  %2287 = vmatprep.mubr.msk.bf16.mxu0 %vm1320_vm3, %v2400_v56 }
 0x130   : > { %v712_v11 = vpop.f32.mrf.mxu0  ;;  %1032 = vmatmul.mubr.bf16.gmra.mxu1 %v779_v9 }
 0x132   : > { %v714_v12 = vpop.f32.mrf.mxu0 }
 0x133   : > { %v781_v16 = vpack.c.bf16 %v714_v12, %v710_v10 }
 0x134   : > { %v716_v13 = vpop.f32.mrf.mxu0 }
 0x135   : > { %v782_v14 = vpack.c.bf16 %v716_v13, %v712_v11 }
 0x136   : > { %v720_v17 = vpop.f32.mrf.mxu0  ;;  %2288 = vmatmul.mubr.msk.bf16.gmra.mxu0 %vm1320_vm3, %v2401_v57 }
 0x137   : > { %1039 = vmatprep.mubr.bf16.mxu1 %v782_v14 }
 0x138   : > { %v722_v20 = vpop.f32.mrf.mxu0  ;;  %1040 = vmatmul.mubr.bf16.gmra.mxu1 %v781_v16 }
 0x13a   : > { %v724_v21 = vpop.f32.mrf.mxu0 }
 0x13b   : > { %v783_v24 = vpack.c.bf16 %v724_v21, %v720_v17 }
 0x13c   : > { %v726_v22 = vpop.f32.mrf.mxu0 }
 0x13d   : > { %v784_v23 = vpack.c.bf16 %v726_v22, %v722_v20 }
 0x13e   : > { %v730_v25 = vpop.f32.mrf.mxu0 }
 0x13f   : > { %1047 = vmatprep.mubr.bf16.mxu1 %v784_v23 }
 0x140   : > { %v732_v26 = vpop.f32.mrf.mxu0  ;;  %1048 = vmatmul.mubr.bf16.gmra.mxu1 %v783_v24 }
 0x142   : > { %v734_v27 = vpop.f32.mrf.mxu0 }
 0x143   : > { %v785_v30 = vpack.c.bf16 %v734_v27, %v730_v25 }
 0x144   : > { %v736_v28 = vpop.f32.mrf.mxu0 }
 0x145   : > { %v786_v29 = vpack.c.bf16 %v736_v28, %v732_v26 }
 0x146   : > { %v740_v31 = vpop.f32.mrf.mxu0 }
 0x147   : > { %1055 = vmatprep.mubr.bf16.mxu1 %v786_v29 }
 0x148   : > { %v742_v34 = vpop.f32.mrf.mxu0  ;;  %1056 = vmatmul.mubr.bf16.gmra.mxu1 %v785_v30 }
 0x14a   : > { %v744_v35 = vpop.f32.mrf.mxu0 }
 0x14b   : > { %v787_v38 = vpack.c.bf16 %v744_v35, %v740_v31 }
 0x14c   : > { %v746_v36 = vpop.f32.mrf.mxu0 }
 0x14d   : > { %v788_v37 = vpack.c.bf16 %v746_v36, %v742_v34 }
 0x14e   : > { %v750_v39 = vpop.f32.mrf.mxu0 }
 0x14f   : > { %1063 = vmatprep.mubr.bf16.mxu1 %v788_v37 }
 0x150   : > { %v752_v40 = vpop.f32.mrf.mxu0  ;;  %1064 = vmatmul.mubr.bf16.gmra.mxu1 %v787_v38 }
 0x152   : > { %v754_v41 = vpop.f32.mrf.mxu0 }
 0x153   : > { %v789_v44 = vpack.c.bf16 %v754_v41, %v750_v39 }
 0x154   : > { %v756_v42 = vpop.f32.mrf.mxu0 }
 0x155   : > { %v790_v43 = vpack.c.bf16 %v756_v42, %v752_v40 }
 0x157   : > { %1071 = vmatprep.mubr.bf16.mxu1 %v790_v43 }
 0x158   : > { %1072 = vmatmul.mubr.bf16.gmra.mxu1 %v789_v44 }
 0x1a0   : > { %v2127_v55 = vpop.f32.mrf.mxu0 }
 0x1a2   : > { %v2128_v58 = vpop.f32.mrf.mxu0 }
 0x1a3   : > { %v2129_v60 = vadd.f32 %v2128_v58, %v2127_v55 }
 0x1a4   : > { %v2130_v61 = vpop.f32.mrf.mxu0 }
 0x1a5   : > { %v1087_v62 = vmul.f32 %v2129_v60, %v2675_v59 }
 0x1a6   : > { %v2131_v1 = vpop.f32.mrf.mxu0 }
 0x1a7   : > { %v2132_v2 = vadd.f32 %v2131_v1, %v2130_v61  ;;  %v1126_v4 = vadd.f32 %v2683_v63, %v1087_v62 }
 0x1a8   : > { %v2133_v3 = vpop.f32.mrf.mxu1 }
 0x1a9   : > { %v1088_v5 = vmul.f32 %v2132_v2, %v2675_v59  ;;  %v1158_v10 = vmax.f32 %v1126_v4, 0.0 }
 0x1aa   : > { %v2134_v6 = vpop.f32.mrf.mxu1 }
 0x1ab   : > { %v1127_v7 = vadd.f32 %v2683_v63, %v1088_v5  ;;  %v2135_v8 = vadd.f32 %v2134_v6, %v2133_v3 }
 0x1ac   : > { %v2136_v9 = vpop.f32.mrf.mxu1 }
 0x1ad   : > { %v1159_v11 = vmax.f32 %v1127_v7, 0.0  ;;  %v1089_v12 = vmul.f32 %v2135_v8, %v2675_v59 }
 0x1ae   : > { %v2137_v13 = vpop.f32.mrf.mxu1 }
 0x1af   : > { %v1190_v0 = vpack.c.bf16 %v1159_v11, %v1158_v10  ;;  %v2138_v14 = vadd.f32 %v2137_v13, %v2136_v9  ;;  %v1128_v16 = vadd.f32 %v2683_v63, %v1089_v12 }
 0x1b0   : > { %v2139_v15 = vpop.f32.mrf.mxu1 }
 0x1b1   : > { %v1090_v17 = vmul.f32 %v2138_v14, %v2675_v59  ;;  %2293 = vmatprep.mubr.msk.bf16.mxu1 %vm1320_vm3, %v1190_v0  ;;  %v1160_v22 = vmax.f32 %v1128_v16, 0.0 }
 0x1b2   : > { %v2140_v18 = vpop.f32.mrf.mxu1 }
 0x1b3   : > { %v1129_v19 = vadd.f32 %v2683_v63, %v1090_v17  ;;  %v2141_v20 = vadd.f32 %v2140_v18, %v2139_v15 }
 0x1b4   : > { %v2142_v21 = vpop.f32.mrf.mxu1 }
 0x1b5   : > { %v1161_v23 = vmax.f32 %v1129_v19, 0.0  ;;  %v1091_v24 = vmul.f32 %v2141_v20, %v2675_v59 }
 0x1b6   : > { %v2143_v25 = vpop.f32.mrf.mxu1 }
 0x1b7   : > { %v1191_v26 = vpack.c.bf16 %v1161_v23, %v1160_v22  ;;  %v2144_v27 = vadd.f32 %v2143_v25, %v2142_v21  ;;  %v1130_v29 = vadd.f32 %v2683_v63, %v1091_v24 }
 0x1b8   : > { %v2145_v28 = vpop.f32.mrf.mxu1 }
 0x1b9   : > { %v1092_v30 = vmul.f32 %v2144_v27, %v2675_v59  ;;  %2294 = vmatmul.mubr.msk.bf16.vlgmr.msra.gmra.mxu1 %vm1320_vm3, %v1191_v26  ;;  %v1162_v35 = vmax.f32 %v1130_v29, 0.0 }
 0x1ba   : > { %v2146_v31 = vpop.f32.mrf.mxu1 }
 0x1bb   : > { %v1131_v32 = vadd.f32 %v2683_v63, %v1092_v30  ;;  %v2147_v33 = vadd.f32 %v2146_v31, %v2145_v28 }
 0x1bc   : > { %v2148_v34 = vpop.f32.mrf.mxu1 }
 0x1bd   : > { %v1163_v36 = vmax.f32 %v1131_v32, 0.0  ;;  %v1093_v37 = vmul.f32 %v2147_v33, %v2675_v59 }
 0x1be   : > { %v2149_v38 = vpop.f32.mrf.mxu1 }
 0x1bf   : > { %v1192_v39 = vpack.c.bf16 %v1163_v36, %v1162_v35  ;;  %v2150_v40 = vadd.f32 %v2149_v38, %v2148_v34  ;;  %v1132_v42 = vadd.f32 %v2683_v63, %v1093_v37 }
 0x1c0   : > { %v2151_v41 = vpop.f32.mrf.mxu1 }
 0x1c1   : > { %v1094_v43 = vmul.f32 %v2150_v40, %v2675_v59  ;;  %2297 = vmatprep.mubr.msk.bf16.mxu1 %vm1320_vm3, %v1192_v39  ;;  %v1164_v48 = vmax.f32 %v1132_v42, 0.0 }
 0x1c2   : > { %v2152_v44 = vpop.f32.mrf.mxu1 }
 0x1c3   : > { %v1133_v45 = vadd.f32 %v2683_v63, %v1094_v43  ;;  %v2153_v46 = vadd.f32 %v2152_v44, %v2151_v41 }
 0x1c4   : > { %v2154_v47 = vpop.f32.mrf.mxu1 }
 0x1c5   : > { %v1165_v49 = vmax.f32 %v1133_v45, 0.0  ;;  %v1095_v50 = vmul.f32 %v2153_v46, %v2675_v59 }
 0x1c6   : > { %v2155_v51 = vpop.f32.mrf.mxu1 }
 0x1c7   : > { %v1193_v52 = vpack.c.bf16 %v1165_v49, %v1164_v48  ;;  %v2156_v53 = vadd.f32 %v2155_v51, %v2154_v47  ;;  %v1134_v55 = vadd.f32 %v2683_v63, %v1095_v50 }
 0x1c8   : > { %v2157_v54 = vpop.f32.mrf.mxu1 }
 0x1c9   : > { %v1096_v56 = vmul.f32 %v2156_v53, %v2675_v59  ;;  %2298 = vmatmul.mubr.msk.bf16.gmra.mxu1 %vm1320_vm3, %v1193_v52  ;;  %v1166_v62 = vmax.f32 %v1134_v55, 0.0 }
 0x1ca   : > { %v2158_v57 = vpop.f32.mrf.mxu1 }
 0x1cb   : > { %v1135_v58 = vadd.f32 %v2683_v63, %v1096_v56  ;;  %v2159_v60 = vadd.f32 %v2158_v57, %v2157_v54 }
 0x1cc   : > { %v2160_v61 = vpop.f32.mrf.mxu1 }
 0x1cd   : > { %v1167_v1 = vmax.f32 %v1135_v58, 0.0  ;;  %v1097_v2 = vmul.f32 %v2159_v60, %v2675_v59 }
 0x1ce   : > { %v2161_v3 = vpop.f32.mrf.mxu1 }
 0x1cf   : > { %v1194_v4 = vpack.c.bf16 %v1167_v1, %v1166_v62  ;;  %v2162_v5 = vadd.f32 %v2161_v3, %v2160_v61  ;;  %v1136_v7 = vadd.f32 %v2683_v63, %v1097_v2 }
 0x1d0   : > { %v2163_v6 = vpop.f32.mrf.mxu1 }
 0x1d1   : > { %v1098_v8 = vmul.f32 %v2162_v5, %v2675_v59  ;;  %2301 = vmatprep.mubr.msk.bf16.mxu1 %vm1320_vm3, %v1194_v4  ;;  %v1168_v13 = vmax.f32 %v1136_v7, 0.0 }
 0x1d2   : > { %v2164_v9 = vpop.f32.mrf.mxu1 }
 0x1d3   : > { %v1137_v10 = vadd.f32 %v2683_v63, %v1098_v8  ;;  %v2165_v11 = vadd.f32 %v2164_v9, %v2163_v6 }
 0x1d4   : > { %v2166_v12 = vpop.f32.mrf.mxu1 }
 0x1d5   : > { %v1169_v0 = vmax.f32 %v1137_v10, 0.0  ;;  %v1099_v14 = vmul.f32 %v2165_v11, %v2675_v59 }
 0x1d6   : > { %v2167_v15 = vpop.f32.mrf.mxu1 }
 0x1d7   : > { %v1195_v16 = vpack.c.bf16 %v1169_v0, %v1168_v13  ;;  %v2168_v17 = vadd.f32 %v2167_v15, %v2166_v12  ;;  %v1138_v19 = vadd.f32 %v2683_v63, %v1099_v14 }
 0x1d8   : > { %v2169_v18 = vpop.f32.mrf.mxu1 }
 0x1d9   : > { %v1100_v20 = vmul.f32 %v2168_v17, %v2675_v59  ;;  %2302 = vmatmul.mubr.msk.bf16.gmra.mxu1 %vm1320_vm3, %v1195_v16  ;;  %v1170_v25 = vmax.f32 %v1138_v19, 0.0 }
 0x1da   : > { %v2170_v21 = vpop.f32.mrf.mxu1 }
 0x1db   : > { %v1139_v22 = vadd.f32 %v2683_v63, %v1100_v20  ;;  %v2171_v23 = vadd.f32 %v2170_v21, %v2169_v18 }
 0x1dc   : > { %v2172_v24 = vpop.f32.mrf.mxu1 }
 0x1dd   : > { %v1171_v26 = vmax.f32 %v1139_v22, 0.0  ;;  %v1101_v27 = vmul.f32 %v2171_v23, %v2675_v59 }
 0x1de   : > { %v2173_v28 = vpop.f32.mrf.mxu1 }
 0x1df   : > { %v1196_v29 = vpack.c.bf16 %v1171_v26, %v1170_v25  ;;  %v2174_v30 = vadd.f32 %v2173_v28, %v2172_v24  ;;  %v1140_v32 = vadd.f32 %v2683_v63, %v1101_v27 }
 0x1e0   : > { %v2175_v31 = vpop.f32.mrf.mxu1 }
 0x1e1   : > { %v1102_v33 = vmul.f32 %v2174_v30, %v2675_v59  ;;  %2305 = vmatprep.mubr.msk.bf16.mxu1 %vm1320_vm3, %v1196_v29  ;;  %v1172_v38 = vmax.f32 %v1140_v32, 0.0 }
 0x1e2   : > { %v2176_v34 = vpop.f32.mrf.mxu1 }
 0x1e3   : > { %v1141_v35 = vadd.f32 %v2683_v63, %v1102_v33  ;;  %v2177_v36 = vadd.f32 %v2176_v34, %v2175_v31 }
 0x1e4   : > { %v2178_v37 = vpop.f32.mrf.mxu1 }
 0x1e5   : > { %v1173_v39 = vmax.f32 %v1141_v35, 0.0  ;;  %v1103_v40 = vmul.f32 %v2177_v36, %v2675_v59 }
 0x1e6   : > { %v2179_v41 = vpop.f32.mrf.mxu1 }
 0x1e7   : > { %v1197_v42 = vpack.c.bf16 %v1173_v39, %v1172_v38  ;;  %v2180_v43 = vadd.f32 %v2179_v41, %v2178_v37  ;;  %v1142_v45 = vadd.f32 %v2683_v63, %v1103_v40 }
 0x1e8   : > { %v2181_v44 = vpop.f32.mrf.mxu1 }
 0x1e9   : > { %v1104_v46 = vmul.f32 %v2180_v43, %v2675_v59  ;;  %2306 = vmatmul.mubr.msk.bf16.gmra.mxu1 %vm1320_vm3, %v1197_v42  ;;  %v1174_v51 = vmax.f32 %v1142_v45, 0.0 }
 0x1ea   : > { %v2182_v47 = vpop.f32.mrf.mxu1 }
 0x1eb   : > { %v1143_v48 = vadd.f32 %v2683_v63, %v1104_v46  ;;  %v2183_v49 = vadd.f32 %v2182_v47, %v2181_v44 }
 0x1ec   : > { %v2184_v50 = vpop.f32.mrf.mxu1 }
 0x1ed   : > { %v1175_v52 = vmax.f32 %v1143_v48, 0.0  ;;  %v1105_v53 = vmul.f32 %v2183_v49, %v2675_v59 }
 0x1ee   : > { %v2185_v54 = vpop.f32.mrf.mxu1 }
 0x1ef   : > { %v1198_v55 = vpack.c.bf16 %v1175_v52, %v1174_v51  ;;  %v2186_v56 = vadd.f32 %v2185_v54, %v2184_v50  ;;  %v1144_v58 = vadd.f32 %v2683_v63, %v1105_v53 }
 0x1f0   : > { %v2187_v57 = vpop.f32.mrf.mxu1 }
 0x1f1   : > { %v1106_v60 = vmul.f32 %v2186_v56, %v2675_v59  ;;  %2309 = vmatprep.mubr.msk.bf16.mxu1 %vm1320_vm3, %v1198_v55  ;;  %v1176_v3 = vmax.f32 %v1144_v58, 0.0 }
 0x1f2   : > { %v2188_v61 = vpop.f32.mrf.mxu1 }
 0x1f3   : > { %v1145_v62 = vadd.f32 %v2683_v63, %v1106_v60  ;;  %v2189_v1 = vadd.f32 %v2188_v61, %v2187_v57 }
 0x1f4   : > { %v2190_v2 = vpop.f32.mrf.mxu1 }
 0x1f5   : > { %v1177_v4 = vmax.f32 %v1145_v62, 0.0  ;;  %v1107_v5 = vmul.f32 %v2189_v1, %v2675_v59 }
 0x1f6   : > { %v2191_v6 = vpop.f32.mrf.mxu1 }
 0x1f7   : > { %v1199_v7 = vpack.c.bf16 %v1177_v4, %v1176_v3  ;;  %v2192_v8 = vadd.f32 %v2191_v6, %v2190_v2  ;;  %v1146_v10 = vadd.f32 %v2683_v63, %v1107_v5 }
 0x1f8   : > { %v2193_v9 = vpop.f32.mrf.mxu1 }
 0x1f9   : > { %v1108_v11 = vmul.f32 %v2192_v8, %v2675_v59  ;;  %2310 = vmatmul.mubr.msk.bf16.gmra.mxu1 %vm1320_vm3, %v1199_v7  ;;  %v1178_v15 = vmax.f32 %v1146_v10, 0.0 }
 0x1fa   : > { %v2194_v12 = vpop.f32.mrf.mxu1 }
 0x1fb   : > { %v1147_v13 = vadd.f32 %v2683_v63, %v1108_v11  ;;  %v2195_v0 = vadd.f32 %v2194_v12, %v2193_v9 }
 0x1fc   : > { %v2196_v14 = vpop.f32.mrf.mxu1 }
 0x1fd   : > { %v1179_v16 = vmax.f32 %v1147_v13, 0.0  ;;  %v1109_v17 = vmul.f32 %v2195_v0, %v2675_v59 }
 0x1fe   : > { %v2197_v18 = vpop.f32.mrf.mxu1 }
 0x1ff   : > { %v1200_v19 = vpack.c.bf16 %v1179_v16, %v1178_v15  ;;  %v2198_v20 = vadd.f32 %v2197_v18, %v2196_v14  ;;  %v1148_v22 = vadd.f32 %v2683_v63, %v1109_v17  ;;  %v2261_v17 = vpop.f32.mrf.mxu0 }
 0x200   : > { %v2199_v21 = vpop.f32.mrf.mxu1 }
 0x201   : > { %v1110_v23 = vmul.f32 %v2198_v20, %v2675_v59  ;;  %2313 = vmatprep.mubr.msk.bf16.mxu1 %vm1320_vm3, %v1200_v19  ;;  %v1180_v28 = vmax.f32 %v1148_v22, 0.0  ;;  %v1407_v18 = vpop.f32.mrf.mxu0  ;;  %v2767_v20 = vld [vmem:[%s2926_s8] ss:$0 sm:$0xff] }
 0x202   : > { %v2200_v24 = vpop.f32.mrf.mxu1 }
 0x203   : > { %v1149_v25 = vadd.f32 %v2683_v63, %v1110_v23  ;;  %v2201_v26 = vadd.f32 %v2200_v24, %v2199_v21  ;;  %v2262_v21 = vpop.f32.mrf.mxu0 }
 0x204   : > { %v2202_v27 = vpop.f32.mrf.mxu1 }
 0x205   : > { %v1181_v29 = vmax.f32 %v1149_v25, 0.0  ;;  %v1111_v30 = vmul.f32 %v2201_v26, %v2675_v59  ;;  %v1410_v26 = vpop.f32.mrf.mxu0 }
 0x206   : > { %v2203_v31 = vpop.f32.mrf.mxu1 }
 0x207   : > { %v1201_v32 = vpack.c.bf16 %v1181_v29, %v1180_v28  ;;  %v2204_v33 = vadd.f32 %v2203_v31, %v2202_v27  ;;  %v1150_v35 = vadd.f32 %v2683_v63, %v1111_v30 }
 0x208   : > { %v2205_v34 = vpop.f32.mrf.mxu1 }
 0x209   : > { %v1112_v36 = vmul.f32 %v2204_v33, %v2675_v59  ;;  %2314 = vmatmul.mubr.msk.bf16.gmra.mxu1 %vm1320_vm3, %v1201_v32  ;;  %v1182_v41 = vmax.f32 %v1150_v35, 0.0  ;;  %v2265_v35 = vpop.f32.mrf.mxu0 }
 0x20a   : > { %v2206_v37 = vpop.f32.mrf.mxu1 }
 0x20b   : > { %v1151_v38 = vadd.f32 %v2683_v63, %v1112_v36  ;;  %v2207_v39 = vadd.f32 %v2206_v37, %v2205_v34 }
 0x20c   : > { %v2208_v40 = vpop.f32.mrf.mxu1 }
 0x20d   : > { %v1183_v42 = vmax.f32 %v1151_v38, 0.0  ;;  %v1113_v43 = vmul.f32 %v2207_v39, %v2675_v59 }
 0x20e   : > { %v2209_v44 = vpop.f32.mrf.mxu1 }
 0x20f   : > { %v1202_v45 = vpack.c.bf16 %v1183_v42, %v1182_v41  ;;  %v2210_v46 = vadd.f32 %v2209_v44, %v2208_v40  ;;  %v1152_v48 = vadd.f32 %v2683_v63, %v1113_v43  ;;  %v1423_v41 = vpop.f32.mrf.mxu0 }
 0x210   : > { %v2211_v47 = vpop.f32.mrf.mxu1 }
 0x211   : > { %v1114_v49 = vmul.f32 %v2210_v46, %v2675_v59  ;;  %2317 = vmatprep.mubr.msk.bf16.mxu1 %vm1320_vm3, %v1202_v45  ;;  %v1184_v54 = vmax.f32 %v1152_v48, 0.0  ;;  %v2266_v44 = vpop.f32.mrf.mxu0 }
 0x212   : > { %v2212_v50 = vpop.f32.mrf.mxu1 }
 0x213   : > { %v1153_v51 = vadd.f32 %v2683_v63, %v1114_v49  ;;  %v2213_v52 = vadd.f32 %v2212_v50, %v2211_v47  ;;  %v1426_v50 = vpop.f32.mrf.mxu0 }
 0x214   : > { %v2214_v53 = vpop.f32.mrf.mxu1 }
 0x215   : > { %v1185_v55 = vmax.f32 %v1153_v51, 0.0  ;;  %v1115_v56 = vmul.f32 %v2213_v52, %v2675_v59 }
 0x216   : > { %v2215_v57 = vpop.f32.mrf.mxu1 }
 0x217   : > { %v1203_v58 = vpack.c.bf16 %v1185_v55, %v1184_v54  ;;  %v2216_v60 = vadd.f32 %v2215_v57, %v2214_v53  ;;  %v1154_v62 = vadd.f32 %v2683_v63, %v1115_v56 }
 0x218   : > { %v2217_v61 = vpop.f32.mrf.mxu1 }
 0x219   : > { %v1116_v1 = vmul.f32 %v2216_v60, %v2675_v59  ;;  %2318 = vmatmul.mubr.msk.bf16.gmra.mxu1 %vm1320_vm3, %v1203_v58  ;;  %v1186_v6 = vmax.f32 %v1154_v62, 0.0  ;;  %v2269_v60 = vpop.f32.mrf.mxu0 }
 0x21a   : > { %v2218_v2 = vpop.f32.mrf.mxu1 }
 0x21b   : > { %v1155_v3 = vadd.f32 %v2683_v63, %v1116_v1  ;;  %v2219_v4 = vadd.f32 %v2218_v2, %v2217_v61 }
 0x21c   : > { %v2220_v5 = vpop.f32.mrf.mxu1 }
 0x21d   : > { %v1187_v7 = vmax.f32 %v1155_v3, 0.0  ;;  %v1117_v8 = vmul.f32 %v2219_v4, %v2675_v59  ;;  %v1439_v4 = vpop.f32.mrf.mxu0 }
 0x21e   : > { %v2221_v9 = vpop.f32.mrf.mxu1 }
 0x21f   : > { %v1204_v10 = vpack.c.bf16 %v1187_v7, %v1186_v6  ;;  %v2222_v11 = vadd.f32 %v2221_v9, %v2220_v5  ;;  %v1156_v12 = vadd.f32 %v2683_v63, %v1117_v8  ;;  %v2270_v7 = vpop.f32.mrf.mxu0 }
 0x221   : > { %v1118_v13 = vmul.f32 %v2222_v11, %v2675_v59  ;;  %2321 = vmatprep.mubr.msk.bf16.mxu1 %vm1320_vm3, %v1204_v10  ;;  %v1188_v14 = vmax.f32 %v1156_v12, 0.0 }
 0x223   : > { %v1157_v0 = vadd.f32 %v2683_v63, %v1118_v13  ;;  %v2772_v63 = vld [vmem:[%s2927_s9] ss:$0 sm:$0xff]  ;;  %v1442_v13 = vpop.f32.mrf.mxu0 }
 0x225   : > { %v1189_v15 = vmax.f32 %v1157_v0, 0.0 }
 0x227   : > { %v1205_v16 = vpack.c.bf16 %v1189_v15, %v1188_v14 }
 0x229   : > { %2322 = vmatmul.mubr.msk.bf16.gmra.mxu1 %vm1320_vm3, %v1205_v16 }
 0x279   : > { %v2295_v19 = vpop.f32.mrf.mxu1 }
 0x27a   : > { %v1628_v59 = vadd.f32 %v2295_v19, %v2261_v17 }
 0x27b   : > { %v1619_v22 = vpop.f32.mrf.mxu1 }
 0x27c   : > { %v1755_v23 = vmul.f32 %v2767_v20, %v1628_v59  ;;  %v1620_v24 = vadd.f32 %v1619_v22, %v1407_v18  ;;  %v2273_v59 = vpop.f32.mrf.mxu0 }
 0x27d   : > { %v2296_v25 = vpop.f32.mrf.mxu1 }
 0x27e   : > { %v1794_v27 = vadd.f32 %v2772_v63, %v1755_v23  ;;  %v1753_v28 = vmul.f32 %v2767_v20, %v1620_v24  ;;  %v1631_v29 = vadd.f32 %v2296_v25, %v2262_v21 }
 0x27f   : > { %v1622_v30 = vpop.f32.mrf.mxu1 }
 0x280   : > { %v1826_v31 = vmax.f32 %v1794_v27, 0.0  ;;  %v1792_v32 = vadd.f32 %v2772_v63, %v1753_v28  ;;  %v1756_v33 = vmul.f32 %v2767_v20, %v1631_v29  ;;  %v1623_v34 = vadd.f32 %v1622_v30, %v1410_v26  ;;  %v1455_v27 = vpop.f32.mrf.mxu0 }
 0x282   : > { %1858 = vst.msk [vmem:[%s2782_s12 + $0x10] sm:$0xff] %vm1320_vm3, %v1826_v31  ;;  %v1824_v36 = vmax.f32 %v1792_v32, 0.0  ;;  %v1795_v37 = vadd.f32 %v2772_v63, %v1756_v33  ;;  %v1754_v38 = vmul.f32 %v2767_v20, %v1623_v34  ;;  %v2274_v30 = vpop.f32.mrf.mxu0 }
 0x284   : > { %1856 = vst.msk [vmem:[%s2782_s12] sm:$0xff] %vm1320_vm3, %v1824_v36  ;;  %v1827_v39 = vmax.f32 %v1795_v37, 0.0  ;;  %v1793_v40 = vadd.f32 %v2772_v63, %v1754_v38  ;;  %v1458_v36 = vpop.f32.mrf.mxu0 }
 0x286   : > { %1859 = vst.msk [vmem:[%s2782_s12 + $0x18] sm:$0xff] %vm1320_vm3, %v1827_v39  ;;  %v1825_v42 = vmax.f32 %v1793_v40, 0.0 }
 0x288   : > { %1857 = vst.msk [vmem:[%s2782_s12 + $0x8] sm:$0xff] %vm1320_vm3, %v1825_v42 }
 0x289   : > { %v2299_v43 = vpop.f32.mrf.mxu1 }
 0x28a   : > { %v1644_v45 = vadd.f32 %v2299_v43, %v2265_v35 }
 0x28b   : > { %v1635_v46 = vpop.f32.mrf.mxu1 }
 0x28c   : > { %v1759_v47 = vmul.f32 %v2767_v20, %v1644_v45  ;;  %v1636_v48 = vadd.f32 %v1635_v46, %v1423_v41  ;;  %v2277_v45 = vpop.f32.mrf.mxu0 }
 0x28d   : > { %v2300_v49 = vpop.f32.mrf.mxu1 }
 0x28e   : > { %v1798_v51 = vadd.f32 %v2772_v63, %v1759_v47  ;;  %v1757_v52 = vmul.f32 %v2767_v20, %v1636_v48  ;;  %v1647_v53 = vadd.f32 %v2300_v49, %v2266_v44 }
 0x28f   : > { %v1638_v54 = vpop.f32.mrf.mxu1 }
 0x290   : > { %v1830_v55 = vmax.f32 %v1798_v51, 0.0  ;;  %v1796_v56 = vadd.f32 %v2772_v63, %v1757_v52  ;;  %v1760_v57 = vmul.f32 %v2767_v20, %v1647_v53  ;;  %v1639_v58 = vadd.f32 %v1638_v54, %v1426_v50  ;;  %v1471_v51 = vpop.f32.mrf.mxu0 }
 0x292   : > { %1862 = vst.msk [vmem:[%s2782_s12 + $0x30] sm:$0xff] %vm1320_vm3, %v1830_v55  ;;  %v1828_v61 = vmax.f32 %v1796_v56, 0.0  ;;  %v1799_v62 = vadd.f32 %v2772_v63, %v1760_v57  ;;  %v1758_v1 = vmul.f32 %v2767_v20, %v1639_v58  ;;  %v2278_v54 = vpop.f32.mrf.mxu0 }
 0x294   : > { %1860 = vst.msk [vmem:[%s2782_s12 + $0x20] sm:$0xff] %vm1320_vm3, %v1828_v61  ;;  %v1831_v2 = vmax.f32 %v1799_v62, 0.0  ;;  %v1797_v3 = vadd.f32 %v2772_v63, %v1758_v1  ;;  %v1474_v61 = vpop.f32.mrf.mxu0 }
 0x296   : > { %1863 = vst.msk [vmem:[%s2782_s12 + $0x38] sm:$0xff] %vm1320_vm3, %v1831_v2  ;;  %v1829_v5 = vmax.f32 %v1797_v3, 0.0 }
 0x298   : > { %1861 = vst.msk [vmem:[%s2782_s12 + $0x28] sm:$0xff] %vm1320_vm3, %v1829_v5 }
 0x299   : > { %v2303_v6 = vpop.f32.mrf.mxu1 }
 0x29a   : > { %v1660_v8 = vadd.f32 %v2303_v6, %v2269_v60 }
 0x29b   : > { %v1651_v9 = vpop.f32.mrf.mxu1 }
 0x29c   : > { %v1763_v10 = vmul.f32 %v2767_v20, %v1660_v8  ;;  %v1652_v11 = vadd.f32 %v1651_v9, %v1439_v4  ;;  %v2281_v8 = vpop.f32.mrf.mxu0 }
 0x29d   : > { %v2304_v12 = vpop.f32.mrf.mxu1 }
 0x29e   : > { %v1802_v0 = vadd.f32 %v2772_v63, %v1763_v10  ;;  %v1761_v14 = vmul.f32 %v2767_v20, %v1652_v11  ;;  %v1663_v15 = vadd.f32 %v2304_v12, %v2270_v7 }
 0x29f   : > { %v1654_v16 = vpop.f32.mrf.mxu1 }
 0x2a0   : > { %v1834_v17 = vmax.f32 %v1802_v0, 0.0  ;;  %v1800_v18 = vadd.f32 %v2772_v63, %v1761_v14  ;;  %v1764_v19 = vmul.f32 %v2767_v20, %v1663_v15  ;;  %v1655_v21 = vadd.f32 %v1654_v16, %v1442_v13  ;;  %v1487_v0 = vpop.f32.mrf.mxu0 }
 0x2a2   : > { %1866 = vst.msk [vmem:[%s2782_s12 + $0x50] sm:$0xff] %vm1320_vm3, %v1834_v17  ;;  %v1832_v22 = vmax.f32 %v1800_v18, 0.0  ;;  %v1803_v23 = vadd.f32 %v2772_v63, %v1764_v19  ;;  %v1762_v24 = vmul.f32 %v2767_v20, %v1655_v21  ;;  %v2282_v16 = vpop.f32.mrf.mxu0 }
 0x2a4   : > { %1864 = vst.msk [vmem:[%s2782_s12 + $0x40] sm:$0xff] %vm1320_vm3, %v1832_v22  ;;  %v1835_v25 = vmax.f32 %v1803_v23, 0.0  ;;  %v1801_v26 = vadd.f32 %v2772_v63, %v1762_v24  ;;  %v1490_v22 = vpop.f32.mrf.mxu0 }
 0x2a6   : > { %1867 = vst.msk [vmem:[%s2782_s12 + $0x58] sm:$0xff] %vm1320_vm3, %v1835_v25  ;;  %v1833_v28 = vmax.f32 %v1801_v26, 0.0 }
 0x2a8   : > { %1865 = vst.msk [vmem:[%s2782_s12 + $0x48] sm:$0xff] %vm1320_vm3, %v1833_v28 }
 0x2a9   : > { %v2307_v29 = vpop.f32.mrf.mxu1 }
 0x2aa   : > { %v1676_v31 = vadd.f32 %v2307_v29, %v2273_v59 }
 0x2ab   : > { %v1667_v32 = vpop.f32.mrf.mxu1 }
 0x2ac   : > { %v1767_v33 = vmul.f32 %v2767_v20, %v1676_v31  ;;  %v1668_v34 = vadd.f32 %v1667_v32, %v1455_v27  ;;  %v2285_v31 = vpop.f32.mrf.mxu0 }
 0x2ad   : > { %v2308_v35 = vpop.f32.mrf.mxu1 }
 0x2ae   : > { %v1806_v37 = vadd.f32 %v2772_v63, %v1767_v33  ;;  %v1765_v38 = vmul.f32 %v2767_v20, %v1668_v34  ;;  %v1679_v39 = vadd.f32 %v2308_v35, %v2274_v30 }
 0x2af   : > { %v1670_v40 = vpop.f32.mrf.mxu1 }
 0x2b0   : > { %v1838_v41 = vmax.f32 %v1806_v37, 0.0  ;;  %v1804_v42 = vadd.f32 %v2772_v63, %v1765_v38  ;;  %v1768_v43 = vmul.f32 %v2767_v20, %v1679_v39  ;;  %v1671_v44 = vadd.f32 %v1670_v40, %v1458_v36  ;;  %v1503_v37 = vpop.f32.mrf.mxu0 }
 0x2b2   : > { %1870 = vst.msk [vmem:[%s2782_s12 + $0x70] sm:$0xff] %vm1320_vm3, %v1838_v41  ;;  %v1836_v46 = vmax.f32 %v1804_v42, 0.0  ;;  %v1807_v47 = vadd.f32 %v2772_v63, %v1768_v43  ;;  %v1766_v48 = vmul.f32 %v2767_v20, %v1671_v44  ;;  %v2286_v40 = vpop.f32.mrf.mxu0 }
 0x2b4   : > { %1868 = vst.msk [vmem:[%s2782_s12 + $0x60] sm:$0xff] %vm1320_vm3, %v1836_v46  ;;  %v1839_v49 = vmax.f32 %v1807_v47, 0.0  ;;  %v1805_v50 = vadd.f32 %v2772_v63, %v1766_v48  ;;  %v1506_v46 = vpop.f32.mrf.mxu0 }
 0x2b6   : > { %1871 = vst.msk [vmem:[%s2782_s12 + $0x78] sm:$0xff] %vm1320_vm3, %v1839_v49  ;;  %v1837_v52 = vmax.f32 %v1805_v50, 0.0 }
 0x2b8   : > { %1869 = vst.msk [vmem:[%s2782_s12 + $0x68] sm:$0xff] %vm1320_vm3, %v1837_v52 }
 0x2b9   : > { %v2311_v53 = vpop.f32.mrf.mxu1 }
 0x2ba   : > { %v1692_v55 = vadd.f32 %v2311_v53, %v2277_v45 }
 0x2bb   : > { %v1683_v56 = vpop.f32.mrf.mxu1 }
 0x2bc   : > { %v1771_v57 = vmul.f32 %v2767_v20, %v1692_v55  ;;  %v1684_v58 = vadd.f32 %v1683_v56, %v1471_v51 }
 0x2bd   : > { %v2312_v60 = vpop.f32.mrf.mxu1 }
 0x2be   : > { %v1810_v62 = vadd.f32 %v2772_v63, %v1771_v57  ;;  %v1769_v1 = vmul.f32 %v2767_v20, %v1684_v58  ;;  %v1695_v2 = vadd.f32 %v2312_v60, %v2278_v54  ;;  %v2289_v58 = vpop.f32.mrf.mxu0 }
 0x2bf   : > { %v1686_v3 = vpop.f32.mrf.mxu1 }
 0x2c0   : > { %v1842_v4 = vmax.f32 %v1810_v62, 0.0  ;;  %v1808_v5 = vadd.f32 %v2772_v63, %v1769_v1  ;;  %v1772_v6 = vmul.f32 %v2767_v20, %v1695_v2  ;;  %v1687_v7 = vadd.f32 %v1686_v3, %v1474_v61  ;;  %v1519_v1 = vpop.f32.mrf.mxu0 }
 0x2c2   : > { %1874 = vst.msk [vmem:[%s2782_s12 + $0x90] sm:$0xff] %vm1320_vm3, %v1842_v4  ;;  %v1840_v9 = vmax.f32 %v1808_v5, 0.0  ;;  %v1811_v10 = vadd.f32 %v2772_v63, %v1772_v6  ;;  %v1770_v11 = vmul.f32 %v2767_v20, %v1687_v7  ;;  %v2290_v4 = vpop.f32.mrf.mxu0 }
 0x2c4   : > { %1872 = vst.msk [vmem:[%s2782_s12 + $0x80] sm:$0xff] %vm1320_vm3, %v1840_v9  ;;  %v1843_v12 = vmax.f32 %v1811_v10, 0.0  ;;  %v1809_v13 = vadd.f32 %v2772_v63, %v1770_v11 }
 0x2c6   : > { %1875 = vst.msk [vmem:[%s2782_s12 + $0x98] sm:$0xff] %vm1320_vm3, %v1843_v12  ;;  %v1841_v14 = vmax.f32 %v1809_v13, 0.0  ;;  %v1522_v12 = vpop.f32.mrf.mxu0 }
 0x2c8   : > { %1873 = vst.msk [vmem:[%s2782_s12 + $0x88] sm:$0xff] %vm1320_vm3, %v1841_v14 }
 0x2c9   : > { %v2315_v15 = vpop.f32.mrf.mxu1 }
 0x2ca   : > { %v1708_v17 = vadd.f32 %v2315_v15, %v2281_v8 }
 0x2cb   : > { %v1699_v18 = vpop.f32.mrf.mxu1 }
 0x2cc   : > { %v1775_v19 = vmul.f32 %v2767_v20, %v1708_v17  ;;  %v1700_v21 = vadd.f32 %v1699_v18, %v1487_v0 }
 0x2cd   : > { %v2316_v59 = vpop.f32.mrf.mxu1 }
 0x2ce   : > { %v1814_v23 = vadd.f32 %v2772_v63, %v1775_v19  ;;  %v1773_v24 = vmul.f32 %v2767_v20, %v1700_v21  ;;  %v1711_v25 = vadd.f32 %v2316_v59, %v2282_v16 }
 0x2cf   : > { %v1702_v26 = vpop.f32.mrf.mxu1 }
 0x2d0   : > { %v1846_v27 = vmax.f32 %v1814_v23, 0.0  ;;  %v1812_v28 = vadd.f32 %v2772_v63, %v1773_v24  ;;  %v1776_v29 = vmul.f32 %v2767_v20, %v1711_v25  ;;  %v1703_v30 = vadd.f32 %v1702_v26, %v1490_v22 }
 0x2d2   : > { %1878 = vst.msk [vmem:[%s2782_s12 + $0xb0] sm:$0xff] %vm1320_vm3, %v1846_v27  ;;  %v1844_v32 = vmax.f32 %v1812_v28, 0.0  ;;  %v1815_v33 = vadd.f32 %v2772_v63, %v1776_v29  ;;  %v1774_v34 = vmul.f32 %v2767_v20, %v1703_v30 }
 0x2d4   : > { %1876 = vst.msk [vmem:[%s2782_s12 + $0xa0] sm:$0xff] %vm1320_vm3, %v1844_v32  ;;  %v1847_v35 = vmax.f32 %v1815_v33, 0.0  ;;  %v1813_v36 = vadd.f32 %v2772_v63, %v1774_v34 }
 0x2d6   : > { %1879 = vst.msk [vmem:[%s2782_s12 + $0xb8] sm:$0xff] %vm1320_vm3, %v1847_v35  ;;  %v1845_v38 = vmax.f32 %v1813_v36, 0.0 }
 0x2d8   : > { %1877 = vst.msk [vmem:[%s2782_s12 + $0xa8] sm:$0xff] %vm1320_vm3, %v1845_v38 }
 0x2d9   : > { %v2319_v39 = vpop.f32.mrf.mxu1 }
 0x2da   : > { %v1724_v41 = vadd.f32 %v2319_v39, %v2285_v31 }
 0x2db   : > { %v1715_v42 = vpop.f32.mrf.mxu1 }
 0x2dc   : > { %v1779_v43 = vmul.f32 %v2767_v20, %v1724_v41  ;;  %v1716_v44 = vadd.f32 %v1715_v42, %v1503_v37 }
 0x2dd   : > { %v2320_v45 = vpop.f32.mrf.mxu1 }
 0x2de   : > { %v1818_v47 = vadd.f32 %v2772_v63, %v1779_v43  ;;  %v1777_v48 = vmul.f32 %v2767_v20, %v1716_v44  ;;  %v1727_v49 = vadd.f32 %v2320_v45, %v2286_v40 }
 0x2df   : > { %v1718_v50 = vpop.f32.mrf.mxu1 }
 0x2e0   : > { %v1850_v51 = vmax.f32 %v1818_v47, 0.0  ;;  %v1816_v52 = vadd.f32 %v2772_v63, %v1777_v48  ;;  %v1780_v53 = vmul.f32 %v2767_v20, %v1727_v49  ;;  %v1719_v54 = vadd.f32 %v1718_v50, %v1506_v46 }
 0x2e2   : > { %1882 = vst.msk [vmem:[%s2782_s12 + $0xd0] sm:$0xff] %vm1320_vm3, %v1850_v51  ;;  %v1848_v55 = vmax.f32 %v1816_v52, 0.0  ;;  %v1819_v56 = vadd.f32 %v2772_v63, %v1780_v53  ;;  %v1778_v57 = vmul.f32 %v2767_v20, %v1719_v54 }
 0x2e4   : > { %1880 = vst.msk [vmem:[%s2782_s12 + $0xc0] sm:$0xff] %vm1320_vm3, %v1848_v55  ;;  %v1851_v60 = vmax.f32 %v1819_v56, 0.0  ;;  %v1817_v61 = vadd.f32 %v2772_v63, %v1778_v57 }
 0x2e6   : > { %1883 = vst.msk [vmem:[%s2782_s12 + $0xd8] sm:$0xff] %vm1320_vm3, %v1851_v60  ;;  %v1849_v62 = vmax.f32 %v1817_v61, 0.0 }
 0x2e8   : > { %1881 = vst.msk [vmem:[%s2782_s12 + $0xc8] sm:$0xff] %vm1320_vm3, %v1849_v62 }
 0x2e9   : > { %v2323_v2 = vpop.f32.mrf.mxu1 }
 0x2ea   : > { %v1740_v3 = vadd.f32 %v2323_v2, %v2289_v58 }
 0x2eb   : > { %v1731_v5 = vpop.f32.mrf.mxu1 }
 0x2ec   : > { %v1783_v6 = vmul.f32 %v2767_v20, %v1740_v3  ;;  %v1732_v7 = vadd.f32 %v1731_v5, %v1519_v1 }
 0x2ed   : > { %v2324_v8 = vpop.f32.mrf.mxu1 }
 0x2ee   : > { %v1822_v9 = vadd.f32 %v2772_v63, %v1783_v6  ;;  %v1781_v10 = vmul.f32 %v2767_v20, %v1732_v7  ;;  %v1743_v11 = vadd.f32 %v2324_v8, %v2290_v4 }
 0x2ef   : > { %v1734_v13 = vpop.f32.mrf.mxu1 }
 0x2f0   : > { %v1854_v0 = vmax.f32 %v1822_v9, 0.0  ;;  %v1820_v14 = vadd.f32 %v2772_v63, %v1781_v10  ;;  %v1784_v15 = vmul.f32 %v2767_v20, %v1743_v11  ;;  %v1735_v16 = vadd.f32 %v1734_v13, %v1522_v12 }
 0x2f2   : > { %1886 = vst.msk [vmem:[%s2782_s12 + $0xf0] sm:$0xff] %vm1320_vm3, %v1854_v0  ;;  %v1852_v17 = vmax.f32 %v1820_v14, 0.0  ;;  %v1823_v18 = vadd.f32 %v2772_v63, %v1784_v15  ;;  %v1782_v19 = vmul.f32 %v2767_v20, %v1735_v16 }
 0x2f4   : > { %1884 = vst.msk [vmem:[%s2782_s12 + $0xe0] sm:$0xff] %vm1320_vm3, %v1852_v17  ;;  %v1855_v21 = vmax.f32 %v1823_v18, 0.0  ;;  %v1821_v59 = vadd.f32 %v2772_v63, %v1782_v19 }
 0x2f6   : > { %1887 = vst.msk [vmem:[%s2782_s12 + $0xf8] sm:$0xff] %vm1320_vm3, %v1855_v21  ;;  %v1853_v22 = vmax.f32 %v1821_v59, 0.0 }
 0x2f8   : > { %1885 = vst.msk [vmem:[%s2782_s12 + $0xe8] sm:$0xff] %vm1320_vm3, %v1853_v22 }
 0x2f9 PF: > { %s20_s15 = sadd.s32 1, %s2424_s15   ;;  %s2929_s13 = smov %s2420_s14 }
 0x2fa   : > { %p17_p5 = scmp.ge.s32.totalorder %s20_s15, 4   ;;  %s2930_s14 = smov %s2932_s16 }
 0x2fc   :  { %19 = sbr.rel (!%p17_p5) target bundleno = 2 (0x2), region = 96 }

</bundles_post_ra>
